<compile_context>
chip_gen: v7x
topology: tpu7x:2x2x1
jax: 0.10.0
libtpu: 0.0.40
codegen_flags: <defaults>
</compile_context>

<pallas_src>
import functools

import jax
import jax.numpy as jnp
import numpy as np
from jax import lax
from jax.experimental import pallas as pl
from jax.experimental.pallas import tpu as pltpu


# ----------------------------------------------------------------------------
# Pallas kernels
# ----------------------------------------------------------------------------
def _gemm_bn_act_kernel(x_ref, w_ref, shift_ref, o_ref, *, relu):
    """o = relu?( x @ w + shift ); BN scale already folded into w."""
    acc = jnp.dot(x_ref[...], w_ref[...], preferred_element_type=jnp.float32)
    y = acc + shift_ref[...]
    if relu:
        y = jnp.maximum(y, 0.0)
    o_ref[...] = y.astype(o_ref.dtype)


def _gemm_bn_relu_head_kernel(x_ref, w_ref, shift_ref, w2_ref, b2_ref, o_ref):
    """Last deconv + BN + ReLU, then the fused 1x1 final conv (+bias) epilogue."""
    acc = jnp.dot(x_ref[...], w_ref[...], preferred_element_type=jnp.float32)
    y = jnp.maximum(acc + shift_ref[...], 0.0)
    z = jnp.dot(y.astype(w2_ref.dtype), w2_ref[...],
                preferred_element_type=jnp.float32)
    o_ref[...] = (z + b2_ref[...]).astype(o_ref.dtype)


def _round_up(x, m):
    return (x + m - 1) // m * m


def fused_gemm(x, w, shift, *, relu, out_dtype, w2=None, b2=None, tm_max=512):
    """(M,K) @ (Kp,Np) with per-column shift (+ReLU).  bf16 operands, f32 acc.

    `w` / `shift` (and optional `w2` / `b2` for the fused final-layer path) are
    pre-padded, pre-cast GEMM-layout arrays from prepare_params().  tk = full K,
    tn = full N; grid is a short 1-D "parallel" loop over M tiles.
    Returns the (M, Np) [or (M, N2p)] result; caller slices real columns.
    """
    M, K = x.shape
    Kp, Np = w.shape
    assert Kp >= K, (Kp, K)

    tm = min(tm_max, _round_up(M, 128))
    Mp = _round_up(M, tm)

    xb = x.astype(jnp.bfloat16)
    if (Mp, Kp) != (M, K):
        xb = jnp.pad(xb, ((0, Mp - M), (0, Kp - K)))

    grid = (Mp // tm,)

    if w2 is None:
        out = pl.pallas_call(
            functools.partial(_gemm_bn_act_kernel, relu=relu),
            out_shape=jax.ShapeDtypeStruct((Mp, Np), out_dtype),
            grid_spec=pltpu.PrefetchScalarGridSpec(
                num_scalar_prefetch=0,
                grid=grid,
                in_specs=[
                    pl.BlockSpec((tm, Kp), lambda i: (i, 0)),
                    pl.BlockSpec((Kp, Np), lambda i: (0, 0)),
                    pl.BlockSpec((1, Np), lambda i: (0, 0)),
                ],
                out_specs=pl.BlockSpec((tm, Np), lambda i: (i, 0)),
            ),
            compiler_params=pltpu.CompilerParams(
                dimension_semantics=("parallel",)),
        )(xb, w, shift)
    else:
        N2p = w2.shape[1]
        out = pl.pallas_call(
            _gemm_bn_relu_head_kernel,
            out_shape=jax.ShapeDtypeStruct((Mp, N2p), out_dtype),
            grid_spec=pltpu.PrefetchScalarGridSpec(
                num_scalar_prefetch=0,
                grid=grid,
                in_specs=[
                    pl.BlockSpec((tm, Kp), lambda i: (i, 0)),
                    pl.BlockSpec((Kp, Np), lambda i: (0, 0)),
                    pl.BlockSpec((1, Np), lambda i: (0, 0)),
                    pl.BlockSpec((Np, N2p), lambda i: (0, 0)),
                    pl.BlockSpec((1, N2p), lambda i: (0, 0)),
                ],
                out_specs=pl.BlockSpec((tm, N2p), lambda i: (i, 0)),
            ),
            compiler_params=pltpu.CompilerParams(
                dimension_semantics=("parallel",)),
        )(xb, w, shift, w2, b2)

    return out if Mp == M else out[:M]


# ----------------------------------------------------------------------------
# One-time parameter prep: fold BN scale into weights, build GEMM-layout,
# pad / cast to the exact shapes the kernels consume.
# ----------------------------------------------------------------------------
def _bn_fold(gamma, beta, mean, var, eps=1e-5):
    scale = gamma / jnp.sqrt(var + eps)
    shift = beta - mean * scale
    return scale, shift


def _pad2d(a, rows, cols):
    r, c = a.shape
    if (rows, cols) == (r, c):
        return a
    return jnp.pad(a, ((0, rows - r), (0, cols - c)))


def prep_backbone(p):
    """Backbone stand-in conv (Cout, Cin, 4, 4), stride 4, VALID, + BN."""
    scale, shift = _bn_fold(*p["bn"])
    wf = p["w"] * scale[:, None, None, None]                   # fold BN scale
    cout, cin = wf.shape[0], wf.shape[1]
    K = 16 * cin
    wmat = jnp.transpose(wf, (2, 3, 1, 0)).reshape(K, cout)    # (KH*KW*Cin, Cout)
    Kp, Np = _round_up(K, 128), _round_up(cout, 128)
    w = _pad2d(wmat, Kp, Np).astype(jnp.bfloat16)
    s = _pad2d(shift.reshape(1, cout).astype(jnp.float32), 1, Np)
    return w, s


# (parity, offset) -> kernel tap, derived from  oh = 2*ih - 1 + kh.
_K_OF = {(0, 0): 3, (0, 1): 1, (1, 1): 2, (1, 2): 0}


def prep_deconv(p):
    """ConvTranspose2d(k=4, s=2, p=1) weight (Cin, Cout, 4, 4) + BN ->
    sub-pixel GEMM weight of shape (round_up(9*Cin,128), 4*Cout) in bf16.

    Rows indexed by (dh, dw, ci): 9 shifted taps of the 1-padded input.
    Columns indexed by (ph, pw, co): 4 output parities.
    """
    scale, shift = _bn_fold(*p["bn"])
    wf = p["w"] * scale[None, :, None, None]                   # (Cin, Cout, 4, 4)
    cin, cout = wf.shape[0], wf.shape[1]

    sel = np.zeros((3, 2, 4), np.float32)                      # (offset, parity, tap)
    for (ph, dh), kh in _K_OF.items():
        sel[dh, ph, kh] = 1.0
    sel = jnp.asarray(sel)
    # wb[dh, dw, ci, ph, pw, co]
    wb = jnp.einsum("apx,bqy,ioxy->abipqo", sel, sel, wf)

    K, N = 9 * cin, 4 * cout
    Kp, Np = _round_up(K, 128), _round_up(N, 128)
    w = _pad2d(wb.reshape(K, N), Kp, Np).astype(jnp.bfloat16)
    s = _pad2d(jnp.tile(shift, 4).reshape(1, N).astype(jnp.float32), 1, Np)
    return w, s


def prep_final(p, cout):
    """final_layer Conv2d(cout, J, k=1) + bias -> block-diagonal per-parity weight."""
    joints = p["w"].shape[0]
    wf = p["w"].reshape(joints, cout).T                        # (Cout, J)
    w2 = jnp.kron(jnp.eye(4, dtype=wf.dtype), wf)              # (4*Cout, 4*J)
    N, N2 = 4 * cout, 4 * joints
    Np, N2p = _round_up(N, 128), _round_up(N2, 128)
    w2 = _pad2d(w2, Np, N2p).astype(jnp.bfloat16)
    b2 = _pad2d(jnp.tile(p["b"], 4).reshape(1, N2).astype(jnp.float32), 1, N2p)
    return w2, b2


def prepare_params(params):
    return {
        "backbone": prep_backbone(params["backbone"]),
        "deconv": [prep_deconv(p) for p in params["deconv"]],
        "final": prep_final(params["final"], FILTERS[-1]),
    }


# ----------------------------------------------------------------------------
# Layer wrappers (layout glue in JAX, GEMM in Pallas)
# ----------------------------------------------------------------------------
def conv4x4_s4_bn_relu(x, wmat, shift, cout):
    """4x4 stride-4 VALID conv: non-overlapping patches -> im2col is a reshape."""
    N, H, W, C = x.shape
    assert H % 4 == 0 and W % 4 == 0
    Ho, Wo = H // 4, W // 4
    pat = x.reshape(N, Ho, 4, Wo, 4, C)
    pat = jnp.transpose(pat, (0, 1, 3, 2, 4, 5)).reshape(N * Ho * Wo, 16 * C)
    y = fused_gemm(pat, wmat, shift, relu=True, out_dtype=jnp.bfloat16)
    return y[:, :cout].reshape(N, Ho, Wo, cout)


def _deconv_taps(x):
    """9 shifted views of the 1-padded map, concatenated along channels.
    Zero columns appended inside the same concatenate so K is already a multiple
    of 128 (no separate pad pass over the big im2col matrix)."""
    N, H, W, C = x.shape
    xp = jnp.pad(x, ((0, 0), (1, 1), (1, 1), (0, 0)))
    taps = [xp[:, dh:dh + H, dw:dw + W, :] for dh in range(3) for dw in range(3)]
    K = 9 * C
    Kp = _round_up(K, 128)
    if Kp != K:
        taps.append(jnp.zeros((N, H, W, Kp - K), x.dtype))
    return jnp.concatenate(taps, axis=-1).reshape(N * H * W, Kp)


def _interleave_parities(y, n, h, w, c):
    """(n*h*w, 4*c) with columns ordered (ph, pw, c)  ->  (n, 2h, 2w, c)."""
    y = y.reshape(n, h, w, 2, 2, c)
    y = jnp.transpose(y, (0, 1, 3, 2, 4, 5))
    return y.reshape(n, 2 * h, 2 * w, c)


def deconv_bn_relu(x, wmat, shift4, cout):
    N, H, W, _ = x.shape
    y = fused_gemm(_deconv_taps(x), wmat, shift4, relu=True,
                   out_dtype=jnp.bfloat16)
    return _interleave_parities(y[:, :4 * cout], N, H, W, cout)


def deconv_bn_relu_final(x, wmat, shift4, w2, b2, joints):
    N, H, W, _ = x.shape
    y = fused_gemm(_deconv_taps(x), wmat, shift4, relu=True,
                   out_dtype=jnp.float32, w2=w2, b2=b2)
    return _interleave_parities(y[:, :4 * joints], N, H, W, joints)


# ----------------------------------------------------------------------------
# SimplePoseResNet forward (takes one-time-prepared params)
# ----------------------------------------------------------------------------
# scaled-down config (real module: filters=(2048,256,256,256), /32 backbone)
FILTERS = (64, 32, 32, 32)
NUM_JOINTS = 17
IN_CHANNELS = 3


def simple_pose_resnet_forward(x_nchw, prepped):
    x = jnp.transpose(x_nchw, (0, 2, 3, 1)).astype(jnp.bfloat16)   # NHWC, bf16

    wb, sb = prepped["backbone"]
    x = conv4x4_s4_bn_relu(x, wb, sb, FILTERS[0])

    # deconv_layers: 3 x [ConvTranspose2d(k=4,s=2,p=1,bias=False) -> BN -> ReLU]
    for i in range(2):
        wd, sd = prepped["deconv"][i]
        x = deconv_bn_relu(x, wd, sd, FILTERS[i + 1])

    # last deconv with the final_layer 1x1 conv (+bias) fused into its epilogue
    wd, sd = prepped["deconv"][2]
    wf2, bf2 = prepped["final"]
    x = deconv_bn_relu_final(x, wd, sd, wf2, bf2, NUM_JOINTS)       # (N,Ho,Wo,J) f32

    return jnp.transpose(x, (0, 3, 1, 2))                           # back to NCHW


# ----------------------------------------------------------------------------
# Pure-JAX reference (XLA convs, same bf16 operand precision) for correctness
# ----------------------------------------------------------------------------
def reference_forward(x_nchw, params, eps=1e-5):
    x = jnp.transpose(x_nchw, (0, 2, 3, 1)).astype(jnp.bfloat16)

    def fold(w, bn, cout_axis):
        gamma, beta, mean, var = bn
        scale = gamma / jnp.sqrt(var + eps)
        shift = beta - mean * scale
        shape = [1] * w.ndim
        shape[cout_axis] = -1
        return w * scale.reshape(shape), shift

    p = params["backbone"]
    wf, shift = fold(p["w"], p["bn"], cout_axis=0)
    w_hwio = jnp.transpose(wf, (2, 3, 1, 0)).astype(jnp.bfloat16)
    y = lax.conv_general_dilated(x, w_hwio, (4, 4), "VALID",
                                 dimension_numbers=("NHWC", "HWIO", "NHWC"),
                                 preferred_element_type=jnp.float32)
    y = jnp.maximum(y + shift, 0.0).astype(jnp.bfloat16)

    for p in params["deconv"]:
        wf, shift = fold(p["w"], p["bn"], cout_axis=1)
        w_hwio = jnp.transpose(jnp.flip(wf, (2, 3)), (2, 3, 0, 1)).astype(jnp.bfloat16)
        y = lax.conv_general_dilated(y, w_hwio, (1, 1), ((2, 2), (2, 2)),
                                     lhs_dilation=(2, 2),
                                     dimension_numbers=("NHWC", "HWIO", "NHWC"),
                                     preferred_element_type=jnp.float32)
        y = jnp.maximum(y + shift, 0.0).astype(jnp.bfloat16)

    p = params["final"]
    w_hwio = jnp.transpose(p["w"], (2, 3, 1, 0)).astype(jnp.bfloat16)
    y = lax.conv_general_dilated(y, w_hwio, (1, 1), "VALID",
                                 dimension_numbers=("NHWC", "HWIO", "NHWC"),
                                 preferred_element_type=jnp.float32) + p["b"]
    return jnp.transpose(y, (0, 3, 1, 2))


# ----------------------------------------------------------------------------
# Deterministic parameter init (synthetic weights, shapes per __init__)
# ----------------------------------------------------------------------------
def init_params(key):
    keys = iter(jax.random.split(key, 64))

    def bn_params(c):
        gamma = 1.0 + 0.1 * jax.random.normal(next(keys), (c,), jnp.float32)
        beta = 0.1 * jax.random.normal(next(keys), (c,), jnp.float32)
        mean = 0.1 * jax.random.normal(next(keys), (c,), jnp.float32)
        var = 0.5 + jax.random.uniform(next(keys), (c,), jnp.float32)
        return (gamma, beta, mean, var)

    params = {
        "backbone": {
            "w": jax.random.normal(next(keys), (FILTERS[0], IN_CHANNELS, 4, 4),
                                   jnp.float32) / np.sqrt(IN_CHANNELS * 16),
            "bn": bn_params(FILTERS[0]),
        },
        "deconv": [],
        "final": {},
    }
    for i in range(3):
        cin, cout = FILTERS[i], FILTERS[i + 1]
        params["deconv"].append({
            # PyTorch ConvTranspose2d weight layout: (Cin, Cout, KH, KW)
            "w": jax.random.normal(next(keys), (cin, cout, 4, 4),
                                   jnp.float32) / np.sqrt(cin * 16),
            "bn": bn_params(cout),
        })
    params["final"] = {
        "w": jax.random.normal(next(keys), (NUM_JOINTS, FILTERS[-1], 1, 1),
                               jnp.float32) / np.sqrt(FILTERS[-1]),
        "b": 0.1 * jax.random.normal(next(keys), (NUM_JOINTS,), jnp.float32),
    }
    return params


if __name__ == "__main__":
    root = jax.random.PRNGKey(0)
    pkey, xkey = jax.random.split(root)
    params = init_params(pkey)

    # one-time weight prep (not part of the per-call hot path)
    prepped = jax.tree_util.tree_map(jax.block_until_ready,
                                     prepare_params(params))

    # small NCHW input, like the PyTorch module expects
    x = jax.random.normal(xkey, (2, IN_CHANNELS, 32, 32), jnp.float32)

    fwd = jax.jit(simple_pose_resnet_forward)
    out = jax.block_until_ready(fwd(x, prepped))
    assert out.shape == (2, NUM_JOINTS, 64, 64), out.shape

    ref = jax.block_until_ready(reference_forward(x, params))
    # bf16 operands / bf16 inter-layer activations in both paths; remaining
    # difference is summation order + occasional 1-ulp bf16 rounding flips.
    np.testing.assert_allclose(np.asarray(out), np.asarray(ref),
                               rtol=2e-2, atol=2e-2)

    print("KERNEL_OK")
</pallas_src>

<mosaic_0001>
module attributes {stable_mosaic.version = 11 : i64} {
  func.func @_gemm_bn_act_kernel(%arg0: i32, %arg1: memref<128x128xbf16, #tpu.memory_space<vmem>>, %arg2: memref<128x128xbf16, #tpu.memory_space<vmem>>, %arg3: memref<1x128xf32, #tpu.memory_space<vmem>>, %arg4: memref<128x128xbf16, #tpu.memory_space<vmem>>) attributes {dimension_semantics = [#tpu.dimension_semantics<parallel>], iteration_bounds = array<i64: 1>, scalar_prefetch = 0 : i64, scratch_operands = 0 : i64, tpu.core_type = #tpu.core_type<tc>, window_params = [{transform_indices = @transform_0, window_bounds = array<i64: 128, 128>}, {pipeline_mode = #tpu.pipeline_mode<synchronous>, transform_indices = @transform_1, window_bounds = array<i64: 128, 128>}, {pipeline_mode = #tpu.pipeline_mode<synchronous>, transform_indices = @transform_2, window_bounds = array<i64: 1, 128>}, {transform_indices = @transform_3, window_bounds = array<i64: 128, 128>}]} {
    %c0 = arith.constant 0 : index
    %c0_0 = arith.constant 0 : index
    %0 = vector.load %arg1[%c0, %c0_0] : memref<128x128xbf16, #tpu.memory_space<vmem>>, vector<128x128xbf16>
    %c0_1 = arith.constant 0 : index
    %c0_2 = arith.constant 0 : index
    %1 = vector.load %arg2[%c0_1, %c0_2] : memref<128x128xbf16, #tpu.memory_space<vmem>>, vector<128x128xbf16>
    %cst = arith.constant dense<0.000000e+00> : vector<128x128xf32>
    %2 = tpu.matmul %0, %1, %cst {dimension_numbers = #tpu.dot_dimension_numbers<[1], [0], [0], [1], [0, 0, 1, 1], [], []>} : vector<128x128xbf16>, vector<128x128xbf16>, vector<128x128xf32> -> vector<128x128xf32>
    %c0_3 = arith.constant 0 : index
    %c0_4 = arith.constant 0 : index
    %3 = vector.load %arg3[%c0_3, %c0_4] : memref<1x128xf32, #tpu.memory_space<vmem>>, vector<1x128xf32>
    %4 = vector.broadcast %3 : vector<1x128xf32> to vector<128x128xf32>
    %5 = arith.addf %2, %4 : vector<128x128xf32>
    %cst_5 = arith.constant 0.000000e+00 : f32
    %6 = vector.broadcast %cst_5 : f32 to vector<128x128xf32>
    %7 = arith.maximumf %5, %6 : vector<128x128xf32>
    %8 = arith.truncf %7 : vector<128x128xf32> to vector<128x128xbf16>
    %c0_6 = arith.constant 0 : index
    %c0_7 = arith.constant 0 : index
    %9 = vector.load %arg4[%c0_6, %c0_7] : memref<128x128xbf16, #tpu.memory_space<vmem>>, vector<128x128xbf16>
    tpu.vector_store %arg4[%c0_6, %c0_7], %8 {strides = array<i32>} : memref<128x128xbf16, #tpu.memory_space<vmem>>, vector<128x128xbf16>,
    return
  }
  func.func @transform_0(%arg0: i32) -> (i32, i32) {
    %c0_i32 = arith.constant 0 : i32
    %c0_i32_0 = arith.constant 0 : i32
    return %arg0, %c0_i32 : i32, i32
  }
  func.func @transform_1(%arg0: i32) -> (i32, i32) {
    %c0_i32 = arith.constant 0 : i32
    %c0_i32_0 = arith.constant 0 : i32
    %c0_i32_1 = arith.constant 0 : i32
    return %c0_i32, %c0_i32_0 : i32, i32
  }
  func.func @transform_2(%arg0: i32) -> (i32, i32) {
    %c0_i32 = arith.constant 0 : i32
    %c0_i32_0 = arith.constant 0 : i32
    %c0_i32_1 = arith.constant 0 : i32
    return %c0_i32, %c0_i32_0 : i32, i32
  }
  func.func @transform_3(%arg0: i32) -> (i32, i32) {
    %c0_i32 = arith.constant 0 : i32
    %c0_i32_0 = arith.constant 0 : i32
    return %arg0, %c0_i32 : i32, i32
  }
}

module attributes {stable_mosaic.version = 11 : i64} {
  func.func @_gemm_bn_act_kernel(%arg0: i32, %arg1: memref<128x640xbf16, #tpu.memory_space<vmem>>, %arg2: memref<640x128xbf16, #tpu.memory_space<vmem>>, %arg3: memref<1x128xf32, #tpu.memory_space<vmem>>, %arg4: memref<128x128xbf16, #tpu.memory_space<vmem>>) attributes {dimension_semantics = [#tpu.dimension_semantics<parallel>], iteration_bounds = array<i64: 1>, scalar_prefetch = 0 : i64, scratch_operands = 0 : i64, tpu.core_type = #tpu.core_type<tc>, window_params = [{transform_indices = @transform_0, window_bounds = array<i64: 128, 640>}, {pipeline_mode = #tpu.pipeline_mode<synchronous>, transform_indices = @transform_1, window_bounds = array<i64: 640, 128>}, {pipeline_mode = #tpu.pipeline_mode<synchronous>, transform_indices = @transform_2, window_bounds = array<i64: 1, 128>}, {transform_indices = @transform_3, window_bounds = array<i64: 128, 128>}]} {
    %c0 = arith.constant 0 : index
    %c0_0 = arith.constant 0 : index
    %0 = vector.load %arg1[%c0, %c0_0] : memref<128x640xbf16, #tpu.memory_space<vmem>>, vector<128x640xbf16>
    %c0_1 = arith.constant 0 : index
    %c0_2 = arith.constant 0 : index
    %1 = vector.load %arg2[%c0_1, %c0_2] : memref<640x128xbf16, #tpu.memory_space<vmem>>, vector<640x128xbf16>
    %cst = arith.constant dense<0.000000e+00> : vector<128x128xf32>
    %2 = tpu.matmul %0, %1, %cst {dimension_numbers = #tpu.dot_dimension_numbers<[1], [0], [0], [1], [0, 0, 1, 1], [], []>} : vector<128x640xbf16>, vector<640x128xbf16>, vector<128x128xf32> -> vector<128x128xf32>
    %c0_3 = arith.constant 0 : index
    %c0_4 = arith.constant 0 : index
    %3 = vector.load %arg3[%c0_3, %c0_4] : memref<1x128xf32, #tpu.memory_space<vmem>>, vector<1x128xf32>
    %4 = vector.broadcast %3 : vector<1x128xf32> to vector<128x128xf32>
    %5 = arith.addf %2, %4 : vector<128x128xf32>
    %cst_5 = arith.constant 0.000000e+00 : f32
    %6 = vector.broadcast %cst_5 : f32 to vector<128x128xf32>
    %7 = arith.maximumf %5, %6 : vector<128x128xf32>
    %8 = arith.truncf %7 : vector<128x128xf32> to vector<128x128xbf16>
    %c0_6 = arith.constant 0 : index
    %c0_7 = arith.constant 0 : index
    %9 = vector.load %arg4[%c0_6, %c0_7] : memref<128x128xbf16, #tpu.memory_space<vmem>>, vector<128x128xbf16>
    tpu.vector_store %arg4[%c0_6, %c0_7], %8 {strides = array<i32>} : memref<128x128xbf16, #tpu.memory_space<vmem>>, vector<128x128xbf16>,
    return
  }
  func.func @transform_0(%arg0: i32) -> (i32, i32) {
    %c0_i32 = arith.constant 0 : i32
    %c0_i32_0 = arith.constant 0 : i32
    return %arg0, %c0_i32 : i32, i32
  }
  func.func @transform_1(%arg0: i32) -> (i32, i32) {
    %c0_i32 = arith.constant 0 : i32
    %c0_i32_0 = arith.constant 0 : i32
    %c0_i32_1 = arith.constant 0 : i32
    return %c0_i32, %c0_i32_0 : i32, i32
  }
  func.func @transform_2(%arg0: i32) -> (i32, i32) {
    %c0_i32 = arith.constant 0 : i32
    %c0_i32_0 = arith.constant 0 : i32
    %c0_i32_1 = arith.constant 0 : i32
    return %c0_i32, %c0_i32_0 : i32, i32
  }
  func.func @transform_3(%arg0: i32) -> (i32, i32) {
    %c0_i32 = arith.constant 0 : i32
    %c0_i32_0 = arith.constant 0 : i32
    return %arg0, %c0_i32 : i32, i32
  }
}

module attributes {stable_mosaic.version = 11 : i64} {
  func.func @_gemm_bn_act_kernel(%arg0: i32, %arg1: memref<512x384xbf16, #tpu.memory_space<vmem>>, %arg2: memref<384x128xbf16, #tpu.memory_space<vmem>>, %arg3: memref<1x128xf32, #tpu.memory_space<vmem>>, %arg4: memref<512x128xbf16, #tpu.memory_space<vmem>>) attributes {dimension_semantics = [#tpu.dimension_semantics<parallel>], iteration_bounds = array<i64: 1>, scalar_prefetch = 0 : i64, scratch_operands = 0 : i64, tpu.core_type = #tpu.core_type<tc>, window_params = [{transform_indices = @transform_0, window_bounds = array<i64: 512, 384>}, {pipeline_mode = #tpu.pipeline_mode<synchronous>, transform_indices = @transform_1, window_bounds = array<i64: 384, 128>}, {pipeline_mode = #tpu.pipeline_mode<synchronous>, transform_indices = @transform_2, window_bounds = array<i64: 1, 128>}, {transform_indices = @transform_3, window_bounds = array<i64: 512, 128>}]} {
    %c0 = arith.constant 0 : index
    %c0_0 = arith.constant 0 : index
    %0 = vector.load %arg1[%c0, %c0_0] : memref<512x384xbf16, #tpu.memory_space<vmem>>, vector<512x384xbf16>
    %c0_1 = arith.constant 0 : index
    %c0_2 = arith.constant 0 : index
    %1 = vector.load %arg2[%c0_1, %c0_2] : memref<384x128xbf16, #tpu.memory_space<vmem>>, vector<384x128xbf16>
    %cst = arith.constant dense<0.000000e+00> : vector<512x128xf32>
    %2 = tpu.matmul %0, %1, %cst {dimension_numbers = #tpu.dot_dimension_numbers<[1], [0], [0], [1], [0, 0, 1, 1], [], []>} : vector<512x384xbf16>, vector<384x128xbf16>, vector<512x128xf32> -> vector<512x128xf32>
    %c0_3 = arith.constant 0 : index
    %c0_4 = arith.constant 0 : index
    %3 = vector.load %arg3[%c0_3, %c0_4] : memref<1x128xf32, #tpu.memory_space<vmem>>, vector<1x128xf32>
    %4 = vector.broadcast %3 : vector<1x128xf32> to vector<512x128xf32>
    %5 = arith.addf %2, %4 : vector<512x128xf32>
    %cst_5 = arith.constant 0.000000e+00 : f32
    %6 = vector.broadcast %cst_5 : f32 to vector<512x128xf32>
    %7 = arith.maximumf %5, %6 : vector<512x128xf32>
    %8 = arith.truncf %7 : vector<512x128xf32> to vector<512x128xbf16>
    %c0_6 = arith.constant 0 : index
    %c0_7 = arith.constant 0 : index
    %9 = vector.load %arg4[%c0_6, %c0_7] : memref<512x128xbf16, #tpu.memory_space<vmem>>, vector<512x128xbf16>
    tpu.vector_store %arg4[%c0_6, %c0_7], %8 {strides = array<i32>} : memref<512x128xbf16, #tpu.memory_space<vmem>>, vector<512x128xbf16>,
    return
  }
  func.func @transform_0(%arg0: i32) -> (i32, i32) {
    %c0_i32 = arith.constant 0 : i32
    %c0_i32_0 = arith.constant 0 : i32
    return %arg0, %c0_i32 : i32, i32
  }
  func.func @transform_1(%arg0: i32) -> (i32, i32) {
    %c0_i32 = arith.constant 0 : i32
    %c0_i32_0 = arith.constant 0 : i32
    %c0_i32_1 = arith.constant 0 : i32
    return %c0_i32, %c0_i32_0 : i32, i32
  }
  func.func @transform_2(%arg0: i32) -> (i32, i32) {
    %c0_i32 = arith.constant 0 : i32
    %c0_i32_0 = arith.constant 0 : i32
    %c0_i32_1 = arith.constant 0 : i32
    return %c0_i32, %c0_i32_0 : i32, i32
  }
  func.func @transform_3(%arg0: i32) -> (i32, i32) {
    %c0_i32 = arith.constant 0 : i32
    %c0_i32_0 = arith.constant 0 : i32
    return %arg0, %c0_i32 : i32, i32
  }
}

module attributes {stable_mosaic.version = 11 : i64} {
  func.func @_gemm_bn_relu_head_kernel(%arg0: i32, %arg1: memref<512x384xbf16, #tpu.memory_space<vmem>>, %arg2: memref<384x128xbf16, #tpu.memory_space<vmem>>, %arg3: memref<1x128xf32, #tpu.memory_space<vmem>>, %arg4: memref<128x128xbf16, #tpu.memory_space<vmem>>, %arg5: memref<1x128xf32, #tpu.memory_space<vmem>>, %arg6: memref<512x128xf32, #tpu.memory_space<vmem>>) attributes {dimension_semantics = [#tpu.dimension_semantics<parallel>], iteration_bounds = array<i64: 4>, scalar_prefetch = 0 : i64, scratch_operands = 0 : i64, tpu.core_type = #tpu.core_type<tc>, window_params = [{transform_indices = @transform_0, window_bounds = array<i64: 512, 384>}, {pipeline_mode = #tpu.pipeline_mode<synchronous>, transform_indices = @transform_1, window_bounds = array<i64: 384, 128>}, {pipeline_mode = #tpu.pipeline_mode<synchronous>, transform_indices = @transform_2, window_bounds = array<i64: 1, 128>}, {pipeline_mode = #tpu.pipeline_mode<synchronous>, transform_indices = @transform_3, window_bounds = array<i64: 128, 128>}, {pipeline_mode = #tpu.pipeline_mode<synchronous>, transform_indices = @transform_4, window_bounds = array<i64: 1, 128>}, {transform_indices = @transform_5, window_bounds = array<i64: 512, 128>}]} {
    %c0 = arith.constant 0 : index
    %c0_0 = arith.constant 0 : index
    %0 = vector.load %arg1[%c0, %c0_0] : memref<512x384xbf16, #tpu.memory_space<vmem>>, vector<512x384xbf16>
    %c0_1 = arith.constant 0 : index
    %c0_2 = arith.constant 0 : index
    %1 = vector.load %arg2[%c0_1, %c0_2] : memref<384x128xbf16, #tpu.memory_space<vmem>>, vector<384x128xbf16>
    %cst = arith.constant dense<0.000000e+00> : vector<512x128xf32>
    %2 = tpu.matmul %0, %1, %cst {dimension_numbers = #tpu.dot_dimension_numbers<[1], [0], [0], [1], [0, 0, 1, 1], [], []>} : vector<512x384xbf16>, vector<384x128xbf16>, vector<512x128xf32> -> vector<512x128xf32>
    %c0_3 = arith.constant 0 : index
    %c0_4 = arith.constant 0 : index
    %3 = vector.load %arg3[%c0_3, %c0_4] : memref<1x128xf32, #tpu.memory_space<vmem>>, vector<1x128xf32>
    %4 = vector.broadcast %3 : vector<1x128xf32> to vector<512x128xf32>
    %5 = arith.addf %2, %4 : vector<512x128xf32>
    %cst_5 = arith.constant 0.000000e+00 : f32
    %6 = vector.broadcast %cst_5 : f32 to vector<512x128xf32>
    %7 = arith.maximumf %5, %6 : vector<512x128xf32>
    %8 = arith.truncf %7 : vector<512x128xf32> to vector<512x128xbf16>
    %c0_6 = arith.constant 0 : index
    %c0_7 = arith.constant 0 : index
    %9 = vector.load %arg4[%c0_6, %c0_7] : memref<128x128xbf16, #tpu.memory_space<vmem>>, vector<128x128xbf16>
    %cst_8 = arith.constant dense<0.000000e+00> : vector<512x128xf32>
    %10 = tpu.matmul %8, %9, %cst_8 {dimension_numbers = #tpu.dot_dimension_numbers<[1], [0], [0], [1], [0, 0, 1, 1], [], []>} : vector<512x128xbf16>, vector<128x128xbf16>, vector<512x128xf32> -> vector<512x128xf32>
    %c0_9 = arith.constant 0 : index
    %c0_10 = arith.constant 0 : index
    %11 = vector.load %arg5[%c0_9, %c0_10] : memref<1x128xf32, #tpu.memory_space<vmem>>, vector<1x128xf32>
    %12 = vector.broadcast %11 : vector<1x128xf32> to vector<512x128xf32>
    %13 = arith.addf %10, %12 : vector<512x128xf32>
    %c0_11 = arith.constant 0 : index
    %c0_12 = arith.constant 0 : index
    %14 = vector.load %arg6[%c0_11, %c0_12] : memref<512x128xf32, #tpu.memory_space<vmem>>, vector<512x128xf32>
    tpu.vector_store %arg6[%c0_11, %c0_12], %13 {strides = array<i32>} : memref<512x128xf32, #tpu.memory_space<vmem>>, vector<512x128xf32>,
    return
  }
  func.func @transform_0(%arg0: i32) -> (i32, i32) {
    %c0_i32 = arith.constant 0 : i32
    %c0_i32_0 = arith.constant 0 : i32
    return %arg0, %c0_i32 : i32, i32
  }
  func.func @transform_1(%arg0: i32) -> (i32, i32) {
    %c0_i32 = arith.constant 0 : i32
    %c0_i32_0 = arith.constant 0 : i32
    %c0_i32_1 = arith.constant 0 : i32
    return %c0_i32, %c0_i32_0 : i32, i32
  }
  func.func @transform_2(%arg0: i32) -> (i32, i32) {
    %c0_i32 = arith.constant 0 : i32
    %c0_i32_0 = arith.constant 0 : i32
    %c0_i32_1 = arith.constant 0 : i32
    return %c0_i32, %c0_i32_0 : i32, i32
  }
  func.func @transform_3(%arg0: i32) -> (i32, i32) {
    %c0_i32 = arith.constant 0 : i32
    %c0_i32_0 = arith.constant 0 : i32
    %c0_i32_1 = arith.constant 0 : i32
    return %c0_i32, %c0_i32_0 : i32, i32
  }
  func.func @transform_4(%arg0: i32) -> (i32, i32) {
    %c0_i32 = arith.constant 0 : i32
    %c0_i32_0 = arith.constant 0 : i32
    %c0_i32_1 = arith.constant 0 : i32
    return %c0_i32, %c0_i32_0 : i32, i32
  }
  func.func @transform_5(%arg0: i32) -> (i32, i32) {
    %c0_i32 = arith.constant 0 : i32
    %c0_i32_0 = arith.constant 0 : i32
    return %arg0, %c0_i32 : i32, i32
  }
}

</mosaic_0001>

<bundles_post_ra>
// kernel: simple_pose_resnet_forward.4
= control target key start
LH: loop header
LB: loop body
LE: loop exit
PB: predicated region body
PF: predicated region fallthrough
CT: control target
= control target key end

     0   :  { %8 = vsyncpa [#allocation3], 0  ;;  %s699_s0 = inlined_call_operand.vmem [shape: bf16[128,128], index: 0, kind: input, shape index: {}]   ;;  %s700_s1 = inlined_call_operand.hbm [shape: bf16[128,128], index: 1, kind: input, shape index: {}]   ;;  %s701_s2 = inlined_call_operand.hbm [shape: f32[1,128], index: 2, kind: input, shape index: {}]   ;;  %s702_s3 = inlined_call_operand.vmem [shape: bf16[128,128], index: 3, kind: output, shape index: {}]  }
   0x1   :  { %9 = vsyncpa [#allocation5], 0  ;;  %s603_s12 = smov [#allocation2]   ;;  %s555_s16 = scalar_lea.hbm %s700_s1, 1024 }
   0x2   :  { %s17_s13 = sshll.u32 %s603_s12, 4  ;;  %p556_p0 = scmp.ne.s32.totalorder %s700_s1, %s555_s16  ;;  %s18_s13 = int_to_ptr.vmem [resolvable:$true] %s17_s13 }
   0x3   :  { %p559_p1 = scmp.lt.u32.totalorder %s555_s16, %s700_s1 }
   0x5   :  { %p561_p2 = pnand %p559_p1, %p556_p0 }
   0x7   :  { %564 = shalt.err (!%p561_p2)
}
   0x8   :  { %s565_s21 = scalar_lea.vmem %s18_s13, 1024  ;;  %p570_p4 = scmp.lt.s32.totalorder %s18_s13, %s18_s13 }
   0x9   :  { %p566_p3 = scmp.ne.s32.totalorder %s18_s13, %s565_s21  ;;  %p571_p5 = scmp.lt.s32.totalorder %s565_s21, %s565_s21 }
   0xb   :  { %p572_p6 = por %p571_p5, %p570_p4 }
   0xd   :  { %p573_p7 = pnand %p572_p6, %p566_p3 }
   0xf   :  { %576 = shalt.err (!%p573_p7)
}
  0x10   :  { %s604_s22 = smov 64   ;;  %s605_s23 = smov 4  }
  0x11   :  { %23 = dma.hbm_to_vmem [thread:$0]  %s700_s1, 1024, %s18_s13, [#allocation3], %s604_s22, %s604_s22, %s605_s23  }
  0x12   :  { %s606_s26 = smov [#allocation4]   ;;  %s577_s30 = scalar_lea.hbm %s701_s2, 16 }
  0x13   :  { %s30_s27 = sshll.u32 %s606_s26, 4  ;;  %p578_p8 = scmp.ne.s32.totalorder %s701_s2, %s577_s30  ;;  %s31_s27 = int_to_ptr.vmem [resolvable:$true] %s30_s27 }
  0x14   :  { %p581_p9 = scmp.lt.u32.totalorder %s577_s30, %s701_s2 }
  0x16   :  { %p583_p10 = pnand %p581_p9, %p578_p8 }
  0x18   :  { %586 = shalt.err (!%p583_p10)
}
  0x19   :  { %s587_s8 = scalar_lea.vmem %s31_s27, 16  ;;  %s591_s1 = scalar_lea.vmem %s31_s27, 32 }
  0x1a   :  { %p588_p11 = scmp.ne.s32.totalorder %s31_s27, %s587_s8  ;;  %p592_p12 = scmp.lt.s32.totalorder %s31_s27, %s31_s27 }
  0x1b   :  { %p593_p13 = scmp.lt.s32.totalorder %s591_s1, %s587_s8 }
  0x1d   :  { %p594_p0 = por %p593_p13, %p592_p12 }
  0x1f   :  { %p595_p1 = pnand %p594_p0, %p588_p11 }
  0x21   :  { %598 = shalt.err (!%p595_p1)
}
  0x22   :  { %33 = dma.hbm_to_vmem [thread:$0]  %s701_s2, 16, %s31_s27, [#allocation5]  }
  0x23   :  { %599 = dma.done.wait [#allocation3], 1024  }
  0x24   :  { %600 = vsyncadd [#allocation3], 4294966272 }
  0x25   :  { %601 = dma.done.wait [#allocation5], 16  }
  0x26   :  { %602 = vsyncadd [#allocation5], 4294967280  ;;  %v539_v0 = vld [vmem:[#allocation2] sm:$0xff]   ;;  %v540_v1 = vld [vmem:[#allocation2 + $0x8] sm:$0xff]  }
  0x27   :  { %487 = vmatprep.subr.bf16.mxu0 %v539_v0  ;;  %519 = vmatprep.subr.bf16.mxu1 %v539_v0  ;;  %v541_v2 = vld [vmem:[#allocation2 + $0x10] sm:$0xff]   ;;  %v542_v3 = vld [vmem:[#allocation2 + $0x18] sm:$0xff]   ;;  %v547_v4 = vld [vmem:[%s699_s0] sm:$0xff]  }
  0x28   :  { %488 = vmatpush3.bf16.msra.mxu0 %v539_v0  ;;  %527 = vmatpush3.bf16.msra.mxu1 %v539_v0  ;;  %v548_v5 = vld [vmem:[%s699_s0 + $0x20] sm:$0xff]   ;;  %v544_v7 = vld [vmem:[#allocation2 + $0x28] sm:$0xff]   ;;  %v545_v8 = vld [vmem:[#allocation2 + $0x30] sm:$0xff]  }
  0x29   :  { %489 = vmatprep.subr.bf16.mxu0 %v540_v1  ;;  %520 = vmatprep.subr.bf16.mxu1 %v540_v1  ;;  %v543_v6 = vld [vmem:[#allocation2 + $0x20] sm:$0xff]   ;;  %v546_v9 = vld [vmem:[#allocation2 + $0x38] sm:$0xff]   ;;  %v549_v10 = vld [vmem:[%s699_s0 + $0x8] sm:$0xff]  }
  0x2a   :  { %503 = vmatprep.mubr.bf16.mxu0 %v547_v4  ;;  %511 = vmatprep.mubr.bf16.mxu1 %v548_v5  ;;  %v550_v11 = vld [vmem:[%s699_s0 + $0x28] sm:$0xff]   ;;  %v551_v12 = vld [vmem:[%s699_s0 + $0x10] sm:$0xff]   ;;  %v553_v14 = vld [vmem:[%s699_s0 + $0x18] sm:$0xff]  }
  0x2b   :  { %v552_v13 = vld [vmem:[%s699_s0 + $0x30] sm:$0xff]   ;;  %v554_v15 = vld [vmem:[%s699_s0 + $0x38] sm:$0xff]   ;;  %v375_v16 = vld [vmem:[#allocation4] ss:$0 sm:$0xff] }
  0x2c   :  { %490 = vmatpush3.bf16.msra.mxu0 %v540_v1  ;;  %528 = vmatpush3.bf16.msra.mxu1 %v540_v1 }
  0x2d   :  { %491 = vmatprep.subr.bf16.mxu0 %v541_v2  ;;  %521 = vmatprep.subr.bf16.mxu1 %v541_v2 }
  0x30   :  { %492 = vmatpush3.bf16.msra.mxu0 %v541_v2  ;;  %529 = vmatpush3.bf16.msra.mxu1 %v541_v2 }
  0x31   :  { %493 = vmatprep.subr.bf16.mxu0 %v542_v3  ;;  %522 = vmatprep.subr.bf16.mxu1 %v542_v3 }
  0x34   :  { %494 = vmatpush3.bf16.msra.mxu0 %v542_v3  ;;  %530 = vmatpush3.bf16.msra.mxu1 %v542_v3 }
  0x35   :  { %495 = vmatprep.subr.bf16.mxu0 %v543_v6  ;;  %523 = vmatprep.subr.bf16.mxu1 %v543_v6 }
  0x38   :  { %496 = vmatpush3.bf16.msra.mxu0 %v543_v6  ;;  %531 = vmatpush3.bf16.msra.mxu1 %v543_v6 }
  0x39   :  { %497 = vmatprep.subr.bf16.mxu0 %v544_v7  ;;  %524 = vmatprep.subr.bf16.mxu1 %v544_v7 }
  0x3c   :  { %498 = vmatpush3.bf16.msra.mxu0 %v544_v7  ;;  %532 = vmatpush3.bf16.msra.mxu1 %v544_v7 }
  0x3d   :  { %499 = vmatprep.subr.bf16.mxu0 %v545_v8  ;;  %525 = vmatprep.subr.bf16.mxu1 %v545_v8 }
  0x40   :  { %500 = vmatpush3.bf16.msra.mxu0 %v545_v8  ;;  %533 = vmatpush3.bf16.msra.mxu1 %v545_v8 }
  0x41   :  { %501 = vmatprep.subr.bf16.mxu0 %v546_v9  ;;  %526 = vmatprep.subr.bf16.mxu1 %v546_v9 }
  0x44   :  { %502 = vmatpush3.bf16.msra.mxu0 %v546_v9  ;;  %534 = vmatpush3.bf16.msra.mxu1 %v546_v9 }
  0x47   :  { %504 = vmatmul.mubr.bf16.vlgmr.msra.gmra.mrb[0].mxu0 %v549_v10  ;;  %512 = vmatmul.mubr.bf16.vlgmr.msra.gmra.mrb[0].mxu1 %v550_v11 }
  0x48   :  { %507 = vmatprep.mubr.bf16.mxu0 %v551_v12  ;;  %515 = vmatprep.mubr.bf16.mxu1 %v552_v13 }
  0x4f   :  { %508 = vmatmul.mubr.bf16.gmra.mrb[4].mxu0 %v553_v14  ;;  %516 = vmatmul.mubr.bf16.gmra.mrb[4].mxu1 %v554_v15 }
 0x11a   :  { %v505_v17 = vpop.f32.mrb[0].mxu0  ;;  %v513_v18 = vpop.f32.mrb[0].mxu1 }
 0x11b   :  { %v219_v19 = vadd.f32 %v505_v17, %v375_v16  ;;  %v251_v20 = vadd.f32 %v513_v18, %v375_v16  ;;  %v210_v21 = vpop.f32.mrb[1].mxu0  ;;  %v242_v22 = vpop.f32.mrb[1].mxu1 }
 0x11c   :  { %v211_v23 = vadd.f32 %v375_v16, %v210_v21  ;;  %v243_v24 = vadd.f32 %v375_v16, %v242_v22  ;;  %v506_v25 = vpop.f32.mrb[2].mxu0  ;;  %v514_v26 = vpop.f32.mrb[2].mxu1 }
 0x11d   :  { %v222_v27 = vadd.f32 %v506_v25, %v375_v16  ;;  %v254_v28 = vadd.f32 %v514_v26, %v375_v16  ;;  %v213_v29 = vpop.f32.mrb[3].mxu0  ;;  %v245_v30 = vpop.f32.mrb[3].mxu1  ;;  %v275_v33 = vmax.f32 %v219_v19, 0.0  ;;  %v283_v34 = vmax.f32 %v251_v20, 0.0 }
 0x11e   :  { %v214_v31 = vadd.f32 %v375_v16, %v213_v29  ;;  %v246_v32 = vadd.f32 %v375_v16, %v245_v30  ;;  %v273_v37 = vmax.f32 %v211_v23, 0.0  ;;  %v281_v38 = vmax.f32 %v243_v24, 0.0 }
 0x11f   :  { %v276_v35 = vmax.f32 %v222_v27, 0.0  ;;  %v284_v36 = vmax.f32 %v254_v28, 0.0 }
 0x120   :  { %v274_v39 = vmax.f32 %v214_v31, 0.0  ;;  %v282_v40 = vmax.f32 %v246_v32, 0.0 }
 0x121   :  { %v432_v41 = vpack.c.bf16 %v276_v35, %v275_v33  ;;  %v452_v42 = vpack.c.bf16 %v284_v36, %v283_v34 }
 0x122   :  { %v427_v43 = vpack.c.bf16 %v274_v39, %v273_v37  ;;  %v447_v44 = vpack.c.bf16 %v282_v40, %v281_v38  ;;  %v509_v45 = vpop.f32.mrb[4].mxu0  ;;  %v517_v46 = vpop.f32.mrb[4].mxu1 }
 0x123   :  { %464 = vst [vmem:[%s702_s3 + $0x8] sm:$0xff] %v432_v41   ;;  %468 = vst [vmem:[%s702_s3 + $0x28] sm:$0xff] %v452_v42   ;;  %v235_v47 = vadd.f32 %v509_v45, %v375_v16  ;;  %v267_v48 = vadd.f32 %v517_v46, %v375_v16  ;;  %v226_v49 = vpop.f32.mrb[5].mxu0  ;;  %v258_v50 = vpop.f32.mrb[5].mxu1 }
 0x124   :  { %428 = vst [vmem:[%s702_s3] sm:$0xff] %v427_v43   ;;  %467 = vst [vmem:[%s702_s3 + $0x20] sm:$0xff] %v447_v44   ;;  %v227_v51 = vadd.f32 %v375_v16, %v226_v49  ;;  %v259_v52 = vadd.f32 %v375_v16, %v258_v50  ;;  %v510_v53 = vpop.f32.mrb[6].mxu0  ;;  %v518_v54 = vpop.f32.mrb[6].mxu1 }
 0x125   :  { %v238_v55 = vadd.f32 %v510_v53, %v375_v16  ;;  %v270_v56 = vadd.f32 %v518_v54, %v375_v16  ;;  %v229_v57 = vpop.f32.mrb[7].mxu0  ;;  %v261_v58 = vpop.f32.mrb[7].mxu1  ;;  %v279_v61 = vmax.f32 %v235_v47, 0.0  ;;  %v287_v62 = vmax.f32 %v267_v48, 0.0 }
 0x126   :  { %v230_v59 = vadd.f32 %v375_v16, %v229_v57  ;;  %v262_v60 = vadd.f32 %v375_v16, %v261_v58  ;;  %v277_v1 = vmax.f32 %v227_v51, 0.0  ;;  %v285_v2 = vmax.f32 %v259_v52, 0.0 }
 0x127   :  { %v280_v63 = vmax.f32 %v238_v55, 0.0  ;;  %v288_v0 = vmax.f32 %v270_v56, 0.0 }
 0x128   :  { %v278_v3 = vmax.f32 %v230_v59, 0.0  ;;  %v286_v4 = vmax.f32 %v262_v60, 0.0 }
 0x129   :  { %v442_v5 = vpack.c.bf16 %v280_v63, %v279_v61  ;;  %v462_v6 = vpack.c.bf16 %v288_v0, %v287_v62 }
 0x12a   :  { %v437_v7 = vpack.c.bf16 %v278_v3, %v277_v1  ;;  %v457_v8 = vpack.c.bf16 %v286_v4, %v285_v2 }
 0x12b   :  { %466 = vst [vmem:[%s702_s3 + $0x18] sm:$0xff] %v442_v5   ;;  %470 = vst [vmem:[%s702_s3 + $0x38] sm:$0xff] %v462_v6  }
 0x12c   :  { %465 = vst [vmem:[%s702_s3 + $0x10] sm:$0xff] %v437_v7   ;;  %469 = vst [vmem:[%s702_s3 + $0x30] sm:$0xff] %v457_v8  }
 0x12d   :  { %373 = vsyncpa [#allocation3], 1 }
 0x12e   :  { %374 = vsyncpa [#allocation5], 1 }

// kernel: simple_pose_resnet_forward.5
= control target key start
LH: loop header
LB: loop body
LE: loop exit
PB: predicated region body
PF: predicated region fallthrough
CT: control target
= control target key end

     0   :  { %s1772_s1 = inlined_call_operand.vmem [shape: bf16[640,128], index: 1, kind: input, shape index: {}]   ;;  %s1773_s0 = inlined_call_operand.vmem [shape: bf16[128,640], index: 0, kind: input, shape index: {}]   ;;  %s1774_s2 = inlined_call_operand.vmem [shape: f32[1,128], index: 2, kind: input, shape index: {}]   ;;  %s1775_s3 = inlined_call_operand.vmem [shape: bf16[128,128], index: 3, kind: output, shape index: {}]  }
   0x1   :  { %v1341_v0 = vld [vmem:[%s1772_s1 + $0x40] sm:$0xff]   ;;  %v1345_v4 = vld [vmem:[%s1772_s1 + $0x48] sm:$0xff]   ;;  %v1349_v8 = vld [vmem:[%s1772_s1 + $0x50] sm:$0xff]  }
   0x2   :  { %v1342_v1 = vld [vmem:[%s1772_s1 + $0xc0] sm:$0xff]   ;;  %1149 = vmatprep.subr.bf16.mxu0 %v1341_v0  ;;  %v1346_v5 = vld [vmem:[%s1772_s1 + $0xc8] sm:$0xff]   ;;  %v1350_v9 = vld [vmem:[%s1772_s1 + $0xd0] sm:$0xff]  }
   0x3   :  { %v1343_v2 = vld [vmem:[%s1772_s1] sm:$0xff]   ;;  %1213 = vmatprep.subr.bf16.mxu1 %v1342_v1  ;;  %v1347_v6 = vld [vmem:[%s1772_s1 + $0x8] sm:$0xff]   ;;  %v1351_v10 = vld [vmem:[%s1772_s1 + $0x10] sm:$0xff]  }
   0x4   :  { %v1344_v3 = vld [vmem:[%s1772_s1 + $0x80] sm:$0xff]   ;;  %1150 = vmatpush3.bf16.msra.mxu0 %v1343_v2  ;;  %v1348_v7 = vld [vmem:[%s1772_s1 + $0x88] sm:$0xff]   ;;  %v1352_v11 = vld [vmem:[%s1772_s1 + $0x90] sm:$0xff]  }
   0x5   :  { %1214 = vmatpush3.bf16.msra.mxu1 %v1344_v3  ;;  %1151 = vmatprep.subr.bf16.mxu0 %v1345_v4  ;;  %v1353_v12 = vld [vmem:[%s1772_s1 + $0x58] sm:$0xff]   ;;  %v1357_v16 = vld [vmem:[%s1772_s1 + $0x60] sm:$0xff]   ;;  %v1361_v20 = vld [vmem:[%s1772_s1 + $0x68] sm:$0xff]  }
   0x6   :  { %1215 = vmatprep.subr.bf16.mxu1 %v1346_v5  ;;  %v1354_v13 = vld [vmem:[%s1772_s1 + $0xd8] sm:$0xff]   ;;  %v1358_v17 = vld [vmem:[%s1772_s1 + $0xe0] sm:$0xff]   ;;  %v1362_v21 = vld [vmem:[%s1772_s1 + $0xe8] sm:$0xff]  }
   0x7   :  { %v1355_v14 = vld [vmem:[%s1772_s1 + $0x18] sm:$0xff]   ;;  %v1359_v18 = vld [vmem:[%s1772_s1 + $0x20] sm:$0xff]   ;;  %v1363_v22 = vld [vmem:[%s1772_s1 + $0x28] sm:$0xff]  }
   0x8   :  { %1152 = vmatpush3.bf16.msra.mxu0 %v1347_v6  ;;  %v1356_v15 = vld [vmem:[%s1772_s1 + $0x98] sm:$0xff]   ;;  %v1360_v19 = vld [vmem:[%s1772_s1 + $0xa0] sm:$0xff]   ;;  %v1364_v23 = vld [vmem:[%s1772_s1 + $0xa8] sm:$0xff]  }
   0x9   :  { %1216 = vmatpush3.bf16.msra.mxu1 %v1348_v7  ;;  %1153 = vmatprep.subr.bf16.mxu0 %v1349_v8  ;;  %v1365_v24 = vld [vmem:[%s1772_s1 + $0x70] sm:$0xff]   ;;  %v1369_v28 = vld [vmem:[%s1772_s1 + $0x78] sm:$0xff]   ;;  %v1378_v35 = vld [vmem:[%s1773_s0 + $0xc] ss:$20 sps:$4 sm:$0xff]  }
   0xa   :  { %1217 = vmatprep.subr.bf16.mxu1 %v1350_v9  ;;  %v1366_v25 = vld [vmem:[%s1772_s1 + $0xf0] sm:$0xff]   ;;  %v1370_v29 = vld [vmem:[%s1772_s1 + $0xf8] sm:$0xff]   ;;  %v1379_v36 = vld [vmem:[%s1772_s1 + $0x100] sm:$0xff]   ;;  %727 = vmatprep.mubr.bf16.mxu1 %v1378_v35 }
   0xb   :  { %v1367_v26 = vld [vmem:[%s1772_s1 + $0x30] sm:$0xff]   ;;  %v1371_v30 = vld [vmem:[%s1772_s1 + $0x38] sm:$0xff]   ;;  %v1380_v37 = vld [vmem:[%s1773_s0 + $0x2c] ss:$20 sps:$4 sm:$0xff]  }
   0xc   :  { %1154 = vmatpush3.bf16.msra.mxu0 %v1351_v10  ;;  %v1368_v27 = vld [vmem:[%s1772_s1 + $0xb0] sm:$0xff]   ;;  %v1372_v31 = vld [vmem:[%s1772_s1 + $0xb8] sm:$0xff]   ;;  %v1386_v39 = vld [vmem:[%s1772_s1 + $0x108] sm:$0xff]  }
   0xd   :  { %1218 = vmatpush3.bf16.msra.mxu1 %v1352_v11  ;;  %1155 = vmatprep.subr.bf16.mxu0 %v1353_v12  ;;  %v1373_v32 = vld [vmem:[%s1773_s0] ss:$20 sps:$4 sm:$0xff]   ;;  %v1375_v33 = vld [vmem:[%s1773_s0 + $0x4] ss:$20 sps:$4 sm:$0xff]   ;;  %v1376_v34 = vld [vmem:[%s1773_s0 + $0x8] ss:$20 sps:$4 sm:$0xff]  }
   0xe   :  { %1219 = vmatprep.subr.bf16.mxu1 %v1354_v13  ;;  %630 = vmatprep.mubr.bf16.mxu0 %v1375_v33  ;;  %v1382_v38 = vld [vmem:[%s1773_s0 + $0x34] ss:$20 sps:$4 sm:$0xff]   ;;  %v1385_v41 = vld [vmem:[%s1773_s0 + $0x30] ss:$20 sps:$4 sm:$0xff]   ;;  %v1400_v45 = vld [vmem:[%s1772_s1 + $0x118] sm:$0xff]  }
   0xf   :  { %v1384_v40 = vld [vmem:[%s1773_s0 + $0x28] ss:$20 sps:$4 sm:$0xff]   ;;  %v1393_v44 = vld [vmem:[%s1772_s1 + $0x110] sm:$0xff]   ;;  %v1392_v47 = vld [vmem:[%s1773_s0 + $0x58] ss:$20 sps:$4 sm:$0xff]  }
  0x10   :  { %1156 = vmatpush3.bf16.msra.mxu0 %v1355_v14  ;;  %v1387_v42 = vld [vmem:[%s1773_s0 + $0x54] ss:$20 sps:$4 sm:$0xff]   ;;  %v1389_v43 = vld [vmem:[%s1773_s0 + $0x5c] ss:$20 sps:$4 sm:$0xff]   ;;  %v1396_v49 = vld [vmem:[%s1773_s0 + $0x84] ss:$20 sps:$4 sm:$0xff]  }
  0x11   :  { %1220 = vmatpush3.bf16.msra.mxu1 %v1356_v15  ;;  %1157 = vmatprep.subr.bf16.mxu0 %v1357_v16  ;;  %v1391_v46 = vld [vmem:[%s1773_s0 + $0x50] ss:$20 sps:$4 sm:$0xff]   ;;  %v1414_v51 = vld [vmem:[%s1772_s1 + $0x128] sm:$0xff]   ;;  %v1399_v53 = vld [vmem:[%s1773_s0 + $0x80] ss:$20 sps:$4 sm:$0xff]  }
  0x12   :  { %1221 = vmatprep.subr.bf16.mxu1 %v1358_v17  ;;  %v1394_v48 = vld [vmem:[%s1773_s0 + $0x7c] ss:$20 sps:$4 sm:$0xff]   ;;  %v1407_v50 = vld [vmem:[%s1772_s1 + $0x120] sm:$0xff]   ;;  %v1398_v52 = vld [vmem:[%s1773_s0 + $0x78] ss:$20 sps:$4 sm:$0xff]  }
  0x13   :  { %v1401_v54 = vld [vmem:[%s1773_s0 + $0xa4] ss:$20 sps:$4 sm:$0xff]   ;;  %v1421_v55 = vld [vmem:[%s1772_s1 + $0x130] sm:$0xff]   ;;  %v1403_v56 = vld [vmem:[%s1773_s0 + $0xac] ss:$20 sps:$4 sm:$0xff]  }
  0x14   :  { %1158 = vmatpush3.bf16.msra.mxu0 %v1359_v18  ;;  %v1428_v57 = vld [vmem:[%s1772_s1 + $0x138] sm:$0xff]   ;;  %v1405_v58 = vld [vmem:[%s1773_s0 + $0xa0] ss:$20 sps:$4 sm:$0xff]   ;;  %v1413_v63 = vld [vmem:[%s1773_s0 + $0xd0] ss:$20 sps:$4 sm:$0xff]  }
  0x15   :  { %1222 = vmatpush3.bf16.msra.mxu1 %v1360_v19  ;;  %1159 = vmatprep.subr.bf16.mxu0 %v1361_v20  ;;  %v1406_v59 = vld [vmem:[%s1773_s0 + $0xa8] ss:$20 sps:$4 sm:$0xff]   ;;  %v1408_v60 = vld [vmem:[%s1773_s0 + $0xcc] ss:$20 sps:$4 sm:$0xff]   ;;  %v1419_v2 = vld [vmem:[%s1773_s0 + $0xf0] ss:$20 sps:$4 sm:$0xff]  }
  0x16   :  { %1223 = vmatprep.subr.bf16.mxu1 %v1362_v21  ;;  %v1410_v61 = vld [vmem:[%s1773_s0 + $0xd4] ss:$20 sps:$4 sm:$0xff]   ;;  %v1417_v1 = vld [vmem:[%s1773_s0 + $0xfc] ss:$20 sps:$4 sm:$0xff]   ;;  %v1420_v3 = vld [vmem:[%s1773_s0 + $0xf8] ss:$20 sps:$4 sm:$0xff]  }
  0x17   :  { %v1412_v62 = vld [vmem:[%s1773_s0 + $0xc8] ss:$20 sps:$4 sm:$0xff]   ;;  %v1424_v5 = vld [vmem:[%s1773_s0 + $0x124] ss:$20 sps:$4 sm:$0xff]   ;;  %v1427_v7 = vld [vmem:[%s1773_s0 + $0x120] ss:$20 sps:$4 sm:$0xff]  }
  0x18   :  { %1160 = vmatpush3.bf16.msra.mxu0 %v1363_v22  ;;  %v1415_v0 = vld [vmem:[%s1773_s0 + $0xf4] ss:$20 sps:$4 sm:$0xff]   ;;  %v1422_v4 = vld [vmem:[%s1773_s0 + $0x11c] ss:$20 sps:$4 sm:$0xff]   ;;  %v1426_v6 = vld [vmem:[%s1773_s0 + $0x118] ss:$20 sps:$4 sm:$0xff]  }
  0x19   :  { %1224 = vmatpush3.bf16.msra.mxu1 %v1364_v23  ;;  %1161 = vmatprep.subr.bf16.mxu0 %v1365_v24  ;;  %v1429_v8 = vld [vmem:[%s1773_s0 + $0x10] ss:$20 sps:$4 sm:$0xff]   ;;  %v1431_v10 = vld [vmem:[%s1773_s0 + $0x38] ss:$20 sps:$4 sm:$0xff]   ;;  %v1433_v12 = vld [vmem:[%s1773_s0 + $0x60] ss:$20 sps:$4 sm:$0xff]  }
  0x1a   :  { %1225 = vmatprep.subr.bf16.mxu1 %v1366_v25  ;;  %v1430_v9 = vld [vmem:[%s1773_s0 + $0xb0] ss:$20 sps:$4 sm:$0xff]   ;;  %v1432_v11 = vld [vmem:[%s1773_s0 + $0xd8] ss:$20 sps:$4 sm:$0xff]   ;;  %v1434_v13 = vld [vmem:[%s1773_s0 + $0x100] ss:$20 sps:$4 sm:$0xff]  }
  0x1b   :  { %v1435_v14 = vld [vmem:[%s1773_s0 + $0x88] ss:$20 sps:$4 sm:$0xff]   ;;  %v1700_v18 = vld [vmem:[%s1774_s2] ss:$0 sm:$0xff] }
  0x1c   :  { %1162 = vmatpush3.bf16.msra.mxu0 %v1367_v26  ;;  %v1436_v15 = vld [vmem:[%s1773_s0 + $0x128] ss:$20 sps:$4 sm:$0xff]  }
  0x1d   :  { %1226 = vmatpush3.bf16.msra.mxu1 %v1368_v27  ;;  %1163 = vmatprep.subr.bf16.mxu0 %v1369_v28 }
  0x1e   :  { %1227 = vmatprep.subr.bf16.mxu1 %v1370_v29 }
  0x20   :  { %1164 = vmatpush3.bf16.msra.mxu0 %v1371_v30 }
  0x21   :  { %1228 = vmatpush3.bf16.msra.mxu1 %v1372_v31  ;;  %1293 = vmatprep.subr.bf16.mxu0 %v1379_v36 }
  0x22   :  { %1325 = vmatprep.subr.bf16.mxu1 %v1379_v36 }
  0x23   :  { %631 = vmatmul.mubr.bf16.vlgmr.msra.gmra.mrb[0].mxu0 %v1373_v32 }
  0x24   :  { %728 = vmatmul.mubr.bf16.vlgmr.msra.gmra.mrb[0].mxu1 %v1376_v34  ;;  %1294 = vmatpush3.bf16.msra.mxu0 %v1379_v36 }
  0x25   :  { %1333 = vmatpush3.bf16.msra.mxu1 %v1379_v36  ;;  %638 = vmatprep.mubr.bf16.mxu0 %v1380_v37 }
  0x26   :  { %735 = vmatprep.mubr.bf16.mxu1 %v1382_v38  ;;  %1295 = vmatprep.subr.bf16.mxu0 %v1386_v39 }
  0x27   :  { %1326 = vmatprep.subr.bf16.mxu1 %v1386_v39 }
  0x28   :  { %1296 = vmatpush3.bf16.msra.mxu0 %v1386_v39 }
  0x29   :  { %1334 = vmatpush3.bf16.msra.mxu1 %v1386_v39  ;;  %1297 = vmatprep.subr.bf16.mxu0 %v1393_v44 }
  0x2a   :  { %1327 = vmatprep.subr.bf16.mxu1 %v1393_v44 }
  0x2b   :  { %639 = vmatmul.mubr.bf16.gmra.mrb[4].mxu0 %v1384_v40 }
  0x2c   :  { %736 = vmatmul.mubr.bf16.gmra.mrb[4].mxu1 %v1385_v41  ;;  %646 = vmatprep.mubr.bf16.mxu0 %v1387_v42 }
  0x2d   :  { %743 = vmatprep.mubr.bf16.mxu1 %v1389_v43  ;;  %1298 = vmatpush3.bf16.msra.mxu0 %v1393_v44 }
  0x2e   :  { %1335 = vmatpush3.bf16.msra.mxu1 %v1393_v44  ;;  %1299 = vmatprep.subr.bf16.mxu0 %v1400_v45 }
  0x2f   :  { %1328 = vmatprep.subr.bf16.mxu1 %v1400_v45 }
  0x31   :  { %1300 = vmatpush3.bf16.msra.mxu0 %v1400_v45 }
  0x32   :  { %1336 = vmatpush3.bf16.msra.mxu1 %v1400_v45  ;;  %1301 = vmatprep.subr.bf16.mxu0 %v1407_v50 }
  0x33   :  { %647 = vmatmul.mubr.bf16.gmra.mrb[8].mxu0 %v1391_v46  ;;  %1329 = vmatprep.subr.bf16.mxu1 %v1407_v50 }
  0x34   :  { %744 = vmatmul.mubr.bf16.gmra.mrb[8].mxu1 %v1392_v47  ;;  %654 = vmatprep.mubr.bf16.mxu0 %v1394_v48 }
  0x35   :  { %751 = vmatprep.mubr.bf16.mxu1 %v1396_v49  ;;  %1302 = vmatpush3.bf16.msra.mxu0 %v1407_v50 }
  0x36   :  { %1337 = vmatpush3.bf16.msra.mxu1 %v1407_v50  ;;  %1303 = vmatprep.subr.bf16.mxu0 %v1414_v51 }
  0x37   :  { %1330 = vmatprep.subr.bf16.mxu1 %v1414_v51 }
  0x39   :  { %1304 = vmatpush3.bf16.msra.mxu0 %v1414_v51 }
  0x3a   :  { %1338 = vmatpush3.bf16.msra.mxu1 %v1414_v51  ;;  %1305 = vmatprep.subr.bf16.mxu0 %v1421_v55 }
  0x3b   :  { %655 = vmatmul.mubr.bf16.gmra.mrb[12].mxu0 %v1398_v52  ;;  %1331 = vmatprep.subr.bf16.mxu1 %v1421_v55 }
  0x3c   :  { %752 = vmatmul.mubr.bf16.gmra.mrb[12].mxu1 %v1399_v53  ;;  %662 = vmatprep.mubr.bf16.mxu0 %v1401_v54 }
  0x3d   :  { %759 = vmatprep.mubr.bf16.mxu1 %v1403_v56  ;;  %1306 = vmatpush3.bf16.msra.mxu0 %v1421_v55 }
  0x3e   :  { %1339 = vmatpush3.bf16.msra.mxu1 %v1421_v55  ;;  %1307 = vmatprep.subr.bf16.mxu0 %v1428_v57 }
  0x3f   :  { %1332 = vmatprep.subr.bf16.mxu1 %v1428_v57 }
  0x41   :  { %1308 = vmatpush3.bf16.msra.mxu0 %v1428_v57 }
  0x42   :  { %1340 = vmatpush3.bf16.msra.mxu1 %v1428_v57 }
  0x43   :  { %663 = vmatmul.mubr.bf16.gmra.mrb[16].mxu0 %v1405_v58 }
  0x44   :  { %760 = vmatmul.mubr.bf16.gmra.mrb[16].mxu1 %v1406_v59  ;;  %670 = vmatprep.mubr.bf16.mxu0 %v1408_v60 }
  0x45   :  { %767 = vmatprep.mubr.bf16.mxu1 %v1410_v61 }
  0x4b   :  { %671 = vmatmul.mubr.bf16.gmra.mrb[20].mxu0 %v1412_v62 }
  0x4c   :  { %768 = vmatmul.mubr.bf16.gmra.mrb[20].mxu1 %v1413_v63  ;;  %678 = vmatprep.mubr.bf16.mxu0 %v1415_v0 }
  0x4d   :  { %775 = vmatprep.mubr.bf16.mxu1 %v1417_v1 }
  0x53   :  { %679 = vmatmul.mubr.bf16.gmra.mrb[24].mxu0 %v1419_v2 }
  0x54   :  { %776 = vmatmul.mubr.bf16.gmra.mrb[24].mxu1 %v1420_v3  ;;  %686 = vmatprep.mubr.bf16.mxu0 %v1422_v4 }
  0x55   :  { %783 = vmatprep.mubr.bf16.mxu1 %v1424_v5 }
  0x5b   :  { %687 = vmatmul.mubr.bf16.gmra.mrb[28].mxu0 %v1426_v6 }
  0x5c   :  { %784 = vmatmul.mubr.bf16.gmra.mrb[28].mxu1 %v1427_v7  ;;  %1309 = vmatprep.mubr.bf16.mxu0 %v1429_v8 }
  0x5d   :  { %1317 = vmatprep.mubr.bf16.mxu1 %v1430_v9 }
  0x63   :  { %1310 = vmatmul.mubr.bf16.vlgmr.msra.gmra.mrb[32].mxu0 %v1431_v10 }
  0x64   :  { %1318 = vmatmul.mubr.bf16.vlgmr.msra.gmra.mrb[32].mxu1 %v1432_v11  ;;  %1313 = vmatprep.mubr.bf16.mxu0 %v1433_v12 }
  0x65   :  { %1321 = vmatprep.mubr.bf16.mxu1 %v1434_v13 }
  0x6b   :  { %1314 = vmatmul.mubr.bf16.gmra.mrb[36].mxu0 %v1435_v14 }
  0x6c   :  { %1322 = vmatmul.mubr.bf16.gmra.mrb[36].mxu1 %v1436_v15 }
  0xf6   :  { %v1165_v16 = vpop.f32.mrb[0].mxu0 }
  0xf7   :  { %v1229_v17 = vpop.f32.mrb[0].mxu1  ;;  %v1166_v19 = vpop.f32.mrb[1].mxu0 }
  0xf8   :  { %v1167_v20 = vadd.f32 %v1166_v19, %v1165_v16  ;;  %v1230_v21 = vpop.f32.mrb[1].mxu1  ;;  %v1168_v22 = vpop.f32.mrb[2].mxu0 }
  0xf9   :  { %v1231_v23 = vadd.f32 %v1230_v21, %v1229_v17  ;;  %v1232_v24 = vpop.f32.mrb[2].mxu1  ;;  %v1169_v25 = vpop.f32.mrb[3].mxu0 }
  0xfa   :  { %v633_v26 = vadd.f32 %v1167_v20, %v1700_v18  ;;  %v1170_v27 = vadd.f32 %v1169_v25, %v1168_v22  ;;  %v1233_v28 = vpop.f32.mrb[3].mxu1 }
  0xfb   :  { %v1234_v29 = vadd.f32 %v1233_v28, %v1232_v24 }
  0xfc   :  { %v636_v30 = vadd.f32 %v1170_v27, %v1700_v18  ;;  %v1704_v31 = vadd.f32 %v1231_v23, %v633_v26 }
  0xfe   :  { %v1171_v32 = vpop.f32.mrb[4].mxu0  ;;  %v1706_v33 = vadd.f32 %v1234_v29, %v636_v30 }
  0xff   :  { %v1235_v34 = vpop.f32.mrb[4].mxu1  ;;  %v1172_v35 = vpop.f32.mrb[5].mxu0 }
 0x100   :  { %v1173_v36 = vadd.f32 %v1172_v35, %v1171_v32  ;;  %v1236_v37 = vpop.f32.mrb[5].mxu1  ;;  %v1174_v38 = vpop.f32.mrb[6].mxu0 }
 0x101   :  { %v1237_v39 = vadd.f32 %v1236_v37, %v1235_v34  ;;  %v1238_v40 = vpop.f32.mrb[6].mxu1  ;;  %v1175_v41 = vpop.f32.mrb[7].mxu0 }
 0x102   :  { %v641_v42 = vadd.f32 %v1173_v36, %v1700_v18  ;;  %v1176_v43 = vadd.f32 %v1175_v41, %v1174_v38  ;;  %v1239_v44 = vpop.f32.mrb[7].mxu1 }
 0x103   :  { %v1240_v45 = vadd.f32 %v1239_v44, %v1238_v40 }
 0x104   :  { %v644_v46 = vadd.f32 %v1176_v43, %v1700_v18  ;;  %v1710_v47 = vadd.f32 %v1237_v39, %v641_v42 }
 0x106   :  { %v1177_v48 = vpop.f32.mrb[8].mxu0  ;;  %v1712_v49 = vadd.f32 %v1240_v45, %v644_v46 }
 0x107   :  { %v1241_v50 = vpop.f32.mrb[8].mxu1  ;;  %v1178_v51 = vpop.f32.mrb[9].mxu0 }
 0x108   :  { %v1179_v52 = vadd.f32 %v1178_v51, %v1177_v48  ;;  %v1242_v53 = vpop.f32.mrb[9].mxu1  ;;  %v1180_v54 = vpop.f32.mrb[10].mxu0 }
 0x109   :  { %v1243_v55 = vadd.f32 %v1242_v53, %v1241_v50  ;;  %v1244_v56 = vpop.f32.mrb[10].mxu1  ;;  %v1181_v57 = vpop.f32.mrb[11].mxu0 }
 0x10a   :  { %v649_v58 = vadd.f32 %v1179_v52, %v1700_v18  ;;  %v1182_v59 = vadd.f32 %v1181_v57, %v1180_v54  ;;  %v1245_v60 = vpop.f32.mrb[11].mxu1 }
 0x10b   :  { %v1246_v61 = vadd.f32 %v1245_v60, %v1244_v56 }
 0x10c   :  { %v652_v62 = vadd.f32 %v1182_v59, %v1700_v18  ;;  %v1716_v63 = vadd.f32 %v1243_v55, %v649_v58 }
 0x10e   :  { %v1183_v0 = vpop.f32.mrb[12].mxu0  ;;  %v1718_v1 = vadd.f32 %v1246_v61, %v652_v62 }
 0x10f   :  { %v1247_v2 = vpop.f32.mrb[12].mxu1  ;;  %v1184_v3 = vpop.f32.mrb[13].mxu0 }
 0x110   :  { %v1185_v4 = vadd.f32 %v1184_v3, %v1183_v0  ;;  %v1248_v5 = vpop.f32.mrb[13].mxu1  ;;  %v1186_v6 = vpop.f32.mrb[14].mxu0 }
 0x111   :  { %v1249_v7 = vadd.f32 %v1248_v5, %v1247_v2  ;;  %v1250_v8 = vpop.f32.mrb[14].mxu1  ;;  %v1187_v9 = vpop.f32.mrb[15].mxu0 }
 0x112   :  { %v657_v10 = vadd.f32 %v1185_v4, %v1700_v18  ;;  %v1188_v11 = vadd.f32 %v1187_v9, %v1186_v6  ;;  %v1251_v12 = vpop.f32.mrb[15].mxu1 }
 0x113   :  { %v1252_v13 = vadd.f32 %v1251_v12, %v1250_v8 }
 0x114   :  { %v660_v14 = vadd.f32 %v1188_v11, %v1700_v18  ;;  %v1722_v15 = vadd.f32 %v1249_v7, %v657_v10 }
 0x116   :  { %v1189_v16 = vpop.f32.mrb[16].mxu0  ;;  %v1724_v17 = vadd.f32 %v1252_v13, %v660_v14 }
 0x117   :  { %v1253_v19 = vpop.f32.mrb[16].mxu1  ;;  %v1190_v20 = vpop.f32.mrb[17].mxu0 }
 0x118   :  { %v1191_v21 = vadd.f32 %v1190_v20, %v1189_v16  ;;  %v1254_v22 = vpop.f32.mrb[17].mxu1  ;;  %v1192_v23 = vpop.f32.mrb[18].mxu0 }
 0x119   :  { %v1255_v24 = vadd.f32 %v1254_v22, %v1253_v19  ;;  %v1256_v25 = vpop.f32.mrb[18].mxu1  ;;  %v1193_v26 = vpop.f32.mrb[19].mxu0 }
 0x11a   :  { %v665_v27 = vadd.f32 %v1191_v21, %v1700_v18  ;;  %v1194_v28 = vadd.f32 %v1193_v26, %v1192_v23  ;;  %v1257_v29 = vpop.f32.mrb[19].mxu1 }
 0x11b   :  { %v1258_v30 = vadd.f32 %v1257_v29, %v1256_v25 }
 0x11c   :  { %v668_v32 = vadd.f32 %v1194_v28, %v1700_v18  ;;  %v762_v34 = vadd.f32 %v1255_v24, %v665_v27 }
 0x11e   :  { %v1195_v35 = vpop.f32.mrb[20].mxu0  ;;  %v1728_v36 = vadd.f32 %v1258_v30, %v668_v32 }
 0x11f   :  { %v1259_v37 = vpop.f32.mrb[20].mxu1  ;;  %v1196_v38 = vpop.f32.mrb[21].mxu0 }
 0x120   :  { %v1197_v39 = vadd.f32 %v1196_v38, %v1195_v35  ;;  %v1260_v40 = vpop.f32.mrb[21].mxu1  ;;  %v1198_v41 = vpop.f32.mrb[22].mxu0 }
 0x121   :  { %v1261_v42 = vadd.f32 %v1260_v40, %v1259_v37  ;;  %v1262_v43 = vpop.f32.mrb[22].mxu1  ;;  %v1199_v44 = vpop.f32.mrb[23].mxu0 }
 0x122   :  { %v673_v45 = vadd.f32 %v1197_v39, %v1700_v18  ;;  %v1200_v46 = vadd.f32 %v1199_v44, %v1198_v41  ;;  %v1263_v48 = vpop.f32.mrb[23].mxu1 }
 0x123   :  { %v1264_v50 = vadd.f32 %v1263_v48, %v1262_v43 }
 0x124   :  { %v676_v51 = vadd.f32 %v1200_v46, %v1700_v18  ;;  %v770_v52 = vadd.f32 %v1261_v42, %v673_v45 }
 0x126   :  { %v1201_v53 = vpop.f32.mrb[24].mxu0  ;;  %v773_v54 = vadd.f32 %v1264_v50, %v676_v51 }
 0x127   :  { %v1265_v55 = vpop.f32.mrb[24].mxu1  ;;  %v1202_v56 = vpop.f32.mrb[25].mxu0 }
 0x128   :  { %v1203_v57 = vadd.f32 %v1202_v56, %v1201_v53  ;;  %v1266_v58 = vpop.f32.mrb[25].mxu1  ;;  %v1204_v59 = vpop.f32.mrb[26].mxu0 }
 0x129   :  { %v1267_v60 = vadd.f32 %v1266_v58, %v1265_v55  ;;  %v1268_v61 = vpop.f32.mrb[26].mxu1  ;;  %v1205_v62 = vpop.f32.mrb[27].mxu0 }
 0x12a   :  { %v681_v0 = vadd.f32 %v1203_v57, %v1700_v18  ;;  %v1206_v2 = vadd.f32 %v1205_v62, %v1204_v59  ;;  %v1269_v3 = vpop.f32.mrb[27].mxu1 }
 0x12b   :  { %v1270_v4 = vadd.f32 %v1269_v3, %v1268_v61 }
 0x12c   :  { %v684_v5 = vadd.f32 %v1206_v2, %v1700_v18  ;;  %v778_v6 = vadd.f32 %v1267_v60, %v681_v0 }
 0x12e   :  { %v1207_v7 = vpop.f32.mrb[28].mxu0  ;;  %v1734_v8 = vadd.f32 %v1270_v4, %v684_v5 }
 0x12f   :  { %v1271_v9 = vpop.f32.mrb[28].mxu1  ;;  %v1208_v10 = vpop.f32.mrb[29].mxu0 }
 0x130   :  { %v1209_v11 = vadd.f32 %v1208_v10, %v1207_v7  ;;  %v1272_v12 = vpop.f32.mrb[29].mxu1  ;;  %v1210_v13 = vpop.f32.mrb[30].mxu0 }
 0x131   :  { %v1273_v14 = vadd.f32 %v1272_v12, %v1271_v9  ;;  %v1274_v16 = vpop.f32.mrb[30].mxu1  ;;  %v1211_v19 = vpop.f32.mrb[31].mxu0 }
 0x132   :  { %v689_v20 = vadd.f32 %v1209_v11, %v1700_v18  ;;  %v1212_v21 = vadd.f32 %v1211_v19, %v1210_v13  ;;  %v1275_v22 = vpop.f32.mrb[31].mxu1 }
 0x133   :  { %v1276_v23 = vadd.f32 %v1275_v22, %v1274_v16 }
 0x134   :  { %v692_v24 = vadd.f32 %v1212_v21, %v1700_v18  ;;  %v786_v25 = vadd.f32 %v1273_v14, %v689_v20 }
 0x136   :  { %v1311_v26 = vpop.f32.mrb[32].mxu0  ;;  %v789_v27 = vadd.f32 %v1276_v23, %v692_v24 }
 0x137   :  { %v835_v28 = vadd.f32 %v1311_v26, %v1710_v47  ;;  %v1319_v29 = vpop.f32.mrb[32].mxu1  ;;  %v826_v30 = vpop.f32.mrb[33].mxu0 }
 0x138   :  { %v867_v32 = vadd.f32 %v1319_v29, %v770_v52  ;;  %v827_v35 = vadd.f32 %v826_v30, %v1704_v31  ;;  %v858_v37 = vpop.f32.mrb[33].mxu1  ;;  %v1312_v38 = vpop.f32.mrb[34].mxu0 }
 0x139   :  { %v859_v39 = vadd.f32 %v858_v37, %v762_v34  ;;  %v838_v40 = vadd.f32 %v1312_v38, %v1712_v49  ;;  %v1320_v41 = vpop.f32.mrb[34].mxu1  ;;  %v829_v42 = vpop.f32.mrb[35].mxu0  ;;  %v891_v45 = vmax.f32 %v835_v28, 0.0 }
 0x13a   :  { %v870_v43 = vadd.f32 %v1320_v41, %v773_v54  ;;  %v830_v18 = vadd.f32 %v829_v42, %v1706_v33  ;;  %v861_v44 = vpop.f32.mrb[35].mxu1  ;;  %v899_v48 = vmax.f32 %v867_v32, 0.0  ;;  %v889_v50 = vmax.f32 %v827_v35, 0.0 }
 0x13b   :  { %v892_v46 = vmax.f32 %v838_v40, 0.0  ;;  %v862_v47 = vadd.f32 %v861_v44, %v1728_v36  ;;  %v897_v31 = vmax.f32 %v859_v39, 0.0 }
 0x13c   :  { %v900_v51 = vmax.f32 %v870_v43, 0.0  ;;  %v890_v52 = vmax.f32 %v830_v18, 0.0 }
 0x13d   :  { %v1110_v53 = vpack.c.bf16 %v892_v46, %v891_v45  ;;  %v898_v55 = vmax.f32 %v862_v47, 0.0 }
 0x13e   :  { %v1130_v34 = vpack.c.bf16 %v900_v51, %v899_v48  ;;  %v1105_v56 = vpack.c.bf16 %v890_v52, %v889_v50  ;;  %v1315_v49 = vpop.f32.mrb[36].mxu0 }
 0x13f   :  { %1142 = vst [vmem:[%s1775_s3 + $0x8] sm:$0xff] %v1110_v53   ;;  %v1125_v33 = vpack.c.bf16 %v898_v55, %v897_v31  ;;  %v851_v54 = vadd.f32 %v1315_v49, %v1722_v15  ;;  %v1323_v57 = vpop.f32.mrb[36].mxu1  ;;  %v842_v58 = vpop.f32.mrb[37].mxu0 }
 0x140   :  { %1146 = vst [vmem:[%s1775_s3 + $0x28] sm:$0xff] %v1130_v34   ;;  %1106 = vst [vmem:[%s1775_s3] sm:$0xff] %v1105_v56   ;;  %v883_v36 = vadd.f32 %v1323_v57, %v786_v25  ;;  %v843_v59 = vadd.f32 %v842_v58, %v1716_v63  ;;  %v874_v60 = vpop.f32.mrb[37].mxu1  ;;  %v1316_v61 = vpop.f32.mrb[38].mxu0 }
 0x141   :  { %1145 = vst [vmem:[%s1775_s3 + $0x20] sm:$0xff] %v1125_v33   ;;  %v875_v15 = vadd.f32 %v874_v60, %v778_v6  ;;  %v854_v62 = vadd.f32 %v1316_v61, %v1724_v17  ;;  %v1324_v0 = vpop.f32.mrb[38].mxu1  ;;  %v845_v2 = vpop.f32.mrb[39].mxu0  ;;  %v895_v7 = vmax.f32 %v851_v54, 0.0 }
 0x142   :  { %v886_v3 = vadd.f32 %v1324_v0, %v789_v27  ;;  %v846_v4 = vadd.f32 %v845_v2, %v1718_v1  ;;  %v877_v5 = vpop.f32.mrb[39].mxu1  ;;  %v903_v63 = vmax.f32 %v883_v36, 0.0  ;;  %v893_v11 = vmax.f32 %v843_v59, 0.0 }
 0x143   :  { %v896_v9 = vmax.f32 %v854_v62, 0.0  ;;  %v878_v10 = vadd.f32 %v877_v5, %v1734_v8  ;;  %v901_v14 = vmax.f32 %v875_v15, 0.0 }
 0x144   :  { %v904_v12 = vmax.f32 %v886_v3, 0.0  ;;  %v894_v13 = vmax.f32 %v846_v4, 0.0 }
 0x145   :  { %v1120_v16 = vpack.c.bf16 %v896_v9, %v895_v7  ;;  %v902_v19 = vmax.f32 %v878_v10, 0.0 }
 0x146   :  { %v1140_v6 = vpack.c.bf16 %v904_v12, %v903_v63  ;;  %v1115_v20 = vpack.c.bf16 %v894_v13, %v893_v11 }
 0x147   :  { %1144 = vst [vmem:[%s1775_s3 + $0x18] sm:$0xff] %v1120_v16   ;;  %v1135_v17 = vpack.c.bf16 %v902_v19, %v901_v14 }
 0x148   :  { %1148 = vst [vmem:[%s1775_s3 + $0x38] sm:$0xff] %v1140_v6   ;;  %1143 = vst [vmem:[%s1775_s3 + $0x10] sm:$0xff] %v1115_v20  }
 0x149   :  { %1147 = vst [vmem:[%s1775_s3 + $0x30] sm:$0xff] %v1135_v17  }

// kernel: simple_pose_resnet_forward.6
= control target key start
LH: loop header
LB: loop body
LE: loop exit
PB: predicated region body
PF: predicated region fallthrough
CT: control target
= control target key end

     0   :  { %v2565_v0 = vmov 0   ;;  %s3269_s1 = inlined_call_operand.vmem [shape: bf16[384,128], index: 1, kind: input, shape index: {}]   ;;  %s3270_s0 = inlined_call_operand.vmem [shape: bf16[512,384], index: 0, kind: input, shape index: {}]   ;;  %s3271_s2 = inlined_call_operand.vmem [shape: f32[1,128], index: 2, kind: input, shape index: {}]   ;;  %s3272_s3 = inlined_call_operand.vmem [shape: bf16[512,128], index: 3, kind: output, shape index: {}]  }
   0x1   :  { %854 = vmatprep.subr.bf16.mxu0 %v2565_v0  ;;  %2380 = vmatprep.subr.bf16.mxu1 %v2565_v0  ;;  %v2413_v1 = vld [vmem:[%s3269_s1] sm:$0xff]   ;;  %v2414_v2 = vld [vmem:[%s3269_s1 + $0x8] sm:$0xff]   ;;  %v2415_v3 = vld [vmem:[%s3269_s1 + $0x10] sm:$0xff]  }
   0x2   :  { %855 = vmatpush1.bf16.msra.mxu0 %v2413_v1  ;;  %2396 = vmatpush1.bf16.msra.mxu1 %v2413_v1  ;;  %v2416_v4 = vld [vmem:[%s3269_s1 + $0x18] sm:$0xff]   ;;  %v2417_v5 = vld [vmem:[%s3269_s1 + $0x20] sm:$0xff]   ;;  %v2418_v7 = vld [vmem:[%s3269_s1 + $0x28] sm:$0xff]  }
   0x3   :  { %856 = vmatprep.subr.bf16.mxu0 %v2565_v0  ;;  %2381 = vmatprep.subr.bf16.mxu1 %v2565_v0  ;;  %v2431_v6 = vld [vmem:[%s3270_s0 + $0x4] ss:$12 sps:$4 sm:$0xff]   ;;  %v2420_v10 = vld [vmem:[%s3269_s1 + $0x38] sm:$0xff]   ;;  %v2422_v12 = vld [vmem:[%s3269_s1 + $0x48] sm:$0xff]  }
   0x4   :  { %v2434_v8 = vld [vmem:[%s3270_s0 + $0x244] ss:$12 sps:$4 sm:$0xff]   ;;  %886 = vmatprep.mubr.bf16.mxu0 %v2431_v6  ;;  %v2424_v14 = vld [vmem:[%s3269_s1 + $0x58] sm:$0xff]   ;;  %v2426_v16 = vld [vmem:[%s3269_s1 + $0x68] sm:$0xff]  }
   0x5   :  { %1078 = vmatprep.mubr.bf16.mxu1 %v2434_v8  ;;  %v2419_v9 = vld [vmem:[%s3269_s1 + $0x30] sm:$0xff]   ;;  %v2421_v11 = vld [vmem:[%s3269_s1 + $0x40] sm:$0xff]   ;;  %v2428_v18 = vld [vmem:[%s3269_s1 + $0x78] sm:$0xff]  }
   0x6   :  { %857 = vmatpush1.bf16.msra.mxu0 %v2414_v2  ;;  %2397 = vmatpush1.bf16.msra.mxu1 %v2414_v2  ;;  %v2423_v13 = vld [vmem:[%s3269_s1 + $0x50] sm:$0xff]   ;;  %v2425_v15 = vld [vmem:[%s3269_s1 + $0x60] sm:$0xff]   ;;  %v2436_v22 = vld [vmem:[%s3270_s0 + $0x1c] ss:$12 sps:$4 sm:$0xff]  }
   0x7   :  { %858 = vmatprep.subr.bf16.mxu0 %v2565_v0  ;;  %2382 = vmatprep.subr.bf16.mxu1 %v2565_v0  ;;  %v2427_v17 = vld [vmem:[%s3269_s1 + $0x70] sm:$0xff]   ;;  %v2435_v19 = vld [vmem:[%s3269_s1 + $0x80] sm:$0xff]   ;;  %v2438_v23 = vld [vmem:[%s3270_s0 + $0x25c] ss:$12 sps:$4 sm:$0xff]  }
   0x8   :  { %v2429_v20 = vld [vmem:[%s3270_s0] ss:$12 sps:$4 sm:$0xff]   ;;  %v2449_v25 = vld [vmem:[%s3269_s1 + $0x90] sm:$0xff]   ;;  %v2440_v26 = vld [vmem:[%s3270_s0 + $0x18] ss:$12 sps:$4 sm:$0xff]  }
   0x9   :  { %v2432_v21 = vld [vmem:[%s3270_s0 + $0x240] ss:$12 sps:$4 sm:$0xff]   ;;  %v2441_v27 = vld [vmem:[%s3270_s0 + $0x258] ss:$12 sps:$4 sm:$0xff]   ;;  %v2447_v31 = vld [vmem:[%s3270_s0 + $0x30] ss:$12 sps:$4 sm:$0xff]  }
   0xa   :  { %859 = vmatpush1.bf16.msra.mxu0 %v2415_v3  ;;  %2398 = vmatpush1.bf16.msra.mxu1 %v2415_v3  ;;  %v2442_v24 = vld [vmem:[%s3269_s1 + $0x88] sm:$0xff]   ;;  %v2443_v28 = vld [vmem:[%s3270_s0 + $0x34] ss:$12 sps:$4 sm:$0xff]   ;;  %v2456_v30 = vld [vmem:[%s3269_s1 + $0x98] sm:$0xff]  }
   0xb   :  { %860 = vmatprep.subr.bf16.mxu0 %v2565_v0  ;;  %2383 = vmatprep.subr.bf16.mxu1 %v2565_v0  ;;  %v2445_v29 = vld [vmem:[%s3270_s0 + $0x274] ss:$12 sps:$4 sm:$0xff]   ;;  %v2448_v33 = vld [vmem:[%s3270_s0 + $0x270] ss:$12 sps:$4 sm:$0xff]   ;;  %v2450_v34 = vld [vmem:[%s3270_s0 + $0x4c] ss:$12 sps:$4 sm:$0xff]  }
   0xc   :  { %v2463_v32 = vld [vmem:[%s3269_s1 + $0xa0] sm:$0xff]   ;;  %v2452_v35 = vld [vmem:[%s3270_s0 + $0x28c] ss:$12 sps:$4 sm:$0xff]   ;;  %v2454_v37 = vld [vmem:[%s3270_s0 + $0x48] ss:$12 sps:$4 sm:$0xff]  }
   0xd   :  { %v2470_v36 = vld [vmem:[%s3269_s1 + $0xa8] sm:$0xff]   ;;  %v2457_v39 = vld [vmem:[%s3270_s0 + $0x64] ss:$12 sps:$4 sm:$0xff]   ;;  %v2484_v42 = vld [vmem:[%s3269_s1 + $0xb8] sm:$0xff]  }
   0xe   :  { %861 = vmatpush1.bf16.msra.mxu0 %v2416_v4  ;;  %2399 = vmatpush1.bf16.msra.mxu1 %v2416_v4  ;;  %v2455_v38 = vld [vmem:[%s3270_s0 + $0x288] ss:$12 sps:$4 sm:$0xff]   ;;  %v2459_v40 = vld [vmem:[%s3270_s0 + $0x2a4] ss:$12 sps:$4 sm:$0xff]   ;;  %v2461_v43 = vld [vmem:[%s3270_s0 + $0x60] ss:$12 sps:$4 sm:$0xff]  }
   0xf   :  { %862 = vmatprep.subr.bf16.mxu0 %v2565_v0  ;;  %2384 = vmatprep.subr.bf16.mxu1 %v2565_v0  ;;  %v2477_v41 = vld [vmem:[%s3269_s1 + $0xb0] sm:$0xff]   ;;  %v2462_v44 = vld [vmem:[%s3270_s0 + $0x2a0] ss:$12 sps:$4 sm:$0xff]   ;;  %v2464_v45 = vld [vmem:[%s3270_s0 + $0x7c] ss:$12 sps:$4 sm:$0xff]  }
  0x10   :  { %v2466_v46 = vld [vmem:[%s3270_s0 + $0x2bc] ss:$12 sps:$4 sm:$0xff]   ;;  %v2468_v47 = vld [vmem:[%s3270_s0 + $0x78] ss:$12 sps:$4 sm:$0xff]   ;;  %v2471_v49 = vld [vmem:[%s3270_s0 + $0x94] ss:$12 sps:$4 sm:$0xff]  }
  0x11   :  { %v2469_v48 = vld [vmem:[%s3270_s0 + $0x2b8] ss:$12 sps:$4 sm:$0xff]   ;;  %v2473_v50 = vld [vmem:[%s3270_s0 + $0x2d4] ss:$12 sps:$4 sm:$0xff]   ;;  %v2475_v51 = vld [vmem:[%s3270_s0 + $0x90] ss:$12 sps:$4 sm:$0xff]  }
  0x12   :  { %863 = vmatpush1.bf16.msra.mxu0 %v2417_v5  ;;  %2400 = vmatpush1.bf16.msra.mxu1 %v2417_v5  ;;  %v2476_v52 = vld [vmem:[%s3270_s0 + $0x2d0] ss:$12 sps:$4 sm:$0xff]   ;;  %v2478_v53 = vld [vmem:[%s3270_s0 + $0xac] ss:$12 sps:$4 sm:$0xff]   ;;  %v2482_v55 = vld [vmem:[%s3270_s0 + $0xa8] ss:$12 sps:$4 sm:$0xff]  }
  0x13   :  { %864 = vmatprep.subr.bf16.mxu0 %v2565_v0  ;;  %2385 = vmatprep.subr.bf16.mxu1 %v2565_v0  ;;  %v2480_v54 = vld [vmem:[%s3270_s0 + $0x2ec] ss:$12 sps:$4 sm:$0xff]   ;;  %v2483_v56 = vld [vmem:[%s3270_s0 + $0x2e8] ss:$12 sps:$4 sm:$0xff]   ;;  %v2485_v57 = vld [vmem:[%s3270_s0 + $0xc4] ss:$12 sps:$4 sm:$0xff]  }
  0x14   :  { %v2487_v58 = vld [vmem:[%s3270_s0 + $0x8] ss:$12 sps:$4 sm:$0xff]   ;;  %v2488_v59 = vld [vmem:[%s3270_s0 + $0xc0] ss:$12 sps:$4 sm:$0xff]   ;;  %v2492_v62 = vld [vmem:[%s3270_s0 + $0x38] ss:$12 sps:$4 sm:$0xff]  }
  0x15   :  { %v2489_v60 = vld [vmem:[%s3270_s0 + $0x20] ss:$12 sps:$4 sm:$0xff]   ;;  %v2490_v61 = vld [vmem:[%s3270_s0 + $0xdc] ss:$12 sps:$4 sm:$0xff]   ;;  %v2493_v63 = vld [vmem:[%s3270_s0 + $0xd8] ss:$12 sps:$4 sm:$0xff]  }
  0x16   :  { %865 = vmatpush1.bf16.msra.mxu0 %v2418_v7  ;;  %2401 = vmatpush1.bf16.msra.mxu1 %v2418_v7  ;;  %v2495_v1 = vld [vmem:[%s3270_s0 + $0xf4] ss:$12 sps:$4 sm:$0xff]   ;;  %v2498_v3 = vld [vmem:[%s3270_s0 + $0xf0] ss:$12 sps:$4 sm:$0xff]   ;;  %v2500_v5 = vld [vmem:[%s3270_s0 + $0x10c] ss:$12 sps:$4 sm:$0xff]  }
  0x17   :  { %866 = vmatprep.subr.bf16.mxu0 %v2565_v0  ;;  %2386 = vmatprep.subr.bf16.mxu1 %v2565_v0  ;;  %v2497_v2 = vld [vmem:[%s3270_s0 + $0x68] ss:$12 sps:$4 sm:$0xff]   ;;  %v2499_v4 = vld [vmem:[%s3270_s0 + $0x80] ss:$12 sps:$4 sm:$0xff]   ;;  %v2502_v6 = vld [vmem:[%s3270_s0 + $0x98] ss:$12 sps:$4 sm:$0xff]  }
  0x18   :  { %v2503_v7 = vld [vmem:[%s3270_s0 + $0x108] ss:$12 sps:$4 sm:$0xff]   ;;  %v2504_v8 = vld [vmem:[%s3270_s0 + $0xb0] ss:$12 sps:$4 sm:$0xff]  }
  0x1a   :  { %867 = vmatpush1.bf16.msra.mxu0 %v2419_v9  ;;  %2402 = vmatpush1.bf16.msra.mxu1 %v2419_v9  ;;  %v2505_v9 = vld [vmem:[%s3270_s0 + $0x124] ss:$12 sps:$4 sm:$0xff]  }
  0x1b   :  { %868 = vmatprep.subr.bf16.mxu0 %v2565_v0  ;;  %2387 = vmatprep.subr.bf16.mxu1 %v2565_v0 }
  0x1e   :  { %869 = vmatpush1.bf16.msra.mxu0 %v2420_v10  ;;  %2403 = vmatpush1.bf16.msra.mxu1 %v2420_v10  ;;  %v2507_v10 = vld [vmem:[%s3270_s0 + $0xc8] ss:$12 sps:$4 sm:$0xff]  }
  0x1f   :  { %870 = vmatprep.subr.bf16.mxu0 %v2565_v0  ;;  %2388 = vmatprep.subr.bf16.mxu1 %v2565_v0 }
  0x22   :  { %871 = vmatpush1.bf16.msra.mxu0 %v2421_v11  ;;  %2404 = vmatpush1.bf16.msra.mxu1 %v2421_v11  ;;  %v2508_v11 = vld [vmem:[%s3270_s0 + $0x120] ss:$12 sps:$4 sm:$0xff]  }
  0x23   :  { %872 = vmatprep.subr.bf16.mxu0 %v2565_v0  ;;  %2389 = vmatprep.subr.bf16.mxu1 %v2565_v0 }
  0x26   :  { %873 = vmatpush1.bf16.msra.mxu0 %v2422_v12  ;;  %2405 = vmatpush1.bf16.msra.mxu1 %v2422_v12  ;;  %v2509_v12 = vld [vmem:[%s3270_s0 + $0xe0] ss:$12 sps:$4 sm:$0xff]  }
  0x27   :  { %874 = vmatprep.subr.bf16.mxu0 %v2565_v0  ;;  %2390 = vmatprep.subr.bf16.mxu1 %v2565_v0 }
  0x2a   :  { %875 = vmatpush1.bf16.msra.mxu0 %v2423_v13  ;;  %2406 = vmatpush1.bf16.msra.mxu1 %v2423_v13  ;;  %v2510_v13 = vld [vmem:[%s3270_s0 + $0x13c] ss:$12 sps:$4 sm:$0xff]  }
  0x2b   :  { %876 = vmatprep.subr.bf16.mxu0 %v2565_v0  ;;  %2391 = vmatprep.subr.bf16.mxu1 %v2565_v0 }
  0x2e   :  { %877 = vmatpush1.bf16.msra.mxu0 %v2424_v14  ;;  %2407 = vmatpush1.bf16.msra.mxu1 %v2424_v14  ;;  %v2512_v14 = vld [vmem:[%s3270_s0 + $0xf8] ss:$12 sps:$4 sm:$0xff]  }
  0x2f   :  { %878 = vmatprep.subr.bf16.mxu0 %v2565_v0  ;;  %2392 = vmatprep.subr.bf16.mxu1 %v2565_v0 }
  0x32   :  { %879 = vmatpush1.bf16.msra.mxu0 %v2425_v15  ;;  %2408 = vmatpush1.bf16.msra.mxu1 %v2425_v15  ;;  %v2513_v15 = vld [vmem:[%s3270_s0 + $0x138] ss:$12 sps:$4 sm:$0xff]  }
  0x33   :  { %880 = vmatprep.subr.bf16.mxu0 %v2565_v0  ;;  %2393 = vmatprep.subr.bf16.mxu1 %v2565_v0 }
  0x36   :  { %881 = vmatpush1.bf16.msra.mxu0 %v2426_v16  ;;  %2409 = vmatpush1.bf16.msra.mxu1 %v2426_v16  ;;  %v2514_v16 = vld [vmem:[%s3270_s0 + $0x110] ss:$12 sps:$4 sm:$0xff]  }
  0x37   :  { %882 = vmatprep.subr.bf16.mxu0 %v2565_v0  ;;  %2394 = vmatprep.subr.bf16.mxu1 %v2565_v0 }
  0x3a   :  { %883 = vmatpush1.bf16.msra.mxu0 %v2427_v17  ;;  %2410 = vmatpush1.bf16.msra.mxu1 %v2427_v17  ;;  %v2515_v17 = vld [vmem:[%s3270_s0 + $0x154] ss:$12 sps:$4 sm:$0xff]  }
  0x3b   :  { %884 = vmatprep.subr.bf16.mxu0 %v2565_v0  ;;  %2395 = vmatprep.subr.bf16.mxu1 %v2565_v0  ;;  %v2494_v0 = vld [vmem:[%s3270_s0 + $0x50] ss:$12 sps:$4 sm:$0xff]  }
  0x3e   :  { %885 = vmatpush1.bf16.msra.mxu0 %v2428_v18  ;;  %2411 = vmatpush1.bf16.msra.mxu1 %v2428_v18  ;;  %v2517_v18 = vld [vmem:[%s3270_s0 + $0x128] ss:$12 sps:$4 sm:$0xff]  }
  0x3f   :  { %2300 = vmatprep.subr.bf16.mxu1 %v2435_v19 }
  0x41   :  { %887 = vmatmul.mubr.bf16.vlgmr.msra.gmra.mrb[0].mxu0 %v2429_v20  ;;  %1079 = vmatmul.mubr.bf16.vlgmr.msra.gmra.mrb[0].mxu1 %v2432_v21  ;;  %v2519_v20 = vld [vmem:[%s3270_s0 + $0x140] ss:$12 sps:$4 sm:$0xff]  }
  0x42   :  { %2301 = vmatpush3.bf16.msra.mxu1 %v2435_v19  ;;  %894 = vmatprep.mubr.bf16.mxu0 %v2436_v22  ;;  %v2518_v19 = vld [vmem:[%s3270_s0 + $0x150] ss:$12 sps:$4 sm:$0xff]   ;;  %v2520_v21 = vld [vmem:[%s3270_s0 + $0x16c] ss:$12 sps:$4 sm:$0xff]  }
  0x43   :  { %1086 = vmatprep.mubr.bf16.mxu1 %v2438_v23  ;;  %2302 = vmatprep.subr.bf16.mxu1 %v2442_v24  ;;  %v2522_v22 = vld [vmem:[%s3270_s0 + $0x158] ss:$12 sps:$4 sm:$0xff]   ;;  %v2523_v23 = vld [vmem:[%s3270_s0 + $0x168] ss:$12 sps:$4 sm:$0xff]  }
  0x46   :  { %2303 = vmatpush3.bf16.msra.mxu1 %v2442_v24  ;;  %v2524_v24 = vld [vmem:[%s3270_s0 + $0x170] ss:$12 sps:$4 sm:$0xff]  }
  0x47   :  { %2304 = vmatprep.subr.bf16.mxu1 %v2449_v25 }
  0x49   :  { %895 = vmatmul.mubr.bf16.gmra.mrb[4].mxu0 %v2440_v26  ;;  %1087 = vmatmul.mubr.bf16.gmra.mrb[4].mxu1 %v2441_v27  ;;  %v2527_v26 = vld [vmem:[%s3270_s0 + $0x188] ss:$12 sps:$4 sm:$0xff]   ;;  %v2528_v27 = vld [vmem:[%s3270_s0 + $0x180] ss:$12 sps:$4 sm:$0xff]  }
  0x4a   :  { %902 = vmatprep.mubr.bf16.mxu0 %v2443_v28  ;;  %1094 = vmatprep.mubr.bf16.mxu1 %v2445_v29  ;;  %v2529_v28 = vld [vmem:[%s3270_s0 + $0x1a0] ss:$12 sps:$4 sm:$0xff]   ;;  %v2530_v29 = vld [vmem:[%s3270_s0 + $0x19c] ss:$12 sps:$4 sm:$0xff]  }
  0x4b   :  { %2305 = vmatpush3.bf16.msra.mxu1 %v2449_v25  ;;  %v2525_v25 = vld [vmem:[%s3270_s0 + $0x184] ss:$12 sps:$4 sm:$0xff]  }
  0x4c   :  { %2306 = vmatprep.subr.bf16.mxu1 %v2456_v30 }
  0x4f   :  { %2307 = vmatpush3.bf16.msra.mxu1 %v2456_v30  ;;  %v2532_v30 = vld [vmem:[%s3270_s0 + $0x1b8] ss:$12 sps:$4 sm:$0xff]  }
  0x50   :  { %2308 = vmatprep.subr.bf16.mxu1 %v2463_v32 }
  0x51   :  { %903 = vmatmul.mubr.bf16.gmra.mrb[8].mxu0 %v2447_v31  ;;  %1095 = vmatmul.mubr.bf16.gmra.mrb[8].mxu1 %v2448_v33  ;;  %v2533_v31 = vld [vmem:[%s3270_s0 + $0x198] ss:$12 sps:$4 sm:$0xff]   ;;  %v2535_v33 = vld [vmem:[%s3270_s0 + $0x1b4] ss:$12 sps:$4 sm:$0xff]  }
  0x52   :  { %910 = vmatprep.mubr.bf16.mxu0 %v2450_v34  ;;  %1102 = vmatprep.mubr.bf16.mxu1 %v2452_v35  ;;  %v2537_v34 = vld [vmem:[%s3270_s0 + $0x1e8] ss:$12 sps:$4 sm:$0xff]   ;;  %v2538_v35 = vld [vmem:[%s3270_s0 + $0x1b0] ss:$12 sps:$4 sm:$0xff]  }
  0x53   :  { %2309 = vmatpush3.bf16.msra.mxu1 %v2463_v32  ;;  %v2534_v32 = vld [vmem:[%s3270_s0 + $0x1d0] ss:$12 sps:$4 sm:$0xff]  }
  0x54   :  { %2310 = vmatprep.subr.bf16.mxu1 %v2470_v36 }
  0x57   :  { %2311 = vmatpush3.bf16.msra.mxu1 %v2470_v36  ;;  %v2539_v36 = vld [vmem:[%s3270_s0 + $0x200] ss:$12 sps:$4 sm:$0xff]  }
  0x58   :  { %2312 = vmatprep.subr.bf16.mxu1 %v2477_v41 }
  0x59   :  { %911 = vmatmul.mubr.bf16.gmra.mrb[12].mxu0 %v2454_v37  ;;  %1103 = vmatmul.mubr.bf16.gmra.mrb[12].mxu1 %v2455_v38  ;;  %v2540_v37 = vld [vmem:[%s3270_s0 + $0x1cc] ss:$12 sps:$4 sm:$0xff]  }
  0x5a   :  { %918 = vmatprep.mubr.bf16.mxu0 %v2457_v39  ;;  %1110 = vmatprep.mubr.bf16.mxu1 %v2459_v40  ;;  %v2542_v38 = vld [vmem:[%s3270_s0 + $0x218] ss:$12 sps:$4 sm:$0xff]   ;;  %v2543_v39 = vld [vmem:[%s3270_s0 + $0x1c8] ss:$12 sps:$4 sm:$0xff]   ;;  %v2544_v40 = vld [vmem:[%s3270_s0 + $0x230] ss:$12 sps:$4 sm:$0xff]  }
  0x5b   :  { %2313 = vmatpush3.bf16.msra.mxu1 %v2477_v41  ;;  %v2545_v41 = vld [vmem:[%s3270_s0 + $0x1e4] ss:$12 sps:$4 sm:$0xff]  }
  0x5c   :  { %2314 = vmatprep.subr.bf16.mxu1 %v2484_v42 }
  0x5f   :  { %2315 = vmatpush3.bf16.msra.mxu1 %v2484_v42  ;;  %v2547_v42 = vld [vmem:[%s3270_s0 + $0x248] ss:$12 sps:$4 sm:$0xff]  }
  0x61   :  { %919 = vmatmul.mubr.bf16.gmra.mrb[16].mxu0 %v2461_v43  ;;  %1111 = vmatmul.mubr.bf16.gmra.mrb[16].mxu1 %v2462_v44  ;;  %v2548_v43 = vld [vmem:[%s3270_s0 + $0x1e0] ss:$12 sps:$4 sm:$0xff]  }
  0x62   :  { %926 = vmatprep.mubr.bf16.mxu0 %v2464_v45  ;;  %1118 = vmatprep.mubr.bf16.mxu1 %v2466_v46  ;;  %v2549_v44 = vld [vmem:[%s3270_s0 + $0x260] ss:$12 sps:$4 sm:$0xff]   ;;  %v2550_v45 = vld [vmem:[%s3270_s0 + $0x1fc] ss:$12 sps:$4 sm:$0xff]   ;;  %v2552_v46 = vld [vmem:[%s3270_s0 + $0x278] ss:$12 sps:$4 sm:$0xff]  }
  0x69   :  { %927 = vmatmul.mubr.bf16.gmra.mrb[20].mxu0 %v2468_v47  ;;  %1119 = vmatmul.mubr.bf16.gmra.mrb[20].mxu1 %v2469_v48  ;;  %v2553_v47 = vld [vmem:[%s3270_s0 + $0x1f8] ss:$12 sps:$4 sm:$0xff]   ;;  %v2554_v48 = vld [vmem:[%s3270_s0 + $0x290] ss:$12 sps:$4 sm:$0xff]  }
  0x6a   :  { %934 = vmatprep.mubr.bf16.mxu0 %v2471_v49  ;;  %1126 = vmatprep.mubr.bf16.mxu1 %v2473_v50  ;;  %v2555_v49 = vld [vmem:[%s3270_s0 + $0x214] ss:$12 sps:$4 sm:$0xff]  }
  0x6b   :  { %v2557_v50 = vld [vmem:[%s3270_s0 + $0x2a8] ss:$12 sps:$4 sm:$0xff]  }
  0x71   :  { %935 = vmatmul.mubr.bf16.gmra.mrb[24].mxu0 %v2475_v51  ;;  %1127 = vmatmul.mubr.bf16.gmra.mrb[24].mxu1 %v2476_v52  ;;  %v2558_v51 = vld [vmem:[%s3270_s0 + $0x210] ss:$12 sps:$4 sm:$0xff]   ;;  %v2559_v52 = vld [vmem:[%s3270_s0 + $0x2c0] ss:$12 sps:$4 sm:$0xff]  }
  0x72   :  { %942 = vmatprep.mubr.bf16.mxu0 %v2478_v53  ;;  %1134 = vmatprep.mubr.bf16.mxu1 %v2480_v54  ;;  %v2560_v53 = vld [vmem:[%s3270_s0 + $0x22c] ss:$12 sps:$4 sm:$0xff]  }
  0x73   :  { %v2562_v54 = vld [vmem:[%s3270_s0 + $0x2d8] ss:$12 sps:$4 sm:$0xff]  }
  0x79   :  { %943 = vmatmul.mubr.bf16.gmra.mrb[28].mxu0 %v2482_v55  ;;  %1135 = vmatmul.mubr.bf16.gmra.mrb[28].mxu1 %v2483_v56  ;;  %v2563_v55 = vld [vmem:[%s3270_s0 + $0x228] ss:$12 sps:$4 sm:$0xff]   ;;  %v2564_v56 = vld [vmem:[%s3270_s0 + $0x2f0] ss:$12 sps:$4 sm:$0xff]  }
  0x7a   :  { %950 = vmatprep.mubr.bf16.mxu0 %v2485_v57  ;;  %2316 = vmatprep.mubr.bf16.mxu1 %v2487_v58 }
  0x81   :  { %951 = vmatmul.mubr.bf16.gmra.mrb[32].mxu0 %v2488_v59  ;;  %2317 = vmatmul.mubr.bf16.vlgmr.msra.gmra.mrb[32].mxu1 %v2489_v60 }
  0x82   :  { %958 = vmatprep.mubr.bf16.mxu0 %v2490_v61  ;;  %2320 = vmatprep.mubr.bf16.mxu1 %v2492_v62 }
  0x89   :  { %959 = vmatmul.mubr.bf16.gmra.mrb[36].mxu0 %v2493_v63  ;;  %2321 = vmatmul.mubr.bf16.gmra.mrb[36].mxu1 %v2494_v0 }
  0x8a   :  { %966 = vmatprep.mubr.bf16.mxu0 %v2495_v1  ;;  %2324 = vmatprep.mubr.bf16.mxu1 %v2497_v2 }
  0x91   :  { %967 = vmatmul.mubr.bf16.gmra.mrb[40].mxu0 %v2498_v3  ;;  %2325 = vmatmul.mubr.bf16.gmra.mrb[40].mxu1 %v2499_v4 }
  0x92   :  { %974 = vmatprep.mubr.bf16.mxu0 %v2500_v5  ;;  %2328 = vmatprep.mubr.bf16.mxu1 %v2502_v6 }
  0x99   :  { %975 = vmatmul.mubr.bf16.gmra.mrb[44].mxu0 %v2503_v7  ;;  %2329 = vmatmul.mubr.bf16.gmra.mrb[44].mxu1 %v2504_v8 }
  0x9a   :  { %982 = vmatprep.mubr.bf16.mxu0 %v2505_v9  ;;  %2332 = vmatprep.mubr.bf16.mxu1 %v2507_v10 }
  0xa1   :  { %983 = vmatmul.mubr.bf16.gmra.mrb[48].mxu0 %v2508_v11  ;;  %2333 = vmatmul.mubr.bf16.gmra.mrb[48].mxu1 %v2509_v12 }
  0xa2   :  { %990 = vmatprep.mubr.bf16.mxu0 %v2510_v13  ;;  %2336 = vmatprep.mubr.bf16.mxu1 %v2512_v14 }
  0xa9   :  { %991 = vmatmul.mubr.bf16.gmra.mrb[52].mxu0 %v2513_v15  ;;  %2337 = vmatmul.mubr.bf16.gmra.mrb[52].mxu1 %v2514_v16 }
  0xaa   :  { %998 = vmatprep.mubr.bf16.mxu0 %v2515_v17  ;;  %2340 = vmatprep.mubr.bf16.mxu1 %v2517_v18 }
  0xb1   :  { %999 = vmatmul.mubr.bf16.gmra.mrb[56].mxu0 %v2518_v19  ;;  %2341 = vmatmul.mubr.bf16.gmra.mrb[56].mxu1 %v2519_v20 }
  0xb2   :  { %1006 = vmatprep.mubr.bf16.mxu0 %v2520_v21  ;;  %2344 = vmatprep.mubr.bf16.mxu1 %v2522_v22 }
  0xb9   :  { %1007 = vmatmul.mubr.bf16.gmra.mrb[60].mxu0 %v2523_v23  ;;  %2345 = vmatmul.mubr.bf16.gmra.mrb[60].mxu1 %v2524_v24 }
  0xba   :  { %1014 = vmatprep.mubr.bf16.mxu0 %v2525_v25  ;;  %2348 = vmatprep.mubr.bf16.mxu1 %v2527_v26 }
  0xc1   :  { %1015 = vmatmul.mubr.bf16.gmra.mrb[64].mxu0 %v2528_v27  ;;  %2349 = vmatmul.mubr.bf16.gmra.mrb[64].mxu1 %v2529_v28 }
  0xc2   :  { %1022 = vmatprep.mubr.bf16.mxu0 %v2530_v29  ;;  %2352 = vmatprep.mubr.bf16.mxu1 %v2532_v30 }
  0xc9   :  { %1023 = vmatmul.mubr.bf16.gmra.mrb[68].mxu0 %v2533_v31  ;;  %2353 = vmatmul.mubr.bf16.gmra.mrb[68].mxu1 %v2534_v32 }
  0xca   :  { %1030 = vmatprep.mubr.bf16.mxu0 %v2535_v33  ;;  %2356 = vmatprep.mubr.bf16.mxu1 %v2537_v34 }
  0xd1   :  { %1031 = vmatmul.mubr.bf16.gmra.mrb[72].mxu0 %v2538_v35  ;;  %2357 = vmatmul.mubr.bf16.gmra.mrb[72].mxu1 %v2539_v36 }
  0xd2   :  { %1038 = vmatprep.mubr.bf16.mxu0 %v2540_v37  ;;  %2360 = vmatprep.mubr.bf16.mxu1 %v2542_v38 }
  0xd9   :  { %1039 = vmatmul.mubr.bf16.gmra.mrb[76].mxu0 %v2543_v39  ;;  %2361 = vmatmul.mubr.bf16.gmra.mrb[76].mxu1 %v2544_v40 }
  0xda   :  { %1046 = vmatprep.mubr.bf16.mxu0 %v2545_v41  ;;  %2364 = vmatprep.mubr.bf16.mxu1 %v2547_v42 }
  0xe1   :  { %1047 = vmatmul.mubr.bf16.gmra.mrb[80].mxu0 %v2548_v43  ;;  %2365 = vmatmul.mubr.bf16.gmra.mrb[80].mxu1 %v2549_v44 }
  0xe2   :  { %1054 = vmatprep.mubr.bf16.mxu0 %v2550_v45  ;;  %2368 = vmatprep.mubr.bf16.mxu1 %v2552_v46 }
  0xe9   :  { %1055 = vmatmul.mubr.bf16.gmra.mrb[84].mxu0 %v2553_v47  ;;  %2369 = vmatmul.mubr.bf16.gmra.mrb[84].mxu1 %v2554_v48 }
  0xea   :  { %1062 = vmatprep.mubr.bf16.mxu0 %v2555_v49  ;;  %2372 = vmatprep.mubr.bf16.mxu1 %v2557_v50 }
  0xf1   :  { %1063 = vmatmul.mubr.bf16.gmra.mrb[88].mxu0 %v2558_v51  ;;  %2373 = vmatmul.mubr.bf16.gmra.mrb[88].mxu1 %v2559_v52 }
  0xf2   :  { %1070 = vmatprep.mubr.bf16.mxu0 %v2560_v53  ;;  %2376 = vmatprep.mubr.bf16.mxu1 %v2562_v54 }
  0xf9   :  { %1071 = vmatmul.mubr.bf16.gmra.mrb[92].mxu0 %v2563_v55  ;;  %2377 = vmatmul.mubr.bf16.gmra.mrb[92].mxu1 %v2564_v56 }
 0x114   :  { %v2978_v57 = vpop.f32.mrb[0].mxu0  ;;  %v2980_v58 = vpop.f32.mrb[0].mxu1 }
 0x115   :  { %v890_v59 = vpop.f32.mrb[1].mxu0  ;;  %v1082_v60 = vpop.f32.mrb[1].mxu1 }
 0x116   :  { %v2982_v61 = vpop.f32.mrb[2].mxu0  ;;  %v2984_v62 = vpop.f32.mrb[2].mxu1  ;;  %v3041_v59 = vld [vmem:[%s3271_s2] ss:$0 sm:$0xff] }
 0x117   :  { %v893_v63 = vpop.f32.mrb[3].mxu0  ;;  %v1085_v0 = vpop.f32.mrb[3].mxu1 }
 0x118   :  { %v889_v63 = vadd.f32 %v3041_v59, %v2978_v57 }
 0x11c   :  { %v896_v1 = vpop.f32.mrb[4].mxu0  ;;  %v2986_v2 = vpop.f32.mrb[4].mxu1 }
 0x11d   :  { %v898_v3 = vpop.f32.mrb[5].mxu0  ;;  %v1090_v4 = vpop.f32.mrb[5].mxu1  ;;  %v897_v60 = vadd.f32 %v3041_v59, %v896_v1 }
 0x11e   :  { %v899_v5 = vpop.f32.mrb[6].mxu0  ;;  %v2988_v6 = vpop.f32.mrb[6].mxu1 }
 0x11f   :  { %v901_v7 = vpop.f32.mrb[7].mxu0  ;;  %v1093_v8 = vpop.f32.mrb[7].mxu1  ;;  %v900_v4 = vadd.f32 %v3041_v59, %v899_v5 }
 0x124   :  { %v2990_v9 = vpop.f32.mrb[8].mxu0  ;;  %v2992_v10 = vpop.f32.mrb[8].mxu1 }
 0x125   :  { %v906_v11 = vpop.f32.mrb[9].mxu0  ;;  %v1098_v12 = vpop.f32.mrb[9].mxu1 }
 0x126   :  { %v2994_v13 = vpop.f32.mrb[10].mxu0  ;;  %v2996_v14 = vpop.f32.mrb[10].mxu1  ;;  %v892_v12 = vadd.f32 %v3041_v59, %v2982_v61 }
 0x127   :  { %v909_v15 = vpop.f32.mrb[11].mxu0  ;;  %v1101_v16 = vpop.f32.mrb[11].mxu1 }
 0x12c   :  { %v2998_v17 = vpop.f32.mrb[12].mxu0  ;;  %v3000_v18 = vpop.f32.mrb[12].mxu1 }
 0x12d   :  { %v914_v19 = vpop.f32.mrb[13].mxu0  ;;  %v1106_v20 = vpop.f32.mrb[13].mxu1  ;;  %v913_v5 = vadd.f32 %v3041_v59, %v2998_v17  ;;  %v908_v17 = vadd.f32 %v3041_v59, %v2994_v13 }
 0x12e   :  { %v3002_v21 = vpop.f32.mrb[14].mxu0  ;;  %v3004_v22 = vpop.f32.mrb[14].mxu1 }
 0x12f   :  { %v917_v23 = vpop.f32.mrb[15].mxu0  ;;  %v1109_v24 = vpop.f32.mrb[15].mxu1 }
 0x134   :  { %v3006_v25 = vpop.f32.mrb[16].mxu0  ;;  %v3008_v26 = vpop.f32.mrb[16].mxu1 }
 0x135   :  { %v922_v27 = vpop.f32.mrb[17].mxu0  ;;  %v1114_v28 = vpop.f32.mrb[17].mxu1 }
 0x136   :  { %v3010_v29 = vpop.f32.mrb[18].mxu0  ;;  %v3012_v30 = vpop.f32.mrb[18].mxu1 }
 0x137   :  { %v925_v31 = vpop.f32.mrb[19].mxu0  ;;  %v1117_v32 = vpop.f32.mrb[19].mxu1 }
 0x13c   :  { %v3014_v33 = vpop.f32.mrb[20].mxu0  ;;  %v3016_v34 = vpop.f32.mrb[20].mxu1 }
 0x13d   :  { %v930_v35 = vpop.f32.mrb[21].mxu0  ;;  %v1122_v36 = vpop.f32.mrb[21].mxu1 }
 0x13e   :  { %v3018_v37 = vpop.f32.mrb[22].mxu0  ;;  %v3020_v38 = vpop.f32.mrb[22].mxu1  ;;  %v905_v35 = vadd.f32 %v3041_v59, %v2990_v9 }
 0x13f   :  { %v933_v39 = vpop.f32.mrb[23].mxu0  ;;  %v1125_v40 = vpop.f32.mrb[23].mxu1 }
 0x140   :  { %v916_v40 = vadd.f32 %v3041_v59, %v3002_v21 }
 0x144   :  { %v3022_v41 = vpop.f32.mrb[24].mxu0  ;;  %v3024_v42 = vpop.f32.mrb[24].mxu1 }
 0x145   :  { %v938_v43 = vpop.f32.mrb[25].mxu0  ;;  %v1130_v44 = vpop.f32.mrb[25].mxu1 }
 0x146   :  { %v3026_v45 = vpop.f32.mrb[26].mxu0  ;;  %v3028_v46 = vpop.f32.mrb[26].mxu1 }
 0x147   :  { %v941_v47 = vpop.f32.mrb[27].mxu0  ;;  %v1133_v48 = vpop.f32.mrb[27].mxu1 }
 0x14c   :  { %v3030_v49 = vpop.f32.mrb[28].mxu0  ;;  %v3032_v50 = vpop.f32.mrb[28].mxu1 }
 0x14d   :  { %v946_v51 = vpop.f32.mrb[29].mxu0  ;;  %v1138_v52 = vpop.f32.mrb[29].mxu1 }
 0x14e   :  { %v3034_v53 = vpop.f32.mrb[30].mxu0  ;;  %v3036_v54 = vpop.f32.mrb[30].mxu1 }
 0x14f   :  { %v949_v55 = vpop.f32.mrb[31].mxu0  ;;  %v1141_v56 = vpop.f32.mrb[31].mxu1 }
 0x154   :  { %v3046_v0 = vpop.f32.mrb[32].mxu0  ;;  %v2318_v3 = vpop.f32.mrb[32].mxu1 }
 0x155   :  { %v1186_v7 = vadd.f32 %v2318_v3, %v897_v60  ;;  %v954_v8 = vpop.f32.mrb[33].mxu0  ;;  %v1177_v11 = vpop.f32.mrb[33].mxu1 }
 0x156   :  { %v1178_v15 = vadd.f32 %v1177_v11, %v889_v63  ;;  %v3051_v16 = vpop.f32.mrb[34].mxu0  ;;  %v2319_v19 = vpop.f32.mrb[34].mxu1  ;;  %v921_v8 = vadd.f32 %v3041_v59, %v3006_v25 }
 0x157   :  { %v1189_v20 = vadd.f32 %v2319_v19, %v900_v4  ;;  %v957_v1 = vpop.f32.mrb[35].mxu0  ;;  %v1180_v23 = vpop.f32.mrb[35].mxu1  ;;  %v1434_v57 = vmax.f32 %v1186_v7, 0.0  ;;  %v929_v7 = vadd.f32 %v3041_v59, %v3014_v33  ;;  %v932_v19 = vadd.f32 %v3041_v59, %v3018_v37 }
 0x158   :  { %v1181_v24 = vadd.f32 %v1180_v23, %v892_v12  ;;  %v1432_v28 = vmax.f32 %v1178_v15, 0.0  ;;  %v924_v33 = vadd.f32 %v3041_v59, %v3010_v29 }
 0x159   :  { %v1435_v27 = vmax.f32 %v1189_v20, 0.0 }
 0x15a   :  { %v1433_v31 = vmax.f32 %v1181_v24, 0.0 }
 0x15b   :  { %v2077_v32 = vpack.c.bf16 %v1435_v27, %v1434_v57 }
 0x15c   :  { %v2072_v61 = vpack.c.bf16 %v1433_v31, %v1432_v28  ;;  %v3057_v36 = vpop.f32.mrb[36].mxu0  ;;  %v2322_v39 = vpop.f32.mrb[36].mxu1 }
 0x15d   :  { %2229 = vst [vmem:[%s3272_s3 + $0x8] sm:$0xff] %v2077_v32   ;;  %v1202_v43 = vadd.f32 %v2322_v39, %v913_v5  ;;  %v962_v44 = vpop.f32.mrb[37].mxu0  ;;  %v1193_v47 = vpop.f32.mrb[37].mxu1  ;;  %v945_v39 = vadd.f32 %v3041_v59, %v3030_v49  ;;  %v940_v49 = vadd.f32 %v3041_v59, %v3026_v45  ;;  %v953_v45 = vadd.f32 %v3041_v59, %v3046_v0 }
 0x15e   :  { %2073 = vst [vmem:[%s3272_s3] sm:$0xff] %v2072_v61   ;;  %v1194_v9 = vadd.f32 %v1193_v47, %v905_v35  ;;  %v3069_v48 = vpop.f32.mrb[38].mxu0  ;;  %v2323_v51 = vpop.f32.mrb[38].mxu1 }
 0x15f   :  { %v1205_v52 = vadd.f32 %v2323_v51, %v916_v40  ;;  %v965_v21 = vpop.f32.mrb[39].mxu0  ;;  %v1196_v55 = vpop.f32.mrb[39].mxu1  ;;  %v1438_v60 = vmax.f32 %v1202_v43, 0.0  ;;  %v937_v40 = vadd.f32 %v3041_v59, %v3022_v41 }
 0x160   :  { %v1197_v56 = vadd.f32 %v1196_v55, %v908_v17  ;;  %v1436_v3 = vmax.f32 %v1194_v9, 0.0  ;;  %v948_v17 = vadd.f32 %v3041_v59, %v3034_v53 }
 0x161   :  { %v1439_v63 = vmax.f32 %v1205_v52, 0.0 }
 0x162   :  { %v1437_v4 = vmax.f32 %v1197_v56, 0.0 }
 0x163   :  { %v2087_v13 = vpack.c.bf16 %v1439_v63, %v1438_v60 }
 0x164   :  { %v2082_v11 = vpack.c.bf16 %v1437_v4, %v1436_v3  ;;  %v3075_v12 = vpop.f32.mrb[40].mxu0  ;;  %v2326_v15 = vpop.f32.mrb[40].mxu1 }
 0x165   :  { %2231 = vst [vmem:[%s3272_s3 + $0x18] sm:$0xff] %v2087_v13   ;;  %v1218_v20 = vadd.f32 %v2326_v15, %v929_v7  ;;  %v970_v1 = vpop.f32.mrb[41].mxu0  ;;  %v1209_v23 = vpop.f32.mrb[41].mxu1 }
 0x166   :  { %2230 = vst [vmem:[%s3272_s3 + $0x10] sm:$0xff] %v2082_v11   ;;  %v1210_v25 = vadd.f32 %v1209_v23, %v921_v8  ;;  %v3087_v24 = vpop.f32.mrb[42].mxu0  ;;  %v2327_v57 = vpop.f32.mrb[42].mxu1  ;;  %v961_v8 = vadd.f32 %v3041_v59, %v3057_v36  ;;  %v964_v1 = vadd.f32 %v3041_v59, %v3069_v48  ;;  %v956_v36 = vadd.f32 %v3041_v59, %v3051_v16 }
 0x167   :  { %v1221_v27 = vadd.f32 %v2327_v57, %v932_v19  ;;  %v973_v37 = vpop.f32.mrb[43].mxu0  ;;  %v1212_v28 = vpop.f32.mrb[43].mxu1  ;;  %v1442_v5 = vmax.f32 %v1218_v20, 0.0  ;;  %v969_v16 = vadd.f32 %v3041_v59, %v3075_v12 }
 0x168   :  { %v1213_v31 = vadd.f32 %v1212_v28, %v924_v33  ;;  %v1440_v35 = vmax.f32 %v1210_v25, 0.0 }
 0x169   :  { %v1443_v32 = vmax.f32 %v1221_v27, 0.0 }
 0x16a   :  { %v1441_v61 = vmax.f32 %v1213_v31, 0.0 }
 0x16b   :  { %v2097_v29 = vpack.c.bf16 %v1443_v32, %v1442_v5 }
 0x16c   :  { %v2092_v43 = vpack.c.bf16 %v1441_v61, %v1440_v35  ;;  %v976_v44 = vpop.f32.mrb[44].mxu0  ;;  %v2330_v47 = vpop.f32.mrb[44].mxu1 }
 0x16d   :  { %2233 = vst [vmem:[%s3272_s3 + $0x28] sm:$0xff] %v2097_v29   ;;  %v1234_v9 = vadd.f32 %v2330_v47, %v945_v39  ;;  %v978_v51 = vpop.f32.mrb[45].mxu0  ;;  %v1225_v52 = vpop.f32.mrb[45].mxu1  ;;  %v977_v39 = vadd.f32 %v3041_v59, %v976_v44 }
 0x16e   :  { %2232 = vst [vmem:[%s3272_s3 + $0x20] sm:$0xff] %v2092_v43   ;;  %v1226_v41 = vadd.f32 %v1225_v52, %v937_v40  ;;  %v979_v21 = vpop.f32.mrb[46].mxu0  ;;  %v2331_v55 = vpop.f32.mrb[46].mxu1 }
 0x16f   :  { %v1237_v56 = vadd.f32 %v2331_v55, %v948_v17  ;;  %v981_v60 = vpop.f32.mrb[47].mxu0  ;;  %v1228_v53 = vpop.f32.mrb[47].mxu1  ;;  %v1446_v3 = vmax.f32 %v1234_v9, 0.0  ;;  %v980_v17 = vadd.f32 %v3041_v59, %v979_v21 }
 0x170   :  { %v1229_v63 = vadd.f32 %v1228_v53, %v940_v49  ;;  %v1444_v7 = vmax.f32 %v1226_v41, 0.0  ;;  %v972_v49 = vadd.f32 %v3041_v59, %v3087_v24 }
 0x171   :  { %v1447_v4 = vmax.f32 %v1237_v56, 0.0 }
 0x172   :  { %v1445_v13 = vmax.f32 %v1229_v63, 0.0 }
 0x173   :  { %v2107_v11 = vpack.c.bf16 %v1447_v4, %v1446_v3 }
 0x174   :  { %v2102_v15 = vpack.c.bf16 %v1445_v13, %v1444_v7  ;;  %v984_v19 = vpop.f32.mrb[48].mxu0  ;;  %v2334_v20 = vpop.f32.mrb[48].mxu1 }
 0x175   :  { %2235 = vst [vmem:[%s3272_s3 + $0x38] sm:$0xff] %v2107_v11   ;;  %v1250_v23 = vadd.f32 %v2334_v20, %v961_v8  ;;  %v986_v33 = vpop.f32.mrb[49].mxu0  ;;  %v1241_v25 = vpop.f32.mrb[49].mxu1  ;;  %v985_v24 = vadd.f32 %v3041_v59, %v984_v19 }
 0x176   :  { %2234 = vst [vmem:[%s3272_s3 + $0x30] sm:$0xff] %v2102_v15   ;;  %v1242_v0 = vadd.f32 %v1241_v25, %v953_v45  ;;  %v987_v57 = vpop.f32.mrb[50].mxu0  ;;  %v2335_v27 = vpop.f32.mrb[50].mxu1 }
 0x177   :  { %v1253_v37 = vadd.f32 %v2335_v27, %v964_v1  ;;  %v989_v28 = vpop.f32.mrb[51].mxu0  ;;  %v1244_v48 = vpop.f32.mrb[51].mxu1  ;;  %v1450_v5 = vmax.f32 %v1250_v23, 0.0  ;;  %v988_v33 = vadd.f32 %v3041_v59, %v987_v57 }
 0x178   :  { %v1245_v31 = vadd.f32 %v1244_v48, %v956_v36  ;;  %v1448_v35 = vmax.f32 %v1242_v0, 0.0 }
 0x179   :  { %v1451_v32 = vmax.f32 %v1253_v37, 0.0 }
 0x17a   :  { %v1449_v61 = vmax.f32 %v1245_v31, 0.0 }
 0x17b   :  { %v2117_v29 = vpack.c.bf16 %v1451_v32, %v1450_v5 }
 0x17c   :  { %v2112_v40 = vpack.c.bf16 %v1449_v61, %v1448_v35  ;;  %v992_v43 = vpop.f32.mrb[52].mxu0  ;;  %v2338_v47 = vpop.f32.mrb[52].mxu1 }
 0x17d   :  { %2237 = vst [vmem:[%s3272_s3 + $0x48] sm:$0xff] %v2117_v29   ;;  %v1266_v9 = vadd.f32 %v2338_v47, %v977_v39  ;;  %v994_v51 = vpop.f32.mrb[53].mxu0  ;;  %v1257_v52 = vpop.f32.mrb[53].mxu1  ;;  %v993_v7 = vadd.f32 %v3041_v59, %v992_v43 }
 0x17e   :  { %2236 = vst [vmem:[%s3272_s3 + $0x40] sm:$0xff] %v2112_v40   ;;  %v1258_v12 = vadd.f32 %v1257_v52, %v969_v16  ;;  %v995_v44 = vpop.f32.mrb[54].mxu0  ;;  %v2339_v41 = vpop.f32.mrb[54].mxu1 }
 0x17f   :  { %v1269_v55 = vadd.f32 %v2339_v41, %v980_v17  ;;  %v997_v56 = vpop.f32.mrb[55].mxu0  ;;  %v1260_v21 = vpop.f32.mrb[55].mxu1  ;;  %v1454_v53 = vmax.f32 %v1266_v9, 0.0  ;;  %v996_v15 = vadd.f32 %v3041_v59, %v995_v44 }
 0x180   :  { %v1261_v60 = vadd.f32 %v1260_v21, %v972_v49  ;;  %v1452_v3 = vmax.f32 %v1258_v12, 0.0 }
 0x181   :  { %v1455_v63 = vmax.f32 %v1269_v55, 0.0 }
 0x182   :  { %v1453_v4 = vmax.f32 %v1261_v60, 0.0 }
 0x183   :  { %v2127_v13 = vpack.c.bf16 %v1455_v63, %v1454_v53 }
 0x184   :  { %v2122_v8 = vpack.c.bf16 %v1453_v4, %v1452_v3  ;;  %v1000_v11 = vpop.f32.mrb[56].mxu0  ;;  %v2342_v45 = vpop.f32.mrb[56].mxu1 }
 0x185   :  { %2239 = vst [vmem:[%s3272_s3 + $0x58] sm:$0xff] %v2127_v13   ;;  %v1282_v20 = vadd.f32 %v2342_v45, %v993_v7  ;;  %v1002_v1 = vpop.f32.mrb[57].mxu0  ;;  %v1273_v23 = vpop.f32.mrb[57].mxu1  ;;  %v1001_v61 = vadd.f32 %v3041_v59, %v1000_v11 }
 0x186   :  { %2238 = vst [vmem:[%s3272_s3 + $0x50] sm:$0xff] %v2122_v8   ;;  %v1274_v25 = vadd.f32 %v1273_v23, %v985_v24  ;;  %v1003_v19 = vpop.f32.mrb[58].mxu0  ;;  %v2343_v36 = vpop.f32.mrb[58].mxu1 }
 0x187   :  { %v1285_v0 = vadd.f32 %v2343_v36, %v996_v15  ;;  %v1005_v27 = vpop.f32.mrb[59].mxu0  ;;  %v1276_v37 = vpop.f32.mrb[59].mxu1  ;;  %v1458_v48 = vmax.f32 %v1282_v20, 0.0  ;;  %v1004_v47 = vadd.f32 %v3041_v59, %v1003_v19 }
 0x188   :  { %v1277_v28 = vadd.f32 %v1276_v37, %v988_v33  ;;  %v1456_v5 = vmax.f32 %v1274_v25, 0.0 }
 0x189   :  { %v1459_v31 = vmax.f32 %v1285_v0, 0.0 }
 0x18a   :  { %v1457_v32 = vmax.f32 %v1277_v28, 0.0 }
 0x18b   :  { %v2137_v35 = vpack.c.bf16 %v1459_v31, %v1458_v48 }
 0x18c   :  { %v2132_v39 = vpack.c.bf16 %v1457_v32, %v1456_v5  ;;  %v1008_v57 = vpop.f32.mrb[60].mxu0  ;;  %v2346_v29 = vpop.f32.mrb[60].mxu1 }
 0x18d   :  { %2241 = vst [vmem:[%s3272_s3 + $0x68] sm:$0xff] %v2137_v35   ;;  %v1009_v16 = vadd.f32 %v3041_v59, %v1008_v57  ;;  %v1010_v40 = vpop.f32.mrb[61].mxu0  ;;  %v1289_v43 = vpop.f32.mrb[61].mxu1 }
 0x18e   :  { %2240 = vst [vmem:[%s3272_s3 + $0x60] sm:$0xff] %v2132_v39   ;;  %v1290_v17 = vadd.f32 %v1289_v43, %v1001_v61  ;;  %v1011_v9 = vpop.f32.mrb[62].mxu0  ;;  %v2347_v51 = vpop.f32.mrb[62].mxu1 }
 0x18f   :  { %v1298_v52 = vadd.f32 %v2346_v29, %v1009_v16  ;;  %v1012_v49 = vadd.f32 %v3041_v59, %v1011_v9  ;;  %v1013_v12 = vpop.f32.mrb[63].mxu0  ;;  %v1292_v44 = vpop.f32.mrb[63].mxu1 }
 0x190   :  { %v1293_v41 = vadd.f32 %v1292_v44, %v1004_v47  ;;  %v1460_v56 = vmax.f32 %v1290_v17, 0.0 }
 0x191   :  { %v1301_v55 = vadd.f32 %v2347_v51, %v1012_v49  ;;  %v1462_v60 = vmax.f32 %v1298_v52, 0.0 }
 0x192   :  { %v1461_v21 = vmax.f32 %v1293_v41, 0.0 }
 0x193   :  { %v1463_v53 = vmax.f32 %v1301_v55, 0.0 }
 0x194   :  { %v2142_v63 = vpack.c.bf16 %v1461_v21, %v1460_v56  ;;  %v1016_v3 = vpop.f32.mrb[64].mxu0  ;;  %v2350_v4 = vpop.f32.mrb[64].mxu1 }
 0x195   :  { %v2147_v7 = vpack.c.bf16 %v1463_v53, %v1462_v60  ;;  %v1017_v13 = vadd.f32 %v3041_v59, %v1016_v3  ;;  %v1018_v24 = vpop.f32.mrb[65].mxu0  ;;  %v1305_v8 = vpop.f32.mrb[65].mxu1 }
 0x196   :  { %2242 = vst [vmem:[%s3272_s3 + $0x70] sm:$0xff] %v2142_v63   ;;  %v1019_v11 = vpop.f32.mrb[66].mxu0  ;;  %v2351_v45 = vpop.f32.mrb[66].mxu1 }
 0x197   :  { %2243 = vst [vmem:[%s3272_s3 + $0x78] sm:$0xff] %v2147_v7   ;;  %v1306_v15 = vadd.f32 %v1305_v8, %v1017_v13  ;;  %v1020_v20 = vadd.f32 %v3041_v59, %v1019_v11  ;;  %v1021_v1 = vpop.f32.mrb[67].mxu0  ;;  %v1308_v23 = vpop.f32.mrb[67].mxu1 }
 0x199   :  { %v1309_v33 = vadd.f32 %v1308_v23, %v1020_v20  ;;  %v1464_v25 = vmax.f32 %v1306_v15, 0.0  ;;  %v1089_v23 = vadd.f32 %v3041_v59, %v2986_v2 }
 0x19b   :  { %v1465_v19 = vmax.f32 %v1309_v33, 0.0 }
 0x19c   :  { %v1024_v36 = vpop.f32.mrb[68].mxu0  ;;  %v2354_v0 = vpop.f32.mrb[68].mxu1 }
 0x19d   :  { %v2152_v27 = vpack.c.bf16 %v1465_v19, %v1464_v25  ;;  %v1025_v37 = vadd.f32 %v3041_v59, %v1024_v36  ;;  %v1026_v28 = vpop.f32.mrb[69].mxu0  ;;  %v1321_v48 = vpop.f32.mrb[69].mxu1  ;;  %v1081_v19 = vadd.f32 %v3041_v59, %v2980_v58 }
 0x19e   :  { %v1027_v31 = vpop.f32.mrb[70].mxu0  ;;  %v2355_v5 = vpop.f32.mrb[70].mxu1 }
 0x19f   :  { %2244 = vst [vmem:[%s3272_s3 + $0x80] sm:$0xff] %v2152_v27   ;;  %v1314_v32 = vadd.f32 %v2350_v4, %v1025_v37  ;;  %v1028_v35 = vadd.f32 %v3041_v59, %v1027_v31  ;;  %v1029_v61 = vpop.f32.mrb[71].mxu0  ;;  %v1324_v39 = vpop.f32.mrb[71].mxu1  ;;  %v1092_v37 = vadd.f32 %v3041_v59, %v2988_v6 }
 0x1a1   :  { %v1317_v57 = vadd.f32 %v2351_v45, %v1028_v35  ;;  %v1466_v29 = vmax.f32 %v1314_v32, 0.0 }
 0x1a3   :  { %v1467_v16 = vmax.f32 %v1317_v57, 0.0 }
 0x1a4   :  { %v1032_v40 = vpop.f32.mrb[72].mxu0  ;;  %v3162_v43 = vpop.f32.mrb[72].mxu1 }
 0x1a5   :  { %v2157_v47 = vpack.c.bf16 %v1467_v16, %v1466_v29  ;;  %v1033_v17 = vadd.f32 %v3041_v59, %v1032_v40  ;;  %v1034_v9 = vpop.f32.mrb[73].mxu0  ;;  %v1337_v51 = vpop.f32.mrb[73].mxu1 }
 0x1a6   :  { %v1035_v52 = vpop.f32.mrb[74].mxu0  ;;  %v3165_v49 = vpop.f32.mrb[74].mxu1 }
 0x1a7   :  { %2245 = vst [vmem:[%s3272_s3 + $0x88] sm:$0xff] %v2157_v47   ;;  %v1322_v12 = vadd.f32 %v1321_v48, %v1033_v17  ;;  %v1036_v44 = vadd.f32 %v3041_v59, %v1035_v52  ;;  %v1037_v41 = vpop.f32.mrb[75].mxu0  ;;  %v1340_v55 = vpop.f32.mrb[75].mxu1 }
 0x1a9   :  { %v1325_v56 = vadd.f32 %v1324_v39, %v1036_v44  ;;  %v1468_v21 = vmax.f32 %v1322_v12, 0.0 }
 0x1ab   :  { %v1469_v60 = vmax.f32 %v1325_v56, 0.0 }
 0x1ac   :  { %v1040_v53 = vpop.f32.mrb[76].mxu0  ;;  %v3171_v63 = vpop.f32.mrb[76].mxu1 }
 0x1ad   :  { %v2162_v3 = vpack.c.bf16 %v1469_v60, %v1468_v21  ;;  %v1041_v4 = vadd.f32 %v3041_v59, %v1040_v53  ;;  %v1042_v7 = vpop.f32.mrb[77].mxu0  ;;  %v3174_v13 = vpop.f32.mrb[77].mxu1  ;;  %v1108_v53 = vadd.f32 %v3041_v59, %v3004_v22 }
 0x1ae   :  { %v1043_v24 = vpop.f32.mrb[78].mxu0  ;;  %v3176_v8 = vpop.f32.mrb[78].mxu1 }
 0x1af   :  { %2246 = vst [vmem:[%s3272_s3 + $0x90] sm:$0xff] %v2162_v3   ;;  %v1330_v11 = vadd.f32 %v2354_v0, %v1041_v4  ;;  %v1044_v45 = vadd.f32 %v3041_v59, %v1043_v24  ;;  %v1045_v15 = vpop.f32.mrb[79].mxu0  ;;  %v3182_v20 = vpop.f32.mrb[79].mxu1  ;;  %v1100_v24 = vadd.f32 %v3041_v59, %v2996_v14 }
 0x1b1   :  { %v1333_v1 = vadd.f32 %v2355_v5, %v1044_v45  ;;  %v1470_v33 = vmax.f32 %v1330_v11, 0.0  ;;  %v1084_v5 = vadd.f32 %v3041_v59, %v2984_v62  ;;  %v1105_v62 = vadd.f32 %v3041_v59, %v3000_v18 }
 0x1b3   :  { %v1471_v25 = vmax.f32 %v1333_v1, 0.0 }
 0x1b4   :  { %v1048_v36 = vpop.f32.mrb[80].mxu0  ;;  %v2366_v27 = vpop.f32.mrb[80].mxu1 }
 0x1b5   :  { %v2167_v0 = vpack.c.bf16 %v1471_v25, %v1470_v33  ;;  %v1049_v28 = vadd.f32 %v3041_v59, %v1048_v36  ;;  %v1378_v48 = vadd.f32 %v2366_v27, %v1089_v23  ;;  %v1050_v31 = vpop.f32.mrb[81].mxu0  ;;  %v1369_v32 = vpop.f32.mrb[81].mxu1 }
 0x1b6   :  { %v1370_v2 = vadd.f32 %v1369_v32, %v1081_v19  ;;  %v1051_v35 = vpop.f32.mrb[82].mxu0  ;;  %v2367_v61 = vpop.f32.mrb[82].mxu1 }
 0x1b7   :  { %2247 = vst [vmem:[%s3272_s3 + $0x98] sm:$0xff] %v2167_v0   ;;  %v1338_v58 = vadd.f32 %v1337_v51, %v1049_v28  ;;  %v1052_v39 = vadd.f32 %v3041_v59, %v1051_v35  ;;  %v1381_v6 = vadd.f32 %v2367_v61, %v1092_v37  ;;  %v1053_v57 = vpop.f32.mrb[83].mxu0  ;;  %v1372_v29 = vpop.f32.mrb[83].mxu1  ;;  %v1482_v40 = vmax.f32 %v1378_v48, 0.0 }
 0x1b8   :  { %v1373_v16 = vadd.f32 %v1372_v29, %v1084_v5  ;;  %v1480_v9 = vmax.f32 %v1370_v2, 0.0  ;;  %v1097_v51 = vadd.f32 %v3041_v59, %v2992_v10  ;;  %v1121_v0 = vadd.f32 %v3041_v59, %v3016_v34 }
 0x1b9   :  { %v1341_v47 = vadd.f32 %v1340_v55, %v1052_v39  ;;  %v1483_v17 = vmax.f32 %v1381_v6, 0.0  ;;  %v1472_v12 = vmax.f32 %v1338_v58, 0.0  ;;  %v1124_v35 = vadd.f32 %v3041_v59, %v3020_v38 }
 0x1ba   :  { %v1481_v52 = vmax.f32 %v1373_v16, 0.0  ;;  %v1116_v6 = vadd.f32 %v3041_v59, %v3012_v30 }
 0x1bb   :  { %v1473_v44 = vmax.f32 %v1341_v47, 0.0  ;;  %v2197_v41 = vpack.c.bf16 %v1483_v17, %v1482_v40 }
 0x1bc   :  { %v2192_v56 = vpack.c.bf16 %v1481_v52, %v1480_v9  ;;  %v1056_v21 = vpop.f32.mrb[84].mxu0  ;;  %v2370_v60 = vpop.f32.mrb[84].mxu1 }
 0x1bd   :  { %v2172_v3 = vpack.c.bf16 %v1473_v44, %v1472_v12  ;;  %2253 = vst [vmem:[%s3272_s3 + $0xc8] sm:$0xff] %v2197_v41   ;;  %v1057_v55 = vadd.f32 %v3041_v59, %v1056_v21  ;;  %v1394_v18 = vadd.f32 %v2370_v60, %v1105_v62  ;;  %v1058_v4 = vpop.f32.mrb[85].mxu0  ;;  %v1385_v7 = vpop.f32.mrb[85].mxu1  ;;  %v1137_v41 = vadd.f32 %v3041_v59, %v3032_v50 }
 0x1be   :  { %2252 = vst [vmem:[%s3272_s3 + $0xc0] sm:$0xff] %v2192_v56   ;;  %v1386_v10 = vadd.f32 %v1385_v7, %v1097_v51  ;;  %v1059_v11 = vpop.f32.mrb[86].mxu0  ;;  %v2371_v22 = vpop.f32.mrb[86].mxu1 }
 0x1bf   :  { %2248 = vst [vmem:[%s3272_s3 + $0xa0] sm:$0xff] %v2172_v3   ;;  %v1346_v45 = vadd.f32 %v3162_v43, %v1057_v55  ;;  %v1060_v15 = vadd.f32 %v3041_v59, %v1059_v11  ;;  %v1397_v1 = vadd.f32 %v2371_v22, %v1108_v53  ;;  %v1061_v23 = vpop.f32.mrb[87].mxu0  ;;  %v1388_v33 = vpop.f32.mrb[87].mxu1  ;;  %v1486_v14 = vmax.f32 %v1394_v18, 0.0 }
 0x1c0   :  { %v1389_v25 = vadd.f32 %v1388_v33, %v1100_v24  ;;  %v1484_v27 = vmax.f32 %v1386_v10, 0.0  ;;  %v1113_v43 = vadd.f32 %v3041_v59, %v3008_v26  ;;  %v1140_v55 = vadd.f32 %v3041_v59, %v3036_v54 }
 0x1c1   :  { %v1349_v19 = vadd.f32 %v3165_v49, %v1060_v15  ;;  %v1487_v36 = vmax.f32 %v1397_v1, 0.0  ;;  %v1474_v28 = vmax.f32 %v1346_v45, 0.0  ;;  %v1132_v24 = vadd.f32 %v3041_v59, %v3028_v46 }
 0x1c2   :  { %v1485_v37 = vmax.f32 %v1389_v25, 0.0 }
 0x1c3   :  { %v1475_v48 = vmax.f32 %v1349_v19, 0.0  ;;  %v2207_v31 = vpack.c.bf16 %v1487_v36, %v1486_v14 }
 0x1c4   :  { %v2202_v32 = vpack.c.bf16 %v1485_v37, %v1484_v27  ;;  %v1064_v5 = vpop.f32.mrb[88].mxu0  ;;  %v2374_v2 = vpop.f32.mrb[88].mxu1 }
 0x1c5   :  { %v2177_v61 = vpack.c.bf16 %v1475_v48, %v1474_v28  ;;  %2255 = vst [vmem:[%s3272_s3 + $0xd8] sm:$0xff] %v2207_v31   ;;  %v1065_v49 = vadd.f32 %v3041_v59, %v1064_v5  ;;  %v1410_v34 = vadd.f32 %v2374_v2, %v1121_v0  ;;  %v1066_v58 = vpop.f32.mrb[89].mxu0  ;;  %v1401_v39 = vpop.f32.mrb[89].mxu1 }
 0x1c6   :  { %2254 = vst [vmem:[%s3272_s3 + $0xd0] sm:$0xff] %v2202_v32   ;;  %v1402_v26 = vadd.f32 %v1401_v39, %v1113_v43  ;;  %v1067_v57 = vpop.f32.mrb[90].mxu0  ;;  %v2375_v38 = vpop.f32.mrb[90].mxu1 }
 0x1c7   :  { %2249 = vst [vmem:[%s3272_s3 + $0xa8] sm:$0xff] %v2177_v61   ;;  %v1354_v29 = vadd.f32 %v3174_v13, %v1065_v49  ;;  %v1068_v16 = vadd.f32 %v3041_v59, %v1067_v57  ;;  %v1413_v40 = vadd.f32 %v2375_v38, %v1124_v35  ;;  %v1069_v47 = vpop.f32.mrb[91].mxu0  ;;  %v1404_v17 = vpop.f32.mrb[91].mxu1  ;;  %v1490_v30 = vmax.f32 %v1410_v34, 0.0 }
 0x1c8   :  { %v1405_v9 = vadd.f32 %v1404_v17, %v1116_v6  ;;  %v1488_v12 = vmax.f32 %v1402_v26, 0.0  ;;  %v1129_v13 = vadd.f32 %v3041_v59, %v3024_v42 }
 0x1c9   :  { %v1357_v52 = vadd.f32 %v3182_v20, %v1068_v16  ;;  %v1491_v62 = vmax.f32 %v1413_v40, 0.0  ;;  %v1476_v51 = vmax.f32 %v1354_v29, 0.0 }
 0x1ca   :  { %v1489_v44 = vmax.f32 %v1405_v9, 0.0 }
 0x1cb   :  { %v1477_v56 = vmax.f32 %v1357_v52, 0.0  ;;  %v2217_v21 = vpack.c.bf16 %v1491_v62, %v1490_v30 }
 0x1cc   :  { %v2212_v60 = vpack.c.bf16 %v1489_v44, %v1488_v12  ;;  %v1072_v53 = vpop.f32.mrb[92].mxu0  ;;  %v2378_v3 = vpop.f32.mrb[92].mxu1 }
 0x1cd   :  { %v2182_v18 = vpack.c.bf16 %v1477_v56, %v1476_v51  ;;  %2257 = vst [vmem:[%s3272_s3 + $0xe8] sm:$0xff] %v2217_v21   ;;  %v1073_v20 = vadd.f32 %v3041_v59, %v1072_v53  ;;  %v1426_v50 = vadd.f32 %v2378_v3, %v1137_v41  ;;  %v1074_v4 = vpop.f32.mrb[93].mxu0  ;;  %v1417_v7 = vpop.f32.mrb[93].mxu1 }
 0x1ce   :  { %2256 = vst [vmem:[%s3272_s3 + $0xe0] sm:$0xff] %v2212_v60   ;;  %v1418_v42 = vadd.f32 %v1417_v7, %v1129_v13  ;;  %v1075_v10 = vpop.f32.mrb[94].mxu0  ;;  %v2379_v54 = vpop.f32.mrb[94].mxu1 }
 0x1cf   :  { %2250 = vst [vmem:[%s3272_s3 + $0xb0] sm:$0xff] %v2182_v18   ;;  %v1362_v11 = vadd.f32 %v3171_v63, %v1073_v20  ;;  %v1076_v22 = vadd.f32 %v3041_v59, %v1075_v10  ;;  %v1429_v45 = vadd.f32 %v2379_v54, %v1140_v55  ;;  %v1077_v15 = vpop.f32.mrb[95].mxu0  ;;  %v1420_v1 = vpop.f32.mrb[95].mxu1  ;;  %v1494_v46 = vmax.f32 %v1426_v50, 0.0 }
 0x1d0   :  { %v1421_v23 = vadd.f32 %v1420_v1, %v1132_v24  ;;  %v1492_v14 = vmax.f32 %v1418_v42, 0.0 }
 0x1d1   :  { %v1365_v33 = vadd.f32 %v3176_v8, %v1076_v22  ;;  %v1495_v25 = vmax.f32 %v1429_v45, 0.0  ;;  %v1478_v36 = vmax.f32 %v1362_v11, 0.0 }
 0x1d2   :  { %v1493_v19 = vmax.f32 %v1421_v23, 0.0 }
 0x1d3   :  { %v1479_v27 = vmax.f32 %v1365_v33, 0.0  ;;  %v2227_v37 = vpack.c.bf16 %v1495_v25, %v1494_v46 }
 0x1d4   :  { %v2222_v0 = vpack.c.bf16 %v1493_v19, %v1492_v14 }
 0x1d5   :  { %v2187_v28 = vpack.c.bf16 %v1479_v27, %v1478_v36  ;;  %2259 = vst [vmem:[%s3272_s3 + $0xf8] sm:$0xff] %v2227_v37  }
 0x1d6   :  { %2258 = vst [vmem:[%s3272_s3 + $0xf0] sm:$0xff] %v2222_v0  }
 0x1d7   :  { %2251 = vst [vmem:[%s3272_s3 + $0xb8] sm:$0xff] %v2187_v28  }

// kernel: simple_pose_resnet_forward.7
= control target key start
LH: loop header
LB: loop body
LE: loop exit
PB: predicated region body
PF: predicated region fallthrough
CT: control target
= control target key end

     0   :  { %s2815_s18 = smov 0   ;;  %s3427_s0 = inlined_call_operand.vmem [shape: bf16[2048,384], index: 0, kind: input, shape index: {}]   ;;  %s3428_s1 = inlined_call_operand.vmem [shape: bf16[384,128], index: 1, kind: input, shape index: {}]   ;;  %s3429_s2 = inlined_call_operand.vmem [shape: f32[1,128], index: 2, kind: input, shape index: {}]   ;;  %s3430_s3 = inlined_call_operand.vmem [shape: bf16[128,128], index: 3, kind: input, shape index: {}]   ;;  %s3431_s4 = inlined_call_operand.vmem [shape: f32[1,128], index: 4, kind: input, shape index: {}]   ;;  %s3432_s5 = inlined_call_operand.vmem [shape: f32[2048,128], index: 5, kind: output, shape index: {}]  }
   0x1 LB: > { %s2225_s19 = sadd.s32 4294967295, %s2782_s18   ;;  %p2229_p0 = scmp.ge.s32.totalorder %s2782_s18, 1  ;;  %s2782_s18 = sphi %s2815_s18, %s15_s18  }
   0x2   : > { %p189_p1 = scmp.lt.s32.totalorder %s2782_s18, 5 }
   0x4   : > { %p190_p2 = pnand %p2229_p0, %p189_p1 }
   0x5   : > { %v2616_v0 = vld [vmem:[%s3428_s1] sm:$0xff] (!%p190_p2)   ;;  %v2784_v1 = vmov (!%p190_p2), 0   ;;  %v2617_v2 = vld [vmem:[%s3428_s1 + $0x8] sm:$0xff] (!%p190_p2)   ;;  %v2618_v3 = vld [vmem:[%s3428_s1 + $0x10] sm:$0xff] (!%p190_p2)   ;;  %s2230_s26 = sshll.u32 (!%p190_p2), %s2225_s19, 6 }
   0x6   : > { %193 = sbr.rel (%p190_p2) target bundleno = 758 (0x2f6), region = 40  ;;  %1071 = vmatprep.subr.bf16.mxu0 (!%p190_p2), %v2784_v1  ;;  %v2625_v4 = vld [vmem:[%s3428_s1 + $0x80] sm:$0xff] (!%p190_p2)   ;;  %v2619_v5 = vld [vmem:[%s3428_s1 + $0x18] sm:$0xff] (!%p190_p2)   ;;  %p219_p3 = scmp.lt.s32.totalorder (!%p190_p2), %s2230_s26, 255  ;;  %v2627_v6 = vld [vmem:[%s3428_s1 + $0x88] sm:$0xff] (!%p190_p2)  }
   0x7   : > { %1072 = vmatpush1.bf16.msra.mxu0 (!%p190_p2), %v2616_v0  ;;  %2446 = vmatprep.subr.bf16.mxu1 (!%p190_p2), %v2625_v4  ;;  %v2629_v7 = vld [vmem:[%s3428_s1 + $0x90] sm:$0xff] (!%p190_p2)   ;;  %v2620_v8 = vld [vmem:[%s3428_s1 + $0x20] sm:$0xff] (!%p190_p2)   ;;  %v2631_v9 = vld [vmem:[%s3428_s1 + $0x98] sm:$0xff] (!%p190_p2)  }
   0x8   : > { %1073 = vmatprep.subr.bf16.mxu0 (!%p190_p2), %v2784_v1  ;;  %2447 = vmatpush3.bf16.msra.mxu1 (!%p190_p2), %v2625_v4  ;;  %v2621_v10 = vld [vmem:[%s3428_s1 + $0x28] sm:$0xff] (!%p190_p2)   ;;  %v2633_v11 = vld [vmem:[%s3428_s1 + $0xa0] sm:$0xff] (!%p190_p2)   ;;  %v2622_v12 = vld [vmem:[%s3428_s1 + $0x30] sm:$0xff] (!%p190_p2)  }
   0x9   : > { %2448 = vmatprep.subr.bf16.mxu1 (!%p190_p2), %v2627_v6  ;;  %v2623_v13 = vld [vmem:[%s3428_s1 + $0x38] sm:$0xff] (!%p190_p2)   ;;  %v2635_v14 = vld [vmem:[%s3428_s1 + $0xa8] sm:$0xff] (!%p190_p2)   ;;  %v2637_v17 = vld [vmem:[%s3428_s1 + $0xb0] sm:$0xff] (!%p190_p2)  }
   0xa   : > { %v2624_v18 = vld [vmem:[%s3428_s1 + $0x40] sm:$0xff] (!%p190_p2)   ;;  %v2639_v19 = vld [vmem:[%s3428_s1 + $0xb8] sm:$0xff] (!%p190_p2)   ;;  %v2626_v20 = vld [vmem:[%s3428_s1 + $0x48] sm:$0xff] (!%p190_p2)  }
   0xb   : > { %1074 = vmatpush1.bf16.msra.mxu0 (!%p190_p2), %v2617_v2  ;;  %v2628_v21 = vld [vmem:[%s3428_s1 + $0x50] sm:$0xff] (!%p190_p2)   ;;  %v2630_v24 = vld [vmem:[%s3428_s1 + $0x58] sm:$0xff] (!%p190_p2)   ;;  %v2632_v25 = vld [vmem:[%s3428_s1 + $0x60] sm:$0xff] (!%p190_p2)  }
   0xc   : > { %1075 = vmatprep.subr.bf16.mxu0 (!%p190_p2), %v2784_v1  ;;  %2449 = vmatpush3.bf16.msra.mxu1 (!%p190_p2), %v2627_v6  ;;  %v2634_v28 = vld [vmem:[%s3428_s1 + $0x68] sm:$0xff] (!%p190_p2)   ;;  %v2636_v29 = vld [vmem:[%s3428_s1 + $0x70] sm:$0xff] (!%p190_p2)   ;;  %v2638_v32 = vld [vmem:[%s3428_s1 + $0x78] sm:$0xff] (!%p190_p2)  }
   0xd   : > { %s3434_s26 = smov (!%p219_p3, %s2230_s26), 255  ;;  %2450 = vmatprep.subr.bf16.mxu1 %v2629_v7 }
   0xe   : > { %s2606_s16 = smul.u32 12, %s3434_s26 }
   0xf   : > { %1076 = vmatpush1.bf16.msra.mxu0 %v2618_v3 }
  0x10   : > { %1077 = vmatprep.subr.bf16.mxu0 %v2784_v1  ;;  %2451 = vmatpush3.bf16.msra.mxu1 %v2629_v7  ;;  %s2871_s24 = scalar_lea.vmem %s3427_s0, %s2606_s16 }
  0x11   : > { %2452 = vmatprep.subr.bf16.mxu1 %v2631_v9  ;;  %v2642_v15 = vld [vmem:[%s2871_s24 + $0x4] ss:$12 sps:$4 sm:$0xff]   ;;  %v2643_v16 = vld [vmem:[%s2871_s24 + $0x8] ss:$12 sps:$4 sm:$0xff]   ;;  %v2644_v22 = vld [vmem:[%s2871_s24 + $0x20] ss:$12 sps:$4 sm:$0xff]  }
  0x12   : > { %1103 = vmatprep.mubr.bf16.mxu0 %v2642_v15  ;;  %2462 = vmatprep.mubr.bf16.mxu1 %v2643_v16  ;;  %v2651_v23 = vld [vmem:[%s2871_s24 + $0x38] ss:$12 sps:$4 sm:$0xff]   ;;  %v2652_v26 = vld [vmem:[%s2871_s24 + $0x50] ss:$12 sps:$4 sm:$0xff]   ;;  %v2659_v27 = vld [vmem:[%s2871_s24 + $0x68] ss:$12 sps:$4 sm:$0xff]  }
  0x13   : > { %1078 = vmatpush1.bf16.msra.mxu0 %v2619_v5  ;;  %v2660_v30 = vld [vmem:[%s2871_s24 + $0x80] ss:$12 sps:$4 sm:$0xff]   ;;  %v2667_v31 = vld [vmem:[%s2871_s24 + $0x98] ss:$12 sps:$4 sm:$0xff]   ;;  %v2645_v34 = vld [vmem:[%s2871_s24 + $0x1c] ss:$12 sps:$4 sm:$0xff]  }
  0x14   : > { %1079 = vmatprep.subr.bf16.mxu0 %v2784_v1  ;;  %2453 = vmatpush3.bf16.msra.mxu1 %v2631_v9  ;;  %v2640_v33 = vld [vmem:[%s2871_s24] ss:$12 sps:$4 sm:$0xff]   ;;  %v2668_v35 = vld [vmem:[%s2871_s24 + $0xb0] ss:$12 sps:$4 sm:$0xff]   ;;  %v2675_v36 = vld [vmem:[%s2871_s24 + $0xc8] ss:$12 sps:$4 sm:$0xff]  }
  0x15   : > { %2454 = vmatprep.subr.bf16.mxu1 %v2633_v11  ;;  %v2647_v37 = vld [vmem:[%s2871_s24 + $0x18] ss:$12 sps:$4 sm:$0xff]   ;;  %v2648_v38 = vld [vmem:[%s2871_s24 + $0x34] ss:$12 sps:$4 sm:$0xff]   ;;  %v2650_v41 = vld [vmem:[%s2871_s24 + $0x30] ss:$12 sps:$4 sm:$0xff]  }
  0x16   : > { %v2676_v39 = vld [vmem:[%s2871_s24 + $0xe0] ss:$12 sps:$4 sm:$0xff]   ;;  %v2683_v40 = vld [vmem:[%s2871_s24 + $0xf8] ss:$12 sps:$4 sm:$0xff]   ;;  %v2684_v43 = vld [vmem:[%s2871_s24 + $0x110] ss:$12 sps:$4 sm:$0xff]  }
  0x17   : > { %1080 = vmatpush1.bf16.msra.mxu0 %v2620_v8  ;;  %v2653_v42 = vld [vmem:[%s2871_s24 + $0x4c] ss:$12 sps:$4 sm:$0xff]   ;;  %v2691_v44 = vld [vmem:[%s2871_s24 + $0x128] ss:$12 sps:$4 sm:$0xff]   ;;  %v2656_v46 = vld [vmem:[%s2871_s24 + $0x64] ss:$12 sps:$4 sm:$0xff]  }
  0x18   : > { %1081 = vmatprep.subr.bf16.mxu0 %v2784_v1  ;;  %2455 = vmatpush3.bf16.msra.mxu1 %v2633_v11  ;;  %v2655_v45 = vld [vmem:[%s2871_s24 + $0x48] ss:$12 sps:$4 sm:$0xff]   ;;  %v2692_v47 = vld [vmem:[%s2871_s24 + $0x140] ss:$12 sps:$4 sm:$0xff]   ;;  %v2699_v48 = vld [vmem:[%s2871_s24 + $0x158] ss:$12 sps:$4 sm:$0xff]  }
  0x19   : > { %2456 = vmatprep.subr.bf16.mxu1 %v2635_v14  ;;  %v2658_v49 = vld [vmem:[%s2871_s24 + $0x60] ss:$12 sps:$4 sm:$0xff]   ;;  %v2661_v50 = vld [vmem:[%s2871_s24 + $0x7c] ss:$12 sps:$4 sm:$0xff]   ;;  %v2663_v53 = vld [vmem:[%s2871_s24 + $0x78] ss:$12 sps:$4 sm:$0xff]  }
  0x1a   : > { %v2700_v51 = vld [vmem:[%s2871_s24 + $0x170] ss:$12 sps:$4 sm:$0xff]   ;;  %v2707_v52 = vld [vmem:[%s2871_s24 + $0x188] ss:$12 sps:$4 sm:$0xff]   ;;  %v2708_v55 = vld [vmem:[%s2871_s24 + $0x1a0] ss:$12 sps:$4 sm:$0xff]  }
  0x1b   : > { %1082 = vmatpush1.bf16.msra.mxu0 %v2621_v10  ;;  %v2664_v54 = vld [vmem:[%s2871_s24 + $0x94] ss:$12 sps:$4 sm:$0xff]   ;;  %v2715_v56 = vld [vmem:[%s2871_s24 + $0x1b8] ss:$12 sps:$4 sm:$0xff]   ;;  %v2666_v57 = vld [vmem:[%s2871_s24 + $0x90] ss:$12 sps:$4 sm:$0xff]  }
  0x1c   : > { %1083 = vmatprep.subr.bf16.mxu0 %v2784_v1  ;;  %2457 = vmatpush3.bf16.msra.mxu1 %v2635_v14  ;;  %v2669_v58 = vld [vmem:[%s2871_s24 + $0xac] ss:$12 sps:$4 sm:$0xff]   ;;  %v2716_v59 = vld [vmem:[%s2871_s24 + $0x1d0] ss:$12 sps:$4 sm:$0xff]   ;;  %v2723_v60 = vld [vmem:[%s2871_s24 + $0x1e8] ss:$12 sps:$4 sm:$0xff]  }
  0x1d   : > { %2458 = vmatprep.subr.bf16.mxu1 %v2637_v17  ;;  %v2671_v61 = vld [vmem:[%s2871_s24 + $0xa8] ss:$12 sps:$4 sm:$0xff]   ;;  %v2672_v62 = vld [vmem:[%s2871_s24 + $0xc4] ss:$12 sps:$4 sm:$0xff]   ;;  %v2724_v63 = vld [vmem:[%s2871_s24 + $0x200] ss:$12 sps:$4 sm:$0xff]  }
  0x1e   : > { %v2731_v0 = vld [vmem:[%s2871_s24 + $0x218] ss:$12 sps:$4 sm:$0xff]   ;;  %v2677_v2 = vld [vmem:[%s2871_s24 + $0xdc] ss:$12 sps:$4 sm:$0xff]   ;;  %v2680_v7 = vld [vmem:[%s2871_s24 + $0xf4] ss:$12 sps:$4 sm:$0xff]  }
  0x1f   : > { %1084 = vmatpush1.bf16.msra.mxu0 %v2622_v12  ;;  %v2732_v3 = vld [vmem:[%s2871_s24 + $0x230] ss:$12 sps:$4 sm:$0xff]   ;;  %v2739_v4 = vld [vmem:[%s2871_s24 + $0x248] ss:$12 sps:$4 sm:$0xff]   ;;  %v2741_v5 = vld [vmem:[%s3430_s3] sm:$0xff]  }
  0x20   : > { %1085 = vmatprep.subr.bf16.mxu0 %v2784_v1  ;;  %2459 = vmatpush3.bf16.msra.mxu1 %v2637_v17  ;;  %v2679_v6 = vld [vmem:[%s2871_s24 + $0xd8] ss:$12 sps:$4 sm:$0xff]   ;;  %v2740_v8 = vld [vmem:[%s2871_s24 + $0x260] ss:$12 sps:$4 sm:$0xff]   ;;  %v2748_v11 = vld [vmem:[%s3430_s3 + $0x10] sm:$0xff]  }
  0x21   : > { %2460 = vmatprep.subr.bf16.mxu1 %v2639_v19  ;;  %v2745_v9 = vld [vmem:[%s3430_s3 + $0x8] sm:$0xff]   ;;  %v2746_v10 = vld [vmem:[%s2871_s24 + $0x278] ss:$12 sps:$4 sm:$0xff]   ;;  %v2682_v12 = vld [vmem:[%s2871_s24 + $0xf0] ss:$12 sps:$4 sm:$0xff]  }
  0x22   : > { %v2747_v14 = vld [vmem:[%s2871_s24 + $0x290] ss:$12 sps:$4 sm:$0xff]   ;;  %v2753_v16 = vld [vmem:[%s2871_s24 + $0x2a8] ss:$12 sps:$4 sm:$0xff]  }
  0x23   : > { %1086 = vmatpush1.bf16.msra.mxu0 %v2623_v13  ;;  %v2685_v13 = vld [vmem:[%s2871_s24 + $0x10c] ss:$12 sps:$4 sm:$0xff]   ;;  %v2687_v17 = vld [vmem:[%s2871_s24 + $0x108] ss:$12 sps:$4 sm:$0xff]  }
  0x24   : > { %1087 = vmatprep.subr.bf16.mxu0 %v2784_v1  ;;  %2461 = vmatpush3.bf16.msra.mxu1 %v2639_v19  ;;  %v2752_v15 = vld [vmem:[%s3430_s3 + $0x18] sm:$0xff]   ;;  %v2688_v19 = vld [vmem:[%s2871_s24 + $0x124] ss:$12 sps:$4 sm:$0xff]  }
  0x25   : > { %2526 = vmatprep.subr.bf16.mxu1 %v2741_v5 }
  0x27   : > { %1088 = vmatpush1.bf16.msra.mxu0 %v2624_v18  ;;  %2463 = vmatmul.mubr.bf16.vlgmr.msra.gmra.mrb[0].mxu1 %v2644_v22  ;;  %v2755_v18 = vld [vmem:[%s3430_s3 + $0x20] sm:$0xff]  }
  0x28   : > { %1089 = vmatprep.subr.bf16.mxu0 %v2784_v1  ;;  %2466 = vmatprep.mubr.bf16.mxu1 %v2651_v23  ;;  %v2760_v22 = vld [vmem:[%s2871_s24 + $0x2d8] ss:$12 sps:$4 sm:$0xff]   ;;  %v2690_v23 = vld [vmem:[%s2871_s24 + $0x120] ss:$12 sps:$4 sm:$0xff]  }
  0x29   : > { %2527 = vmatpush3.bf16.msra.mxu1 %v2741_v5 }
  0x2a   : > { %2528 = vmatprep.subr.bf16.mxu1 %v2745_v9 }
  0x2b   : > { %1090 = vmatpush1.bf16.msra.mxu0 %v2626_v20  ;;  %v2754_v20 = vld [vmem:[%s2871_s24 + $0x2c0] ss:$12 sps:$4 sm:$0xff]  }
  0x2c   : > { %1091 = vmatprep.subr.bf16.mxu0 %v2784_v1 }
  0x2d   : > { %2529 = vmatpush3.bf16.msra.mxu1 %v2745_v9 }
  0x2e   : > { %2530 = vmatprep.subr.bf16.mxu1 %v2748_v11 }
  0x2f   : > { %1092 = vmatpush1.bf16.msra.mxu0 %v2628_v21  ;;  %2467 = vmatmul.mubr.bf16.gmra.mrb[4].mxu1 %v2652_v26  ;;  %v2759_v21 = vld [vmem:[%s3430_s3 + $0x28] sm:$0xff]   ;;  %v2761_v26 = vld [vmem:[%s2871_s24 + $0x2f0] ss:$12 sps:$4 sm:$0xff]  }
  0x30   : > { %1093 = vmatprep.subr.bf16.mxu0 %v2784_v1  ;;  %2470 = vmatprep.mubr.bf16.mxu1 %v2659_v27  ;;  %v2766_v27 = vld [vmem:[%s3430_s3 + $0x38] sm:$0xff]  }
  0x31   : > { %2531 = vmatpush3.bf16.msra.mxu1 %v2748_v11 }
  0x32   : > { %2532 = vmatprep.subr.bf16.mxu1 %v2752_v15 }
  0x33   : > { %1094 = vmatpush1.bf16.msra.mxu0 %v2630_v24  ;;  %v2762_v24 = vld [vmem:[%s3430_s3 + $0x30] sm:$0xff]  }
  0x34   : > { %1095 = vmatprep.subr.bf16.mxu0 %v2784_v1 }
  0x35   : > { %2533 = vmatpush3.bf16.msra.mxu1 %v2752_v15 }
  0x36   : > { %2534 = vmatprep.subr.bf16.mxu1 %v2755_v18 }
  0x37   : > { %1096 = vmatpush1.bf16.msra.mxu0 %v2632_v25  ;;  %2471 = vmatmul.mubr.bf16.gmra.mrb[8].mxu1 %v2660_v30  ;;  %v2693_v25 = vld [vmem:[%s2871_s24 + $0x13c] ss:$12 sps:$4 sm:$0xff]  }
  0x38   : > { %1097 = vmatprep.subr.bf16.mxu0 %v2784_v1  ;;  %2474 = vmatprep.mubr.bf16.mxu1 %v2667_v31  ;;  %v2698_v30 = vld [vmem:[%s2871_s24 + $0x150] ss:$12 sps:$4 sm:$0xff]   ;;  %v2701_v31 = vld [vmem:[%s2871_s24 + $0x16c] ss:$12 sps:$4 sm:$0xff]  }
  0x39   : > { %2535 = vmatpush3.bf16.msra.mxu1 %v2755_v18 }
  0x3a   : > { %2536 = vmatprep.subr.bf16.mxu1 %v2759_v21 }
  0x3b   : > { %1098 = vmatpush1.bf16.msra.mxu0 %v2634_v28  ;;  %v2695_v28 = vld [vmem:[%s2871_s24 + $0x138] ss:$12 sps:$4 sm:$0xff]  }
  0x3c   : > { %1099 = vmatprep.subr.bf16.mxu0 %v2784_v1 }
  0x3d   : > { %2537 = vmatpush3.bf16.msra.mxu1 %v2759_v21 }
  0x3e   : > { %2538 = vmatprep.subr.bf16.mxu1 %v2762_v24 }
  0x3f   : > { %1100 = vmatpush1.bf16.msra.mxu0 %v2636_v29  ;;  %2475 = vmatmul.mubr.bf16.gmra.mrb[12].mxu1 %v2668_v35  ;;  %v2696_v29 = vld [vmem:[%s2871_s24 + $0x154] ss:$12 sps:$4 sm:$0xff]   ;;  %v2709_v35 = vld [vmem:[%s2871_s24 + $0x19c] ss:$12 sps:$4 sm:$0xff]  }
  0x40   : > { %1101 = vmatprep.subr.bf16.mxu0 %v2784_v1  ;;  %2478 = vmatprep.mubr.bf16.mxu1 %v2675_v36  ;;  %v2674_v1 = vld [vmem:[%s2871_s24 + $0xc0] ss:$12 sps:$4 sm:$0xff]   ;;  %v2711_v36 = vld [vmem:[%s2871_s24 + $0x198] ss:$12 sps:$4 sm:$0xff]  }
  0x41   : > { %2539 = vmatpush3.bf16.msra.mxu1 %v2762_v24 }
  0x42   : > { %2540 = vmatprep.subr.bf16.mxu1 %v2766_v27 }
  0x43   : > { %1102 = vmatpush1.bf16.msra.mxu0 %v2638_v32  ;;  %v2703_v32 = vld [vmem:[%s2871_s24 + $0x168] ss:$12 sps:$4 sm:$0xff]  }
  0x45   : > { %2541 = vmatpush3.bf16.msra.mxu1 %v2766_v27  ;;  %v2767_v27 = vld [vmem:[%s2871_s24 + $0x2bc] ss:$12 sps:$4 sm:$0xff]  }
  0x46   : > { %1104 = vmatmul.mubr.bf16.vlgmr.msra.gmra.mrb[0].mxu0 %v2640_v33  ;;  %v2704_v33 = vld [vmem:[%s2871_s24 + $0x184] ss:$12 sps:$4 sm:$0xff]  }
  0x47   : > { %1111 = vmatprep.mubr.bf16.mxu0 %v2645_v34  ;;  %2479 = vmatmul.mubr.bf16.gmra.mrb[16].mxu1 %v2676_v39  ;;  %v2706_v34 = vld [vmem:[%s2871_s24 + $0x180] ss:$12 sps:$4 sm:$0xff]  }
  0x48   : > { %2482 = vmatprep.mubr.bf16.mxu1 %v2683_v40  ;;  %v2717_v39 = vld [vmem:[%s2871_s24 + $0x1cc] ss:$12 sps:$4 sm:$0xff]   ;;  %v2719_v40 = vld [vmem:[%s2871_s24 + $0x1c8] ss:$12 sps:$4 sm:$0xff]  }
  0x4e   : > { %1112 = vmatmul.mubr.bf16.gmra.mrb[4].mxu0 %v2647_v37  ;;  %v2712_v37 = vld [vmem:[%s2871_s24 + $0x1b4] ss:$12 sps:$4 sm:$0xff]  }
  0x4f   : > { %1119 = vmatprep.mubr.bf16.mxu0 %v2648_v38  ;;  %2483 = vmatmul.mubr.bf16.gmra.mrb[20].mxu1 %v2684_v43  ;;  %v2714_v38 = vld [vmem:[%s2871_s24 + $0x1b0] ss:$12 sps:$4 sm:$0xff]  }
  0x50   : > { %2486 = vmatprep.mubr.bf16.mxu1 %v2691_v44  ;;  %v2725_v43 = vld [vmem:[%s2871_s24 + $0x1fc] ss:$12 sps:$4 sm:$0xff]   ;;  %v2727_v44 = vld [vmem:[%s2871_s24 + $0x1f8] ss:$12 sps:$4 sm:$0xff]  }
  0x56   : > { %1120 = vmatmul.mubr.bf16.gmra.mrb[8].mxu0 %v2650_v41  ;;  %v2720_v41 = vld [vmem:[%s2871_s24 + $0x1e4] ss:$12 sps:$4 sm:$0xff]  }
  0x57   : > { %1127 = vmatprep.mubr.bf16.mxu0 %v2653_v42  ;;  %2487 = vmatmul.mubr.bf16.gmra.mrb[24].mxu1 %v2692_v47  ;;  %v2722_v42 = vld [vmem:[%s2871_s24 + $0x1e0] ss:$12 sps:$4 sm:$0xff]  }
  0x58   : > { %2490 = vmatprep.mubr.bf16.mxu1 %v2699_v48  ;;  %v2733_v47 = vld [vmem:[%s2871_s24 + $0x22c] ss:$12 sps:$4 sm:$0xff]   ;;  %v2735_v48 = vld [vmem:[%s2871_s24 + $0x228] ss:$12 sps:$4 sm:$0xff]  }
  0x5e   : > { %1128 = vmatmul.mubr.bf16.gmra.mrb[12].mxu0 %v2655_v45  ;;  %v2728_v45 = vld [vmem:[%s2871_s24 + $0x214] ss:$12 sps:$4 sm:$0xff]  }
  0x5f   : > { %1135 = vmatprep.mubr.bf16.mxu0 %v2656_v46  ;;  %2491 = vmatmul.mubr.bf16.gmra.mrb[28].mxu1 %v2700_v51  ;;  %v2730_v46 = vld [vmem:[%s2871_s24 + $0x210] ss:$12 sps:$4 sm:$0xff]  }
  0x60   : > { %2494 = vmatprep.mubr.bf16.mxu1 %v2707_v52  ;;  %v2742_v51 = vld [vmem:[%s2871_s24 + $0x25c] ss:$12 sps:$4 sm:$0xff]  }
  0x66   : > { %1136 = vmatmul.mubr.bf16.gmra.mrb[16].mxu0 %v2658_v49  ;;  %v2736_v49 = vld [vmem:[%s2871_s24 + $0x244] ss:$12 sps:$4 sm:$0xff]  }
  0x67   : > { %1143 = vmatprep.mubr.bf16.mxu0 %v2661_v50  ;;  %2495 = vmatmul.mubr.bf16.gmra.mrb[32].mxu1 %v2708_v55  ;;  %v2738_v50 = vld [vmem:[%s2871_s24 + $0x240] ss:$12 sps:$4 sm:$0xff]  }
  0x68   : > { %2498 = vmatprep.mubr.bf16.mxu1 %v2715_v56  ;;  %v2744_v56 = vld [vmem:[%s2871_s24 + $0x258] ss:$12 sps:$4 sm:$0xff]  }
  0x6e   : > { %1144 = vmatmul.mubr.bf16.gmra.mrb[20].mxu0 %v2663_v53 }
  0x6f   : > { %1151 = vmatprep.mubr.bf16.mxu0 %v2664_v54  ;;  %2499 = vmatmul.mubr.bf16.gmra.mrb[36].mxu1 %v2716_v59 }
  0x70   : > { %2502 = vmatprep.mubr.bf16.mxu1 %v2723_v60 }
  0x76   : > { %1152 = vmatmul.mubr.bf16.gmra.mrb[24].mxu0 %v2666_v57  ;;  %v2749_v57 = vld [vmem:[%s2871_s24 + $0x274] ss:$12 sps:$4 sm:$0xff]  }
  0x77   : > { %1159 = vmatprep.mubr.bf16.mxu0 %v2669_v58  ;;  %2503 = vmatmul.mubr.bf16.gmra.mrb[40].mxu1 %v2724_v63  ;;  %v2756_v63 = vld [vmem:[%s2871_s24 + $0x28c] ss:$12 sps:$4 sm:$0xff]  }
  0x78   : > { %2506 = vmatprep.mubr.bf16.mxu1 %v2731_v0 }
  0x7e   : > { %1160 = vmatmul.mubr.bf16.gmra.mrb[28].mxu0 %v2671_v61 }
  0x7f   : > { %1167 = vmatprep.mubr.bf16.mxu0 %v2672_v62  ;;  %2507 = vmatmul.mubr.bf16.gmra.mrb[44].mxu1 %v2732_v3  ;;  %v2751_v62 = vld [vmem:[%s2871_s24 + $0x270] ss:$12 sps:$4 sm:$0xff]  }
  0x80   : > { %2510 = vmatprep.mubr.bf16.mxu1 %v2739_v4  ;;  %v3047_v4 = vld [vmem:[%s3429_s2] ss:$0 sm:$0xff] }
  0x86   : > { %1168 = vmatmul.mubr.bf16.gmra.mrb[32].mxu0 %v2674_v1 }
  0x87   : > { %1175 = vmatprep.mubr.bf16.mxu0 %v2677_v2  ;;  %2511 = vmatmul.mubr.bf16.gmra.mrb[48].mxu1 %v2740_v8  ;;  %v2758_v8 = vld [vmem:[%s2871_s24 + $0x288] ss:$12 sps:$4 sm:$0xff]  }
  0x88   : > { %2514 = vmatprep.mubr.bf16.mxu1 %v2746_v10  ;;  %v2763_v10 = vld [vmem:[%s2871_s24 + $0x2a4] ss:$12 sps:$4 sm:$0xff]  }
  0x8e   : > { %1176 = vmatmul.mubr.bf16.gmra.mrb[36].mxu0 %v2679_v6 }
  0x8f   : > { %1183 = vmatprep.mubr.bf16.mxu0 %v2680_v7  ;;  %2515 = vmatmul.mubr.bf16.gmra.mrb[52].mxu1 %v2747_v14 }
  0x90   : > { %2518 = vmatprep.mubr.bf16.mxu1 %v2753_v16 }
  0x96   : > { %1184 = vmatmul.mubr.bf16.gmra.mrb[40].mxu0 %v2682_v12 }
  0x97   : > { %1191 = vmatprep.mubr.bf16.mxu0 %v2685_v13  ;;  %2519 = vmatmul.mubr.bf16.gmra.mrb[56].mxu1 %v2754_v20 }
  0x98   : > { %2522 = vmatprep.mubr.bf16.mxu1 %v2760_v22 }
  0x9e   : > { %1192 = vmatmul.mubr.bf16.gmra.mrb[44].mxu0 %v2687_v17 }
  0x9f   : > { %1199 = vmatprep.mubr.bf16.mxu0 %v2688_v19  ;;  %2523 = vmatmul.mubr.bf16.gmra.mrb[60].mxu1 %v2761_v26 }
  0xa6   : > { %1200 = vmatmul.mubr.bf16.gmra.mrb[48].mxu0 %v2690_v23 }
  0xa7   : > { %1207 = vmatprep.mubr.bf16.mxu0 %v2693_v25  ;;  %v2765_v25 = vld [vmem:[%s2871_s24 + $0x2a0] ss:$12 sps:$4 sm:$0xff]  }
  0xae   : > { %1208 = vmatmul.mubr.bf16.gmra.mrb[52].mxu0 %v2695_v28 }
  0xaf   : > { %1215 = vmatprep.mubr.bf16.mxu0 %v2696_v29 }
  0xb6   : > { %1216 = vmatmul.mubr.bf16.gmra.mrb[56].mxu0 %v2698_v30 }
  0xb7   : > { %1223 = vmatprep.mubr.bf16.mxu0 %v2701_v31 }
  0xbe   : > { %1224 = vmatmul.mubr.bf16.gmra.mrb[60].mxu0 %v2703_v32 }
  0xbf   : > { %1231 = vmatprep.mubr.bf16.mxu0 %v2704_v33 }
  0xc6   : > { %1232 = vmatmul.mubr.bf16.gmra.mrb[64].mxu0 %v2706_v34 }
  0xc7   : > { %1239 = vmatprep.mubr.bf16.mxu0 %v2709_v35 }
  0xce   : > { %1240 = vmatmul.mubr.bf16.gmra.mrb[68].mxu0 %v2711_v36 }
  0xcf   : > { %1247 = vmatprep.mubr.bf16.mxu0 %v2712_v37 }
  0xd6   : > { %1248 = vmatmul.mubr.bf16.gmra.mrb[72].mxu0 %v2714_v38 }
  0xd7   : > { %1255 = vmatprep.mubr.bf16.mxu0 %v2717_v39 }
  0xde   : > { %1256 = vmatmul.mubr.bf16.gmra.mrb[76].mxu0 %v2719_v40 }
  0xdf   : > { %1263 = vmatprep.mubr.bf16.mxu0 %v2720_v41 }
  0xe6   : > { %1264 = vmatmul.mubr.bf16.gmra.mrb[80].mxu0 %v2722_v42  ;;  %v2769_v42 = vld [vmem:[%s2871_s24 + $0x2b8] ss:$12 sps:$4 sm:$0xff]  }
  0xe7   : > { %1271 = vmatprep.mubr.bf16.mxu0 %v2725_v43 }
  0xee   : > { %1272 = vmatmul.mubr.bf16.gmra.mrb[84].mxu0 %v2727_v44  ;;  %v2770_v44 = vld [vmem:[%s2871_s24 + $0x2d4] ss:$12 sps:$4 sm:$0xff]  }
  0xef   : > { %1279 = vmatprep.mubr.bf16.mxu0 %v2728_v45 }
  0xf6   : > { %1280 = vmatmul.mubr.bf16.gmra.mrb[88].mxu0 %v2730_v46 }
  0xf7   : > { %1287 = vmatprep.mubr.bf16.mxu0 %v2733_v47 }
  0xfa   : > { %v2464_v52 = vpop.f32.mrb[0].mxu1 }
  0xfb   : > { %v1394_v53 = vpop.f32.mrb[1].mxu1 }
  0xfc   : > { %v2465_v54 = vpop.f32.mrb[2].mxu1 }
  0xfd   : > { %v1397_v55 = vpop.f32.mrb[3].mxu1 }
  0xfe   : > { %1288 = vmatmul.mubr.bf16.gmra.mrb[92].mxu0 %v2735_v48 }
  0xff   : > { %1295 = vmatprep.mubr.bf16.mxu0 %v2736_v49 }
 0x102   : > { %v3028_v58 = vpop.f32.mrb[4].mxu1 }
 0x103   : > { %v1410_v59 = vpop.f32.mrb[5].mxu1 }
 0x104   : > { %v3030_v60 = vpop.f32.mrb[6].mxu1 }
 0x105   : > { %v3032_v61 = vpop.f32.mrb[7].mxu1 }
 0x106   : > { %1296 = vmatmul.mubr.bf16.gmra.mrb[96].mxu0 %v2738_v50 }
 0x107   : > { %1303 = vmatprep.mubr.bf16.mxu0 %v2742_v51 }
 0x10a   : > { %v3036_v0 = vpop.f32.mrb[8].mxu1 }
 0x10b   : > { %v3038_v1 = vpop.f32.mrb[9].mxu1 }
 0x10c   : > { %v3040_v2 = vpop.f32.mrb[10].mxu1 }
 0x10d   : > { %v3042_v3 = vpop.f32.mrb[11].mxu1 }
 0x10e   : > { %1304 = vmatmul.mubr.bf16.gmra.mrb[100].mxu0 %v2744_v56 }
 0x10f   : > { %1311 = vmatprep.mubr.bf16.mxu0 %v2749_v57 }
 0x112   : > { %v3052_v11 = vpop.f32.mrb[12].mxu1 }
 0x113   : > { %v3055_v15 = vpop.f32.mrb[13].mxu1 }
 0x114   : > { %v3057_v16 = vpop.f32.mrb[14].mxu1 }
 0x115   : > { %v3059_v18 = vpop.f32.mrb[15].mxu1 }
 0x116   : > { %1312 = vmatmul.mubr.bf16.gmra.mrb[104].mxu0 %v2751_v62  ;;  %v2772_v62 = vld [vmem:[%s2871_s24 + $0x2d0] ss:$12 sps:$4 sm:$0xff]  }
 0x117   : > { %1319 = vmatprep.mubr.bf16.mxu0 %v2756_v63 }
 0x119   : > { %v1105_v5 = vpop.f32.mrb[0].mxu0 }
 0x11a   : > { %v1106_v6 = vadd.f32 %v3047_v4, %v1105_v5  ;;  %v1107_v7 = vpop.f32.mrb[1].mxu0  ;;  %v3064_v28 = vpop.f32.mrb[16].mxu1  ;;  %v2773_v5 = vld [vmem:[%s2871_s24 + $0x2ec] ss:$12 sps:$4 sm:$0xff]  }
 0x11b   : > { %v1108_v9 = vpop.f32.mrb[2].mxu0  ;;  %v3067_v32 = vpop.f32.mrb[17].mxu1 }
 0x11c   : > { %v1109_v12 = vadd.f32 %v3047_v4, %v1108_v9  ;;  %v1395_v13 = vadd.f32 %v1394_v53, %v1106_v6  ;;  %v1110_v14 = vpop.f32.mrb[3].mxu0  ;;  %v3069_v33 = vpop.f32.mrb[18].mxu1 }
 0x11d   : > { %v3071_v35 = vpop.f32.mrb[19].mxu1 }
 0x11e   : > { %v1398_v17 = vadd.f32 %v1397_v55, %v1109_v12  ;;  %1320 = vmatmul.mubr.bf16.gmra.mrb[108].mxu0 %v2758_v8  ;;  %v1649_v19 = vmax.f32 %v1395_v13, 0.0 }
 0x11f   : > { %1327 = vmatprep.mubr.bf16.mxu0 %v2763_v10 }
 0x120   : > { %v1650_v20 = vmax.f32 %v1398_v17, 0.0 }
 0x121   : > { %v1113_v21 = vpop.f32.mrb[4].mxu0 }
 0x122   : > { %v1713_v22 = vpack.c.bf16 %v1650_v20, %v1649_v19  ;;  %v1114_v23 = vadd.f32 %v3047_v4, %v1113_v21  ;;  %v1115_v24 = vpop.f32.mrb[5].mxu0  ;;  %v3076_v45 = vpop.f32.mrb[20].mxu1 }
 0x123   : > { %v1116_v26 = vpop.f32.mrb[6].mxu0  ;;  %v3079_v49 = vpop.f32.mrb[21].mxu1 }
 0x124   : > { %v1403_v29 = vadd.f32 %v2464_v52, %v1114_v23  ;;  %v1117_v30 = vadd.f32 %v3047_v4, %v1116_v26  ;;  %v1118_v31 = vpop.f32.mrb[7].mxu0  ;;  %2542 = vmatprep.mubr.bf16.mxu1 %v1713_v22  ;;  %v3081_v50 = vpop.f32.mrb[22].mxu1  ;;  %v2775_v22 = vld [vmem:[%s2871_s24 + $0x2e8] ss:$12 sps:$4 sm:$0xff]   ;;  %s2233_s24 = sshll.u32 %s3434_s26, 3 }
 0x125   : > { %v3084_v52 = vpop.f32.mrb[23].mxu1  ;;  %s3282_s28 = scalar_lea.vmem %s3432_s5, %s2233_s24 }
 0x126   : > { %v1406_v34 = vadd.f32 %v2465_v54, %v1117_v30  ;;  %1328 = vmatmul.mubr.bf16.gmra.mrb[112].mxu0 %v2765_v25  ;;  %v1651_v36 = vmax.f32 %v1403_v29, 0.0 }
 0x127   : > { %1335 = vmatprep.mubr.bf16.mxu0 %v2767_v27 }
 0x128   : > { %v1652_v37 = vmax.f32 %v1406_v34, 0.0 }
 0x129   : > { %v1121_v38 = vpop.f32.mrb[8].mxu0 }
 0x12a   : > { %v1714_v39 = vpack.c.bf16 %v1652_v37, %v1651_v36  ;;  %v1122_v40 = vadd.f32 %v3047_v4, %v1121_v38  ;;  %v1123_v41 = vpop.f32.mrb[9].mxu0  ;;  %v3089_v6 = vpop.f32.mrb[24].mxu1 }
 0x12b   : > { %v1124_v43 = vpop.f32.mrb[10].mxu0  ;;  %v3093_v9 = vpop.f32.mrb[25].mxu1 }
 0x12c   : > { %v1125_v46 = vadd.f32 %v3047_v4, %v1124_v43  ;;  %v1411_v47 = vadd.f32 %v1410_v59, %v1122_v40  ;;  %v1126_v48 = vpop.f32.mrb[11].mxu0  ;;  %2543 = vmatmul.mubr.bf16.vlgmr.msra.gmra.mrb[64].mxu1 %v1714_v39  ;;  %v3095_v10 = vpop.f32.mrb[26].mxu1 }
 0x12d   : > { %v3098_v13 = vpop.f32.mrb[27].mxu1 }
 0x12e   : > { %v1414_v51 = vadd.f32 %v3032_v61, %v1125_v46  ;;  %1336 = vmatmul.mubr.bf16.gmra.mrb[116].mxu0 %v2769_v42  ;;  %v1653_v53 = vmax.f32 %v1411_v47, 0.0 }
 0x12f   : > { %1343 = vmatprep.mubr.bf16.mxu0 %v2770_v44 }
 0x130   : > { %v1654_v54 = vmax.f32 %v1414_v51, 0.0 }
 0x131   : > { %v1129_v55 = vpop.f32.mrb[12].mxu0 }
 0x132   : > { %v1715_v56 = vpack.c.bf16 %v1654_v54, %v1653_v53  ;;  %v1130_v57 = vadd.f32 %v3047_v4, %v1129_v55  ;;  %v1131_v59 = vpop.f32.mrb[13].mxu0  ;;  %v3102_v24 = vpop.f32.mrb[28].mxu1 }
 0x133   : > { %v1132_v63 = vpop.f32.mrb[14].mxu0  ;;  %v3106_v27 = vpop.f32.mrb[29].mxu1 }
 0x134   : > { %v1419_v7 = vadd.f32 %v3028_v58, %v1130_v57  ;;  %v1133_v61 = vadd.f32 %v3047_v4, %v1132_v63  ;;  %v1134_v8 = vpop.f32.mrb[15].mxu0  ;;  %2546 = vmatprep.mubr.bf16.mxu1 %v1715_v56  ;;  %v3108_v29 = vpop.f32.mrb[30].mxu1 }
 0x135   : > { %v3111_v31 = vpop.f32.mrb[31].mxu1 }
 0x136   : > { %v1422_v12 = vadd.f32 %v3030_v60, %v1133_v61  ;;  %1344 = vmatmul.mubr.bf16.gmra.mrb[120].mxu0 %v2772_v62  ;;  %v1655_v14 = vmax.f32 %v1419_v7, 0.0 }
 0x137   : > { %1351 = vmatprep.mubr.bf16.mxu0 %v2773_v5 }
 0x138   : > { %v1656_v17 = vmax.f32 %v1422_v12, 0.0 }
 0x139   : > { %v1137_v19 = vpop.f32.mrb[16].mxu0 }
 0x13a   : > { %v1138_v58 = vadd.f32 %v3047_v4, %v1137_v19  ;;  %v1139_v20 = vpop.f32.mrb[17].mxu0  ;;  %v1716_v21 = vpack.c.bf16 %v1656_v17, %v1655_v14 }
 0x13b   : > { %v1140_v23 = vpop.f32.mrb[18].mxu0 }
 0x13c   : > { %v1141_v25 = vadd.f32 %v3047_v4, %v1140_v23  ;;  %v1427_v26 = vadd.f32 %v3038_v1, %v1138_v58  ;;  %v1142_v60 = vpop.f32.mrb[19].mxu0  ;;  %2547 = vmatmul.mubr.bf16.gmra.mrb[68].mxu1 %v1716_v21  ;;  %v3114_v1 = vpop.f32.mrb[32].mxu1 }
 0x13e   : > { %v1430_v30 = vadd.f32 %v3042_v3, %v1141_v25  ;;  %1352 = vmatmul.mubr.bf16.gmra.mrb[124].mxu0 %v2775_v22  ;;  %v1657_v34 = vmax.f32 %v1427_v26, 0.0  ;;  %v3118_v3 = vpop.f32.mrb[33].mxu1 }
 0x13f   : > { %v3120_v46 = vpop.f32.mrb[34].mxu1 }
 0x140   : > { %v1658_v36 = vmax.f32 %v1430_v30, 0.0  ;;  %v3123_v48 = vpop.f32.mrb[35].mxu1 }
 0x141   : > { %v1145_v37 = vpop.f32.mrb[20].mxu0 }
 0x142   : > { %v1717_v38 = vpack.c.bf16 %v1658_v36, %v1657_v34  ;;  %v1146_v39 = vadd.f32 %v3047_v4, %v1145_v37  ;;  %v1147_v40 = vpop.f32.mrb[21].mxu0  ;;  %v3126_v59 = vpop.f32.mrb[36].mxu1 }
 0x143   : > { %v1148_v41 = vpop.f32.mrb[22].mxu0  ;;  %v3130_v7 = vpop.f32.mrb[37].mxu1 }
 0x144   : > { %v1435_v42 = vadd.f32 %v3036_v0, %v1146_v39  ;;  %v1149_v43 = vadd.f32 %v3047_v4, %v1148_v41  ;;  %v1150_v44 = vpop.f32.mrb[23].mxu0  ;;  %2550 = vmatprep.mubr.bf16.mxu1 %v1717_v38 }
 0x146   : > { %v1438_v47 = vadd.f32 %v3040_v2, %v1149_v43  ;;  %v1659_v51 = vmax.f32 %v1435_v42, 0.0  ;;  %v3132_v2 = vpop.f32.mrb[38].mxu1 }
 0x147   : > { %v3135_v8 = vpop.f32.mrb[39].mxu1 }
 0x148   : > { %v1660_v53 = vmax.f32 %v1438_v47, 0.0 }
 0x149   : > { %v1153_v54 = vpop.f32.mrb[24].mxu0 }
 0x14a   : > { %v1154_v55 = vadd.f32 %v3047_v4, %v1153_v54  ;;  %v1155_v56 = vpop.f32.mrb[25].mxu0  ;;  %v1718_v57 = vpack.c.bf16 %v1660_v53, %v1659_v51  ;;  %v3138_v22 = vpop.f32.mrb[40].mxu1 }
 0x14b   : > { %v1156_v0 = vpop.f32.mrb[26].mxu0  ;;  %v3142_v26 = vpop.f32.mrb[41].mxu1 }
 0x14c   : > { %v1157_v62 = vadd.f32 %v3047_v4, %v1156_v0  ;;  %v1443_v63 = vadd.f32 %v3055_v15, %v1154_v55  ;;  %v1158_v5 = vpop.f32.mrb[27].mxu0  ;;  %2551 = vmatmul.mubr.bf16.gmra.mrb[72].mxu1 %v1718_v57 }
 0x14e   : > { %v1446_v61 = vadd.f32 %v3059_v18, %v1157_v62  ;;  %v1661_v12 = vmax.f32 %v1443_v63, 0.0  ;;  %v3144_v18 = vpop.f32.mrb[42].mxu1 }
 0x14f   : > { %v3147_v30 = vpop.f32.mrb[43].mxu1 }
 0x150   : > { %v1662_v14 = vmax.f32 %v1446_v61, 0.0 }
 0x151   : > { %v1161_v17 = vpop.f32.mrb[28].mxu0 }
 0x152   : > { %v1719_v19 = vpack.c.bf16 %v1662_v14, %v1661_v12  ;;  %v1162_v58 = vadd.f32 %v3047_v4, %v1161_v17  ;;  %v1163_v20 = vpop.f32.mrb[29].mxu0  ;;  %v3150_v41 = vpop.f32.mrb[44].mxu1 }
 0x153   : > { %v1164_v21 = vpop.f32.mrb[30].mxu0  ;;  %v3154_v47 = vpop.f32.mrb[45].mxu1 }
 0x154   : > { %v1451_v15 = vadd.f32 %v3052_v11, %v1162_v58  ;;  %v1165_v23 = vadd.f32 %v3047_v4, %v1164_v21  ;;  %v1166_v25 = vpop.f32.mrb[31].mxu0  ;;  %2554 = vmatprep.mubr.bf16.mxu1 %v1719_v19 }
 0x156   : > { %v1454_v60 = vadd.f32 %v3057_v16, %v1165_v23  ;;  %v1663_v34 = vmax.f32 %v1451_v15, 0.0  ;;  %v3156_v16 = vpop.f32.mrb[46].mxu1 }
 0x157   : > { %v3159_v53 = vpop.f32.mrb[47].mxu1 }
 0x158   : > { %v1664_v36 = vmax.f32 %v1454_v60, 0.0 }
 0x159   : > { %v1169_v37 = vpop.f32.mrb[32].mxu0 }
 0x15a   : > { %v1170_v38 = vadd.f32 %v3047_v4, %v1169_v37  ;;  %v1171_v39 = vpop.f32.mrb[33].mxu0  ;;  %v1720_v40 = vpack.c.bf16 %v1664_v36, %v1663_v34  ;;  %v3162_v5 = vpop.f32.mrb[48].mxu1 }
 0x15b   : > { %v1172_v11 = vpop.f32.mrb[34].mxu0  ;;  %v3166_v14 = vpop.f32.mrb[49].mxu1 }
 0x15c   : > { %v1173_v42 = vadd.f32 %v3047_v4, %v1172_v11  ;;  %v1459_v43 = vadd.f32 %v3067_v32, %v1170_v38  ;;  %v1174_v44 = vpop.f32.mrb[35].mxu0  ;;  %2555 = vmatmul.mubr.bf16.gmra.mrb[76].mxu1 %v1720_v40 }
 0x15e   : > { %v1462_v51 = vadd.f32 %v3071_v35, %v1173_v42  ;;  %v1665_v54 = vmax.f32 %v1459_v43, 0.0  ;;  %v3168_v35 = vpop.f32.mrb[50].mxu1 }
 0x15f   : > { %v3171_v19 = vpop.f32.mrb[51].mxu1 }
 0x160   : > { %v1666_v55 = vmax.f32 %v1462_v51, 0.0 }
 0x161   : > { %v1177_v56 = vpop.f32.mrb[36].mxu0 }
 0x162   : > { %v1721_v57 = vpack.c.bf16 %v1666_v55, %v1665_v54  ;;  %v1178_v0 = vadd.f32 %v3047_v4, %v1177_v56  ;;  %v1179_v62 = vpop.f32.mrb[37].mxu0  ;;  %v3174_v60 = vpop.f32.mrb[52].mxu1 }
 0x163   : > { %v1180_v63 = vpop.f32.mrb[38].mxu0  ;;  %v3178_v38 = vpop.f32.mrb[53].mxu1 }
 0x164   : > { %v1467_v32 = vadd.f32 %v3064_v28, %v1178_v0  ;;  %v1181_v61 = vadd.f32 %v3047_v4, %v1180_v63  ;;  %v1182_v12 = vpop.f32.mrb[39].mxu0  ;;  %2558 = vmatprep.mubr.bf16.mxu1 %v1721_v57 }
 0x166   : > { %v1470_v17 = vadd.f32 %v3069_v33, %v1181_v61  ;;  %v1667_v58 = vmax.f32 %v1467_v32, 0.0  ;;  %v3180_v33 = vpop.f32.mrb[54].mxu1 }
 0x167   : > { %v3183_v40 = vpop.f32.mrb[55].mxu1 }
 0x168   : > { %v1668_v20 = vmax.f32 %v1470_v17, 0.0 }
 0x169   : > { %v1185_v21 = vpop.f32.mrb[40].mxu0 }
 0x16a   : > { %v1186_v15 = vadd.f32 %v3047_v4, %v1185_v21  ;;  %v1187_v23 = vpop.f32.mrb[41].mxu0  ;;  %v1722_v25 = vpack.c.bf16 %v1668_v20, %v1667_v58  ;;  %v3189_v62 = vpop.f32.mrb[56].mxu1 }
 0x16b   : > { %v1188_v28 = vpop.f32.mrb[42].mxu0  ;;  %v3191_v32 = vpop.f32.mrb[57].mxu1 }
 0x16c   : > { %v1189_v34 = vadd.f32 %v3047_v4, %v1188_v28  ;;  %v1475_v36 = vadd.f32 %v3079_v49, %v1186_v15  ;;  %v1190_v37 = vpop.f32.mrb[43].mxu0  ;;  %2559 = vmatmul.mubr.bf16.gmra.mrb[80].mxu1 %v1722_v25  ;;  %v3193_v12 = vpop.f32.mrb[58].mxu1 }
 0x16e   : > { %v1478_v39 = vadd.f32 %v3084_v52, %v1189_v34  ;;  %v1669_v11 = vmax.f32 %v1475_v36, 0.0 }
 0x170   : > { %v1670_v42 = vmax.f32 %v1478_v39, 0.0 }
 0x171   : > { %v1193_v43 = vpop.f32.mrb[44].mxu0 }
 0x172   : > { %v1723_v44 = vpack.c.bf16 %v1670_v42, %v1669_v11  ;;  %v1194_v51 = vadd.f32 %v3047_v4, %v1193_v43  ;;  %v1195_v54 = vpop.f32.mrb[45].mxu0 }
 0x173   : > { %v1196_v55 = vpop.f32.mrb[46].mxu0 }
 0x174   : > { %v1483_v49 = vadd.f32 %v3076_v45, %v1194_v51  ;;  %v1197_v56 = vadd.f32 %v3047_v4, %v1196_v55  ;;  %v1198_v57 = vpop.f32.mrb[47].mxu0  ;;  %2562 = vmatprep.mubr.bf16.mxu1 %v1723_v44  ;;  %v3196_v45 = vpop.f32.mrb[59].mxu1 }
 0x175   : > { %v3198_v15 = vpop.f32.mrb[60].mxu1 }
 0x176   : > { %v1486_v0 = vadd.f32 %v3081_v50, %v1197_v56  ;;  %v1671_v52 = vmax.f32 %v1483_v49, 0.0  ;;  %v3202_v28 = vpop.f32.mrb[61].mxu1 }
 0x177   : > { %v3204_v34 = vpop.f32.mrb[62].mxu1 }
 0x178   : > { %v1672_v63 = vmax.f32 %v1486_v0, 0.0  ;;  %v3207_v37 = vpop.f32.mrb[63].mxu1 }
 0x179   : > { %v1201_v61 = vpop.f32.mrb[48].mxu0 }
 0x17a   : > { %v1202_v17 = vadd.f32 %v3047_v4, %v1201_v61  ;;  %v1203_v58 = vpop.f32.mrb[49].mxu0  ;;  %v1724_v20 = vpack.c.bf16 %v1672_v63, %v1671_v52 }
 0x17b   : > { %v1204_v21 = vpop.f32.mrb[50].mxu0 }
 0x17c   : > { %v1205_v50 = vadd.f32 %v3047_v4, %v1204_v21  ;;  %v1491_v23 = vadd.f32 %v3093_v9, %v1202_v17  ;;  %v1206_v25 = vpop.f32.mrb[51].mxu0  ;;  %2563 = vmatmul.mubr.bf16.gmra.mrb[84].mxu1 %v1724_v20 }
 0x17e   : > { %v1494_v36 = vadd.f32 %v3098_v13, %v1205_v50  ;;  %v1673_v39 = vmax.f32 %v1491_v23, 0.0 }
 0x180   : > { %v1674_v11 = vmax.f32 %v1494_v36, 0.0 }
 0x181   : > { %v1209_v42 = vpop.f32.mrb[52].mxu0 }
 0x182   : > { %v1725_v43 = vpack.c.bf16 %v1674_v11, %v1673_v39  ;;  %v1210_v44 = vadd.f32 %v3047_v4, %v1209_v42  ;;  %v1211_v51 = vpop.f32.mrb[53].mxu0 }
 0x183   : > { %v1212_v54 = vpop.f32.mrb[54].mxu0 }
 0x184   : > { %v1499_v9 = vadd.f32 %v3089_v6, %v1210_v44  ;;  %v1213_v55 = vadd.f32 %v3047_v4, %v1212_v54  ;;  %v1214_v49 = vpop.f32.mrb[55].mxu0  ;;  %2566 = vmatprep.mubr.bf16.mxu1 %v1725_v43 }
 0x186   : > { %v1502_v56 = vadd.f32 %v3095_v10, %v1213_v55  ;;  %v1675_v57 = vmax.f32 %v1499_v9, 0.0 }
 0x188   : > { %v1676_v13 = vmax.f32 %v1502_v56, 0.0 }
 0x189   : > { %v1217_v0 = vpop.f32.mrb[56].mxu0 }
 0x18a   : > { %v1218_v52 = vadd.f32 %v3047_v4, %v1217_v0  ;;  %v1219_v63 = vpop.f32.mrb[57].mxu0  ;;  %v1726_v61 = vpack.c.bf16 %v1676_v13, %v1675_v57 }
 0x18b   : > { %v1220_v17 = vpop.f32.mrb[58].mxu0 }
 0x18c   : > { %v1221_v58 = vadd.f32 %v3047_v4, %v1220_v17  ;;  %v1507_v20 = vadd.f32 %v3106_v27, %v1218_v52  ;;  %v1222_v21 = vpop.f32.mrb[59].mxu0  ;;  %2567 = vmatmul.mubr.bf16.gmra.mrb[88].mxu1 %v1726_v61 }
 0x18e   : > { %v1510_v6 = vadd.f32 %v3111_v31, %v1221_v58  ;;  %v1677_v50 = vmax.f32 %v1507_v20, 0.0 }
 0x190   : > { %v1678_v23 = vmax.f32 %v1510_v6, 0.0 }
 0x191   : > { %v1225_v25 = vpop.f32.mrb[60].mxu0 }
 0x192   : > { %v1727_v10 = vpack.c.bf16 %v1678_v23, %v1677_v50  ;;  %v1226_v36 = vadd.f32 %v3047_v4, %v1225_v25  ;;  %v1227_v39 = vpop.f32.mrb[61].mxu0 }
 0x193   : > { %v1228_v11 = vpop.f32.mrb[62].mxu0 }
 0x194   : > { %v1515_v42 = vadd.f32 %v3102_v24, %v1226_v36  ;;  %v1229_v43 = vadd.f32 %v3047_v4, %v1228_v11  ;;  %v1230_v44 = vpop.f32.mrb[63].mxu0  ;;  %2570 = vmatprep.mubr.bf16.mxu1 %v1727_v10 }
 0x196   : > { %v1518_v27 = vadd.f32 %v3108_v29, %v1229_v43  ;;  %v1679_v51 = vmax.f32 %v1515_v42, 0.0 }
 0x198   : > { %v1680_v54 = vmax.f32 %v1518_v27, 0.0 }
 0x199   : > { %v1233_v9 = vpop.f32.mrb[64].mxu0 }
 0x19a   : > { %v1234_v31 = vadd.f32 %v3047_v4, %v1233_v9  ;;  %v1235_v55 = vpop.f32.mrb[65].mxu0  ;;  %v1728_v49 = vpack.c.bf16 %v1680_v54, %v1679_v51 }
 0x19b   : > { %v1236_v56 = vpop.f32.mrb[66].mxu0 }
 0x19c   : > { %v1237_v57 = vadd.f32 %v3047_v4, %v1236_v56  ;;  %v1523_v13 = vadd.f32 %v3118_v3, %v1234_v31  ;;  %v1238_v0 = vpop.f32.mrb[67].mxu0  ;;  %2571 = vmatmul.mubr.bf16.gmra.mrb[92].mxu1 %v1728_v49 }
 0x19e   : > { %v1526_v24 = vadd.f32 %v3123_v48, %v1237_v57  ;;  %v1681_v52 = vmax.f32 %v1523_v13, 0.0 }
 0x1a0   : > { %v1682_v63 = vmax.f32 %v1526_v24, 0.0 }
 0x1a1   : > { %v1241_v61 = vpop.f32.mrb[68].mxu0 }
 0x1a2   : > { %v1729_v29 = vpack.c.bf16 %v1682_v63, %v1681_v52  ;;  %v1242_v17 = vadd.f32 %v3047_v4, %v1241_v61  ;;  %v1243_v58 = vpop.f32.mrb[69].mxu0 }
 0x1a3   : > { %v1244_v20 = vpop.f32.mrb[70].mxu0 }
 0x1a4   : > { %v1531_v21 = vadd.f32 %v3114_v1, %v1242_v17  ;;  %v1245_v6 = vadd.f32 %v3047_v4, %v1244_v20  ;;  %v1246_v50 = vpop.f32.mrb[71].mxu0  ;;  %2574 = vmatprep.mubr.bf16.mxu1 %v1729_v29 }
 0x1a6   : > { %v1534_v3 = vadd.f32 %v3120_v46, %v1245_v6  ;;  %v1683_v23 = vmax.f32 %v1531_v21, 0.0 }
 0x1a8   : > { %v1684_v25 = vmax.f32 %v1534_v3, 0.0 }
 0x1a9   : > { %v1249_v10 = vpop.f32.mrb[72].mxu0 }
 0x1aa   : > { %v1250_v48 = vadd.f32 %v3047_v4, %v1249_v10  ;;  %v1251_v36 = vpop.f32.mrb[73].mxu0  ;;  %v1730_v39 = vpack.c.bf16 %v1684_v25, %v1683_v23 }
 0x1ab   : > { %v1252_v11 = vpop.f32.mrb[74].mxu0 }
 0x1ac   : > { %v1253_v42 = vadd.f32 %v3047_v4, %v1252_v11  ;;  %v1539_v43 = vadd.f32 %v3130_v7, %v1250_v48  ;;  %v1254_v44 = vpop.f32.mrb[75].mxu0  ;;  %2575 = vmatmul.mubr.bf16.gmra.mrb[96].mxu1 %v1730_v39 }
 0x1ae   : > { %v1542_v1 = vadd.f32 %v3135_v8, %v1253_v42  ;;  %v1685_v27 = vmax.f32 %v1539_v43, 0.0 }
 0x1b0   : > { %v1686_v51 = vmax.f32 %v1542_v1, 0.0 }
 0x1b1   : > { %v1257_v54 = vpop.f32.mrb[76].mxu0 }
 0x1b2   : > { %v1731_v46 = vpack.c.bf16 %v1686_v51, %v1685_v27  ;;  %v1258_v9 = vadd.f32 %v3047_v4, %v1257_v54  ;;  %v1259_v31 = vpop.f32.mrb[77].mxu0 }
 0x1b3   : > { %v1260_v55 = vpop.f32.mrb[78].mxu0 }
 0x1b4   : > { %v1547_v49 = vadd.f32 %v3126_v59, %v1258_v9  ;;  %v1261_v56 = vadd.f32 %v3047_v4, %v1260_v55  ;;  %v1262_v57 = vpop.f32.mrb[79].mxu0  ;;  %2578 = vmatprep.mubr.bf16.mxu1 %v1731_v46 }
 0x1b6   : > { %v1550_v7 = vadd.f32 %v3132_v2, %v1261_v56  ;;  %v1687_v13 = vmax.f32 %v1547_v49, 0.0 }
 0x1b8   : > { %v1688_v0 = vmax.f32 %v1550_v7, 0.0 }
 0x1b9   : > { %v1265_v24 = vpop.f32.mrb[80].mxu0 }
 0x1ba   : > { %v1266_v8 = vadd.f32 %v3047_v4, %v1265_v24  ;;  %v1267_v52 = vpop.f32.mrb[81].mxu0  ;;  %v1732_v63 = vpack.c.bf16 %v1688_v0, %v1687_v13 }
 0x1bb   : > { %v1268_v61 = vpop.f32.mrb[82].mxu0 }
 0x1bc   : > { %v1269_v29 = vadd.f32 %v3047_v4, %v1268_v61  ;;  %v1555_v17 = vadd.f32 %v3142_v26, %v1266_v8  ;;  %v1270_v58 = vpop.f32.mrb[83].mxu0  ;;  %2579 = vmatmul.mubr.bf16.gmra.mrb[100].mxu1 %v1732_v63 }
 0x1be   : > { %v1558_v59 = vadd.f32 %v3147_v30, %v1269_v29  ;;  %v1689_v20 = vmax.f32 %v1555_v17, 0.0 }
 0x1c0   : > { %v1690_v21 = vmax.f32 %v1558_v59, 0.0 }
 0x1c1   : > { %v1273_v6 = vpop.f32.mrb[84].mxu0 }
 0x1c2   : > { %v1733_v2 = vpack.c.bf16 %v1690_v21, %v1689_v20  ;;  %v1274_v50 = vadd.f32 %v3047_v4, %v1273_v6  ;;  %v1275_v3 = vpop.f32.mrb[85].mxu0 }
 0x1c3   : > { %v1276_v23 = vpop.f32.mrb[86].mxu0 }
 0x1c4   : > { %v1563_v25 = vadd.f32 %v3138_v22, %v1274_v50  ;;  %v1277_v10 = vadd.f32 %v3047_v4, %v1276_v23  ;;  %v1278_v48 = vpop.f32.mrb[87].mxu0  ;;  %2582 = vmatprep.mubr.bf16.mxu1 %v1733_v2 }
 0x1c6   : > { %v1566_v26 = vadd.f32 %v3144_v18, %v1277_v10  ;;  %v1691_v36 = vmax.f32 %v1563_v25, 0.0 }
 0x1c8   : > { %v1692_v39 = vmax.f32 %v1566_v26, 0.0 }
 0x1c9   : > { %v1281_v11 = vpop.f32.mrb[88].mxu0 }
 0x1ca   : > { %v1282_v30 = vadd.f32 %v3047_v4, %v1281_v11  ;;  %v1283_v42 = vpop.f32.mrb[89].mxu0  ;;  %v1734_v43 = vpack.c.bf16 %v1692_v39, %v1691_v36 }
 0x1cb   : > { %v1284_v44 = vpop.f32.mrb[90].mxu0 }
 0x1cc   : > { %v1285_v1 = vadd.f32 %v3047_v4, %v1284_v44  ;;  %v1571_v27 = vadd.f32 %v3154_v47, %v1282_v30  ;;  %v1286_v51 = vpop.f32.mrb[91].mxu0  ;;  %2583 = vmatmul.mubr.bf16.gmra.mrb[104].mxu1 %v1734_v43 }
 0x1ce   : > { %v1574_v22 = vadd.f32 %v3159_v53, %v1285_v1  ;;  %v1693_v54 = vmax.f32 %v1571_v27, 0.0 }
 0x1d0   : > { %v1694_v46 = vmax.f32 %v1574_v22, 0.0 }
 0x1d1   : > { %v1289_v9 = vpop.f32.mrb[92].mxu0 }
 0x1d2   : > { %v1735_v18 = vpack.c.bf16 %v1694_v46, %v1693_v54  ;;  %v1290_v31 = vadd.f32 %v3047_v4, %v1289_v9  ;;  %v1291_v55 = vpop.f32.mrb[93].mxu0 }
 0x1d3   : > { %v1292_v49 = vpop.f32.mrb[94].mxu0 }
 0x1d4   : > { %v1579_v56 = vadd.f32 %v3150_v41, %v1290_v31  ;;  %v1293_v57 = vadd.f32 %v3047_v4, %v1292_v49  ;;  %v1294_v7 = vpop.f32.mrb[95].mxu0  ;;  %2586 = vmatprep.mubr.bf16.mxu1 %v1735_v18 }
 0x1d6   : > { %v1582_v47 = vadd.f32 %v3156_v16, %v1293_v57  ;;  %v1695_v13 = vmax.f32 %v1579_v56, 0.0 }
 0x1d8   : > { %v1696_v0 = vmax.f32 %v1582_v47, 0.0 }
 0x1d9   : > { %v1297_v24 = vpop.f32.mrb[96].mxu0 }
 0x1da   : > { %v1298_v53 = vadd.f32 %v3047_v4, %v1297_v24  ;;  %v1299_v8 = vpop.f32.mrb[97].mxu0  ;;  %v1736_v52 = vpack.c.bf16 %v1696_v0, %v1695_v13  ;;  %v3276_v13 = vld [vmem:[%s3431_s4] ss:$0 sm:$0xff] }
 0x1db   : > { %v1300_v63 = vpop.f32.mrb[98].mxu0 }
 0x1dc   : > { %v1301_v61 = vadd.f32 %v3047_v4, %v1300_v63  ;;  %v1587_v29 = vadd.f32 %v3166_v14, %v1298_v53  ;;  %v1302_v17 = vpop.f32.mrb[99].mxu0  ;;  %2587 = vmatmul.mubr.bf16.gmra.mrb[108].mxu1 %v1736_v52 }
 0x1de   : > { %v1590_v41 = vadd.f32 %v3171_v19, %v1301_v61  ;;  %v1697_v58 = vmax.f32 %v1587_v29, 0.0 }
 0x1e0   : > { %v1698_v59 = vmax.f32 %v1590_v41, 0.0 }
 0x1e1   : > { %v1305_v20 = vpop.f32.mrb[100].mxu0 }
 0x1e2   : > { %v1737_v16 = vpack.c.bf16 %v1698_v59, %v1697_v58  ;;  %v1306_v21 = vadd.f32 %v3047_v4, %v1305_v20  ;;  %v1307_v6 = vpop.f32.mrb[101].mxu0 }
 0x1e3   : > { %v1308_v2 = vpop.f32.mrb[102].mxu0 }
 0x1e4   : > { %v1595_v50 = vadd.f32 %v3162_v5, %v1306_v21  ;;  %v1309_v3 = vadd.f32 %v3047_v4, %v1308_v2  ;;  %v1310_v23 = vpop.f32.mrb[103].mxu0  ;;  %2590 = vmatprep.mubr.bf16.mxu1 %v1737_v16 }
 0x1e6   : > { %v1598_v14 = vadd.f32 %v3168_v35, %v1309_v3  ;;  %v1699_v25 = vmax.f32 %v1595_v50, 0.0 }
 0x1e8   : > { %v1700_v10 = vmax.f32 %v1598_v14, 0.0 }
 0x1e9   : > { %v1313_v48 = vpop.f32.mrb[104].mxu0 }
 0x1ea   : > { %v1314_v19 = vadd.f32 %v3047_v4, %v1313_v48  ;;  %v1315_v26 = vpop.f32.mrb[105].mxu0  ;;  %v1738_v36 = vpack.c.bf16 %v1700_v10, %v1699_v25 }
 0x1eb   : > { %v1316_v39 = vpop.f32.mrb[106].mxu0 }
 0x1ec   : > { %v1317_v11 = vadd.f32 %v3047_v4, %v1316_v39  ;;  %v1603_v30 = vadd.f32 %v3178_v38, %v1314_v19  ;;  %v1318_v42 = vpop.f32.mrb[107].mxu0  ;;  %2591 = vmatmul.mubr.bf16.gmra.mrb[112].mxu1 %v1738_v36 }
 0x1ee   : > { %v1606_v5 = vadd.f32 %v3183_v40, %v1317_v11  ;;  %v1701_v43 = vmax.f32 %v1603_v30, 0.0 }
 0x1f0   : > { %v1702_v44 = vmax.f32 %v1606_v5, 0.0 }
 0x1f1   : > { %v1321_v1 = vpop.f32.mrb[108].mxu0 }
 0x1f2   : > { %v1739_v35 = vpack.c.bf16 %v1702_v44, %v1701_v43  ;;  %v1322_v27 = vadd.f32 %v3047_v4, %v1321_v1  ;;  %v1323_v51 = vpop.f32.mrb[109].mxu0 }
 0x1f3   : > { %v1324_v22 = vpop.f32.mrb[110].mxu0 }
 0x1f4   : > { %v1611_v54 = vadd.f32 %v3174_v60, %v1322_v27  ;;  %v1325_v46 = vadd.f32 %v3047_v4, %v1324_v22  ;;  %v1326_v9 = vpop.f32.mrb[111].mxu0  ;;  %2594 = vmatprep.mubr.bf16.mxu1 %v1739_v35 }
 0x1f6   : > { %v1614_v38 = vadd.f32 %v3180_v33, %v1325_v46  ;;  %v1703_v18 = vmax.f32 %v1611_v54, 0.0 }
 0x1f8   : > { %v1704_v31 = vmax.f32 %v1614_v38, 0.0 }
 0x1f9   : > { %v1329_v40 = vpop.f32.mrb[112].mxu0 }
 0x1fa   : > { %v1330_v55 = vadd.f32 %v3047_v4, %v1329_v40  ;;  %v1331_v49 = vpop.f32.mrb[113].mxu0  ;;  %v1740_v56 = vpack.c.bf16 %v1704_v31, %v1703_v18 }
 0x1fb   : > { %v1332_v57 = vpop.f32.mrb[114].mxu0 }
 0x1fc   : > { %v1619_v7 = vadd.f32 %v3191_v32, %v1330_v55  ;;  %v1333_v47 = vadd.f32 %v3047_v4, %v1332_v57  ;;  %v1334_v60 = vpop.f32.mrb[115].mxu0  ;;  %2595 = vmatmul.mubr.bf16.gmra.mrb[116].mxu1 %v1740_v56 }
 0x1fe   : > { %v1622_v33 = vadd.f32 %v3196_v45, %v1333_v47  ;;  %v1705_v0 = vmax.f32 %v1619_v7, 0.0 }
 0x1ff   : > { %v2544_v32 = vpop.f32.mrb[64].mxu1 }
 0x200   : > { %v1706_v24 = vmax.f32 %v1622_v33, 0.0  ;;  %v1859_v53 = vadd.f32 %v2544_v32, %v3276_v13  ;;  %v1850_v8 = vpop.f32.mrb[65].mxu1 }
 0x201   : > { %v1851_v52 = vadd.f32 %v3276_v13, %v1850_v8  ;;  %v1337_v63 = vpop.f32.mrb[116].mxu0  ;;  %v2545_v61 = vpop.f32.mrb[66].mxu1 }
 0x202   : > { %2107 = vst [vmem:[%s3282_s28 + $0x10] sm:$0xff] %v1859_v53  ;;  %v1338_v45 = vadd.f32 %v3047_v4, %v1337_v63  ;;  %v1862_v29 = vadd.f32 %v2545_v61, %v3276_v13  ;;  %v1339_v17 = vpop.f32.mrb[117].mxu0  ;;  %v1853_v41 = vpop.f32.mrb[67].mxu1  ;;  %v1741_v58 = vpack.c.bf16 %v1706_v24, %v1705_v0 }
 0x203   : > { %2105 = vst [vmem:[%s3282_s28] sm:$0xff] %v1851_v52  ;;  %v1854_v59 = vadd.f32 %v3276_v13, %v1853_v41  ;;  %v1340_v20 = vpop.f32.mrb[118].mxu0 }
 0x204   : > { %v1627_v16 = vadd.f32 %v3189_v62, %v1338_v45  ;;  %2108 = vst [vmem:[%s3282_s28 + $0x18] sm:$0xff] %v1862_v29  ;;  %v1341_v21 = vadd.f32 %v3047_v4, %v1340_v20  ;;  %v1342_v6 = vpop.f32.mrb[119].mxu0  ;;  %2598 = vmatprep.mubr.bf16.mxu1 %v1741_v58 }
 0x205   : > { %2106 = vst [vmem:[%s3282_s28 + $0x8] sm:$0xff] %v1854_v59 }
 0x206   : > { %v1630_v2 = vadd.f32 %v3193_v12, %v1341_v21  ;;  %v1707_v50 = vmax.f32 %v1627_v16, 0.0 }
 0x208   : > { %v1708_v3 = vmax.f32 %v1630_v2, 0.0 }
 0x209   : > { %v1345_v23 = vpop.f32.mrb[120].mxu0 }
 0x20a   : > { %v1346_v14 = vadd.f32 %v3047_v4, %v1345_v23  ;;  %v1347_v25 = vpop.f32.mrb[121].mxu0  ;;  %v1742_v10 = vpack.c.bf16 %v1708_v3, %v1707_v50 }
 0x20b   : > { %v1348_v48 = vpop.f32.mrb[122].mxu0 }
 0x20c   : > { %v1635_v19 = vadd.f32 %v3202_v28, %v1346_v14  ;;  %v1349_v62 = vadd.f32 %v3047_v4, %v1348_v48  ;;  %v1350_v26 = vpop.f32.mrb[123].mxu0  ;;  %2599 = vmatmul.mubr.bf16.gmra.mrb[120].mxu1 %v1742_v10 }
 0x20e   : > { %v1638_v36 = vadd.f32 %v3207_v37, %v1349_v62  ;;  %v1709_v12 = vmax.f32 %v1635_v19, 0.0 }
 0x20f   : > { %v2548_v39 = vpop.f32.mrb[68].mxu1 }
 0x210   : > { %v1710_v11 = vmax.f32 %v1638_v36, 0.0  ;;  %v1875_v30 = vadd.f32 %v2548_v39, %v3276_v13  ;;  %v1866_v42 = vpop.f32.mrb[69].mxu1 }
 0x211   : > { %v1867_v5 = vadd.f32 %v3276_v13, %v1866_v42  ;;  %v1353_v43 = vpop.f32.mrb[124].mxu0  ;;  %v2549_v44 = vpop.f32.mrb[70].mxu1 }
 0x212   : > { %2111 = vst [vmem:[%s3282_s28 + $0x30] sm:$0xff] %v1875_v30  ;;  %v1354_v28 = vadd.f32 %v3047_v4, %v1353_v43  ;;  %v1878_v1 = vadd.f32 %v2549_v44, %v3276_v13  ;;  %v1355_v35 = vpop.f32.mrb[125].mxu0  ;;  %v1869_v27 = vpop.f32.mrb[71].mxu1  ;;  %v1743_v37 = vpack.c.bf16 %v1710_v11, %v1709_v12 }
 0x213   : > { %2109 = vst [vmem:[%s3282_s28 + $0x20] sm:$0xff] %v1867_v5  ;;  %v1870_v51 = vadd.f32 %v3276_v13, %v1869_v27  ;;  %v1356_v22 = vpop.f32.mrb[126].mxu0 }
 0x214   : > { %v1643_v54 = vadd.f32 %v3198_v15, %v1354_v28  ;;  %2112 = vst [vmem:[%s3282_s28 + $0x38] sm:$0xff] %v1878_v1  ;;  %v1357_v46 = vadd.f32 %v3047_v4, %v1356_v22  ;;  %v1358_v9 = vpop.f32.mrb[127].mxu0  ;;  %2602 = vmatprep.mubr.bf16.mxu1 %v1743_v37 }
 0x215   : > { %2110 = vst [vmem:[%s3282_s28 + $0x28] sm:$0xff] %v1870_v51 }
 0x216   : > { %v1646_v38 = vadd.f32 %v3204_v34, %v1357_v46  ;;  %v1711_v18 = vmax.f32 %v1643_v54, 0.0 }
 0x218   : > { %v1712_v31 = vmax.f32 %v1646_v38, 0.0 }
 0x21a   : > { %v1744_v40 = vpack.c.bf16 %v1712_v31, %v1711_v18 }
 0x21c   : > { %2603 = vmatmul.mubr.bf16.gmra.mrb[124].mxu1 %v1744_v40 }
 0x21f   : > { %v2552_v55 = vpop.f32.mrb[72].mxu1 }
 0x220   : > { %v1891_v49 = vadd.f32 %v2552_v55, %v3276_v13  ;;  %v1882_v15 = vpop.f32.mrb[73].mxu1 }
 0x221   : > { %v1883_v56 = vadd.f32 %v3276_v13, %v1882_v15  ;;  %v2553_v4 = vpop.f32.mrb[74].mxu1 }
 0x222   : > { %2115 = vst [vmem:[%s3282_s28 + $0x50] sm:$0xff] %v1891_v49  ;;  %v1894_v57 = vadd.f32 %v2553_v4, %v3276_v13  ;;  %v1885_v7 = vpop.f32.mrb[75].mxu1 }
 0x223   : > { %2113 = vst [vmem:[%s3282_s28 + $0x40] sm:$0xff] %v1883_v56  ;;  %v1886_v34 = vadd.f32 %v3276_v13, %v1885_v7 }
 0x224   : > { %2116 = vst [vmem:[%s3282_s28 + $0x58] sm:$0xff] %v1894_v57 }
 0x225   : > { %2114 = vst [vmem:[%s3282_s28 + $0x48] sm:$0xff] %v1886_v34 }
 0x22f   : > { %v2556_v47 = vpop.f32.mrb[76].mxu1 }
 0x230   : > { %v1907_v60 = vadd.f32 %v2556_v47, %v3276_v13  ;;  %v1898_v33 = vpop.f32.mrb[77].mxu1 }
 0x231   : > { %v1899_v32 = vadd.f32 %v3276_v13, %v1898_v33  ;;  %v2557_v0 = vpop.f32.mrb[78].mxu1 }
 0x232   : > { %2119 = vst [vmem:[%s3282_s28 + $0x70] sm:$0xff] %v1907_v60  ;;  %v1910_v24 = vadd.f32 %v2557_v0, %v3276_v13  ;;  %v1901_v53 = vpop.f32.mrb[79].mxu1 }
 0x233   : > { %2117 = vst [vmem:[%s3282_s28 + $0x60] sm:$0xff] %v1899_v32  ;;  %v1902_v8 = vadd.f32 %v3276_v13, %v1901_v53 }
 0x234   : > { %2120 = vst [vmem:[%s3282_s28 + $0x78] sm:$0xff] %v1910_v24 }
 0x235   : > { %2118 = vst [vmem:[%s3282_s28 + $0x68] sm:$0xff] %v1902_v8 }
 0x23f   : > { %v2560_v52 = vpop.f32.mrb[80].mxu1 }
 0x240   : > { %v1923_v63 = vadd.f32 %v2560_v52, %v3276_v13  ;;  %v1914_v61 = vpop.f32.mrb[81].mxu1 }
 0x241   : > { %v1915_v45 = vadd.f32 %v3276_v13, %v1914_v61  ;;  %v2561_v29 = vpop.f32.mrb[82].mxu1 }
 0x242   : > { %2123 = vst [vmem:[%s3282_s28 + $0x90] sm:$0xff] %v1923_v63  ;;  %v1926_v17 = vadd.f32 %v2561_v29, %v3276_v13  ;;  %v1917_v41 = vpop.f32.mrb[83].mxu1 }
 0x243   : > { %2121 = vst [vmem:[%s3282_s28 + $0x80] sm:$0xff] %v1915_v45  ;;  %v1918_v58 = vadd.f32 %v3276_v13, %v1917_v41 }
 0x244   : > { %2124 = vst [vmem:[%s3282_s28 + $0x98] sm:$0xff] %v1926_v17 }
 0x245   : > { %2122 = vst [vmem:[%s3282_s28 + $0x88] sm:$0xff] %v1918_v58 }
 0x24f   : > { %v2564_v59 = vpop.f32.mrb[84].mxu1 }
 0x250   : > { %v1939_v20 = vadd.f32 %v2564_v59, %v3276_v13  ;;  %v1930_v16 = vpop.f32.mrb[85].mxu1 }
 0x251   : > { %v1931_v21 = vadd.f32 %v3276_v13, %v1930_v16  ;;  %v2565_v6 = vpop.f32.mrb[86].mxu1 }
 0x252   : > { %2127 = vst [vmem:[%s3282_s28 + $0xb0] sm:$0xff] %v1939_v20  ;;  %v1942_v2 = vadd.f32 %v2565_v6, %v3276_v13  ;;  %v1933_v50 = vpop.f32.mrb[87].mxu1 }
 0x253   : > { %2125 = vst [vmem:[%s3282_s28 + $0xa0] sm:$0xff] %v1931_v21  ;;  %v1934_v3 = vadd.f32 %v3276_v13, %v1933_v50 }
 0x254   : > { %2128 = vst [vmem:[%s3282_s28 + $0xb8] sm:$0xff] %v1942_v2 }
 0x255   : > { %2126 = vst [vmem:[%s3282_s28 + $0xa8] sm:$0xff] %v1934_v3 }
 0x25f   : > { %v2568_v23 = vpop.f32.mrb[88].mxu1 }
 0x260   : > { %v1955_v14 = vadd.f32 %v2568_v23, %v3276_v13  ;;  %v1946_v25 = vpop.f32.mrb[89].mxu1 }
 0x261   : > { %v1947_v10 = vadd.f32 %v3276_v13, %v1946_v25  ;;  %v2569_v48 = vpop.f32.mrb[90].mxu1 }
 0x262   : > { %2131 = vst [vmem:[%s3282_s28 + $0xd0] sm:$0xff] %v1955_v14  ;;  %v1958_v19 = vadd.f32 %v2569_v48, %v3276_v13  ;;  %v1949_v62 = vpop.f32.mrb[91].mxu1 }
 0x263   : > { %2129 = vst [vmem:[%s3282_s28 + $0xc0] sm:$0xff] %v1947_v10  ;;  %v1950_v26 = vadd.f32 %v3276_v13, %v1949_v62 }
 0x264   : > { %2132 = vst [vmem:[%s3282_s28 + $0xd8] sm:$0xff] %v1958_v19 }
 0x265   : > { %2130 = vst [vmem:[%s3282_s28 + $0xc8] sm:$0xff] %v1950_v26 }
 0x26f   : > { %v2572_v36 = vpop.f32.mrb[92].mxu1 }
 0x270   : > { %v1971_v39 = vadd.f32 %v2572_v36, %v3276_v13  ;;  %v1962_v12 = vpop.f32.mrb[93].mxu1 }
 0x271   : > { %v1963_v11 = vadd.f32 %v3276_v13, %v1962_v12  ;;  %v2573_v30 = vpop.f32.mrb[94].mxu1 }
 0x272   : > { %2135 = vst [vmem:[%s3282_s28 + $0xf0] sm:$0xff] %v1971_v39  ;;  %v1974_v42 = vadd.f32 %v2573_v30, %v3276_v13  ;;  %v1965_v5 = vpop.f32.mrb[95].mxu1 }
 0x273   : > { %2133 = vst [vmem:[%s3282_s28 + $0xe0] sm:$0xff] %v1963_v11  ;;  %v1966_v43 = vadd.f32 %v3276_v13, %v1965_v5 }
 0x274   : > { %2136 = vst [vmem:[%s3282_s28 + $0xf8] sm:$0xff] %v1974_v42 }
 0x275   : > { %2134 = vst [vmem:[%s3282_s28 + $0xe8] sm:$0xff] %v1966_v43 }
 0x27f   : > { %v2576_v44 = vpop.f32.mrb[96].mxu1 }
 0x280   : > { %v1987_v28 = vadd.f32 %v2576_v44, %v3276_v13  ;;  %v1978_v1 = vpop.f32.mrb[97].mxu1 }
 0x281   : > { %v1979_v35 = vadd.f32 %v3276_v13, %v1978_v1  ;;  %v2577_v27 = vpop.f32.mrb[98].mxu1 }
 0x282   : > { %2139 = vst [vmem:[%s3282_s28 + $0x110] sm:$0xff] %v1987_v28  ;;  %v1990_v37 = vadd.f32 %v2577_v27, %v3276_v13  ;;  %v1981_v51 = vpop.f32.mrb[99].mxu1 }
 0x283   : > { %2137 = vst [vmem:[%s3282_s28 + $0x100] sm:$0xff] %v1979_v35  ;;  %v1982_v22 = vadd.f32 %v3276_v13, %v1981_v51 }
 0x284   : > { %2140 = vst [vmem:[%s3282_s28 + $0x118] sm:$0xff] %v1990_v37 }
 0x285   : > { %2138 = vst [vmem:[%s3282_s28 + $0x108] sm:$0xff] %v1982_v22 }
 0x28f   : > { %v2580_v54 = vpop.f32.mrb[100].mxu1 }
 0x290   : > { %v2003_v46 = vadd.f32 %v2580_v54, %v3276_v13  ;;  %v1994_v9 = vpop.f32.mrb[101].mxu1 }
 0x291   : > { %v1995_v38 = vadd.f32 %v3276_v13, %v1994_v9  ;;  %v2581_v18 = vpop.f32.mrb[102].mxu1 }
 0x292   : > { %2143 = vst [vmem:[%s3282_s28 + $0x130] sm:$0xff] %v2003_v46  ;;  %v2006_v31 = vadd.f32 %v2581_v18, %v3276_v13  ;;  %v1997_v40 = vpop.f32.mrb[103].mxu1 }
 0x293   : > { %2141 = vst [vmem:[%s3282_s28 + $0x120] sm:$0xff] %v1995_v38  ;;  %v1998_v55 = vadd.f32 %v3276_v13, %v1997_v40 }
 0x294   : > { %2144 = vst [vmem:[%s3282_s28 + $0x138] sm:$0xff] %v2006_v31 }
 0x295   : > { %2142 = vst [vmem:[%s3282_s28 + $0x128] sm:$0xff] %v1998_v55 }
 0x29f   : > { %v2584_v49 = vpop.f32.mrb[104].mxu1 }
 0x2a0   : > { %v2019_v15 = vadd.f32 %v2584_v49, %v3276_v13  ;;  %v2010_v56 = vpop.f32.mrb[105].mxu1 }
 0x2a1   : > { %v2011_v4 = vadd.f32 %v3276_v13, %v2010_v56  ;;  %v2585_v57 = vpop.f32.mrb[106].mxu1 }
 0x2a2   : > { %2147 = vst [vmem:[%s3282_s28 + $0x150] sm:$0xff] %v2019_v15  ;;  %v2022_v7 = vadd.f32 %v2585_v57, %v3276_v13  ;;  %v2013_v34 = vpop.f32.mrb[107].mxu1 }
 0x2a3   : > { %2145 = vst [vmem:[%s3282_s28 + $0x140] sm:$0xff] %v2011_v4  ;;  %v2014_v47 = vadd.f32 %v3276_v13, %v2013_v34 }
 0x2a4   : > { %2148 = vst [vmem:[%s3282_s28 + $0x158] sm:$0xff] %v2022_v7 }
 0x2a5   : > { %2146 = vst [vmem:[%s3282_s28 + $0x148] sm:$0xff] %v2014_v47 }
 0x2af   : > { %v2588_v60 = vpop.f32.mrb[108].mxu1 }
 0x2b0   : > { %v2035_v33 = vadd.f32 %v2588_v60, %v3276_v13  ;;  %v2026_v32 = vpop.f32.mrb[109].mxu1 }
 0x2b1   : > { %v2027_v0 = vadd.f32 %v3276_v13, %v2026_v32  ;;  %v2589_v24 = vpop.f32.mrb[110].mxu1 }
 0x2b2   : > { %2151 = vst [vmem:[%s3282_s28 + $0x170] sm:$0xff] %v2035_v33  ;;  %v2038_v53 = vadd.f32 %v2589_v24, %v3276_v13  ;;  %v2029_v8 = vpop.f32.mrb[111].mxu1 }
 0x2b3   : > { %2149 = vst [vmem:[%s3282_s28 + $0x160] sm:$0xff] %v2027_v0  ;;  %v2030_v52 = vadd.f32 %v3276_v13, %v2029_v8 }
 0x2b4   : > { %2152 = vst [vmem:[%s3282_s28 + $0x178] sm:$0xff] %v2038_v53 }
 0x2b5   : > { %2150 = vst [vmem:[%s3282_s28 + $0x168] sm:$0xff] %v2030_v52 }
 0x2bf   : > { %v2592_v63 = vpop.f32.mrb[112].mxu1 }
 0x2c0   : > { %v2051_v61 = vadd.f32 %v2592_v63, %v3276_v13  ;;  %v2042_v45 = vpop.f32.mrb[113].mxu1 }
 0x2c1   : > { %v2043_v29 = vadd.f32 %v3276_v13, %v2042_v45  ;;  %v2593_v17 = vpop.f32.mrb[114].mxu1 }
 0x2c2   : > { %2155 = vst [vmem:[%s3282_s28 + $0x190] sm:$0xff] %v2051_v61  ;;  %v2054_v41 = vadd.f32 %v2593_v17, %v3276_v13  ;;  %v2045_v58 = vpop.f32.mrb[115].mxu1 }
 0x2c3   : > { %2153 = vst [vmem:[%s3282_s28 + $0x180] sm:$0xff] %v2043_v29  ;;  %v2046_v59 = vadd.f32 %v3276_v13, %v2045_v58 }
 0x2c4   : > { %2156 = vst [vmem:[%s3282_s28 + $0x198] sm:$0xff] %v2054_v41 }
 0x2c5   : > { %2154 = vst [vmem:[%s3282_s28 + $0x188] sm:$0xff] %v2046_v59 }
 0x2cf   : > { %v2596_v20 = vpop.f32.mrb[116].mxu1 }
 0x2d0   : > { %v2067_v16 = vadd.f32 %v2596_v20, %v3276_v13  ;;  %v2058_v21 = vpop.f32.mrb[117].mxu1 }
 0x2d1   : > { %v2059_v6 = vadd.f32 %v3276_v13, %v2058_v21  ;;  %v2597_v2 = vpop.f32.mrb[118].mxu1 }
 0x2d2   : > { %2159 = vst [vmem:[%s3282_s28 + $0x1b0] sm:$0xff] %v2067_v16  ;;  %v2070_v50 = vadd.f32 %v2597_v2, %v3276_v13  ;;  %v2061_v3 = vpop.f32.mrb[119].mxu1 }
 0x2d3   : > { %2157 = vst [vmem:[%s3282_s28 + $0x1a0] sm:$0xff] %v2059_v6  ;;  %v2062_v23 = vadd.f32 %v3276_v13, %v2061_v3 }
 0x2d4   : > { %2160 = vst [vmem:[%s3282_s28 + $0x1b8] sm:$0xff] %v2070_v50 }
 0x2d5   : > { %2158 = vst [vmem:[%s3282_s28 + $0x1a8] sm:$0xff] %v2062_v23 }
 0x2df   : > { %v2600_v14 = vpop.f32.mrb[120].mxu1 }
 0x2e0   : > { %v2083_v25 = vadd.f32 %v2600_v14, %v3276_v13  ;;  %v2074_v10 = vpop.f32.mrb[121].mxu1 }
 0x2e1   : > { %v2075_v48 = vadd.f32 %v3276_v13, %v2074_v10  ;;  %v2601_v19 = vpop.f32.mrb[122].mxu1 }
 0x2e2   : > { %2163 = vst [vmem:[%s3282_s28 + $0x1d0] sm:$0xff] %v2083_v25  ;;  %v2086_v62 = vadd.f32 %v2601_v19, %v3276_v13  ;;  %v2077_v26 = vpop.f32.mrb[123].mxu1 }
 0x2e3   : > { %2161 = vst [vmem:[%s3282_s28 + $0x1c0] sm:$0xff] %v2075_v48  ;;  %v2078_v36 = vadd.f32 %v3276_v13, %v2077_v26 }
 0x2e4   : > { %2164 = vst [vmem:[%s3282_s28 + $0x1d8] sm:$0xff] %v2086_v62 }
 0x2e5   : > { %2162 = vst [vmem:[%s3282_s28 + $0x1c8] sm:$0xff] %v2078_v36 }
 0x2ef   : > { %v2604_v39 = vpop.f32.mrb[124].mxu1 }
 0x2f0   : > { %v2099_v12 = vadd.f32 %v2604_v39, %v3276_v13  ;;  %v2090_v11 = vpop.f32.mrb[125].mxu1 }
 0x2f1   : > { %v2091_v30 = vadd.f32 %v3276_v13, %v2090_v11  ;;  %v2605_v42 = vpop.f32.mrb[126].mxu1 }
 0x2f2   : > { %2167 = vst [vmem:[%s3282_s28 + $0x1f0] sm:$0xff] %v2099_v12  ;;  %v2102_v5 = vadd.f32 %v2605_v42, %v3276_v13  ;;  %v2093_v43 = vpop.f32.mrb[127].mxu1 }
 0x2f3   : > { %2165 = vst [vmem:[%s3282_s28 + $0x1e0] sm:$0xff] %v2091_v30  ;;  %v2094_v44 = vadd.f32 %v3276_v13, %v2093_v43 }
 0x2f4   : > { %2168 = vst [vmem:[%s3282_s28 + $0x1f8] sm:$0xff] %v2102_v5 }
 0x2f5   : > { %2166 = vst [vmem:[%s3282_s28 + $0x1e8] sm:$0xff] %v2094_v44 }
 0x2f6 PF: > { %s15_s18 = sadd.s32 1, %s2782_s18  }
 0x2f7   : > { %p12_p4 = scmp.ge.s32.totalorder %s15_s18, 6  }
 0x2f9   :  { %14 = sbr.rel (!%p12_p4) target bundleno = 1 (0x1), region = 70 }

</bundles_post_ra>
